<compile_context>
chip_gen: v7x
topology: tpu7x:2x2x1
jax: 0.10.0
libtpu: 0.0.40
codegen_flags: <defaults>
</compile_context>

<pallas_src>
import jax
import jax.numpy as jnp
from jax.experimental import pallas as pl
from jax.experimental.pallas import tpu as pltpu

EPS = 1e-5


def _compiler_params(dim_sem):
    return pltpu.CompilerParams(
        dimension_semantics=dim_sem,
        vmem_limit_bytes=32 * 1024 * 1024,
    )


# ----------------------------------------------------------------------------
# Pallas kernels
# ----------------------------------------------------------------------------
def _conv_bias_kernel(p_ref, w_ref, b_ref, o_ref):
    # (tile_r, K)bf16 @ (K, Cout)bf16 -> f32 accumulate, + bias, cast to bf16.
    y = jnp.dot(p_ref[...], w_ref[...], preferred_element_type=jnp.float32)
    o_ref[...] = (y + b_ref[...]).astype(o_ref.dtype)


def _conv_bn_relu_kernel(p_ref, w_ref, g_ref, b_ref, o_ref):
    # conv (as matmul) + train-mode BatchNorm + ReLU.
    # Conv bias is intentionally absent: it cancels under mean subtraction.
    y = jnp.dot(p_ref[...], w_ref[...], preferred_element_type=jnp.float32)
    r_inv = 1.0 / y.shape[0]
    s = jnp.sum(y, axis=0, keepdims=True)          # one-pass stats
    ss = jnp.sum(y * y, axis=0, keepdims=True)
    mean = s * r_inv
    var = ss * r_inv - mean * mean                 # biased batch variance
    scale = g_ref[...] * jax.lax.rsqrt(var + EPS)  # fold gamma into the scale
    shift = b_ref[...] - mean * scale
    o_ref[...] = jnp.maximum(y * scale + shift, 0.0).astype(o_ref.dtype)


def _conv_bn_relu_head_kernel(p_ref, w4_ref, g4_ref, b4_ref, w5_ref, b5_ref,
                              o_ref):
    # conv4 + BN + ReLU, then the folded conv5 (4x4 valid, Cout=1) + sigmoid.
    y = jnp.dot(p_ref[...], w4_ref[...], preferred_element_type=jnp.float32)
    r_inv = 1.0 / y.shape[0]
    s = jnp.sum(y, axis=0, keepdims=True)
    ss = jnp.sum(y * y, axis=0, keepdims=True)
    mean = s * r_inv
    var = ss * r_inv - mean * mean
    scale = g4_ref[...] * jax.lax.rsqrt(var + EPS)
    shift = b4_ref[...] - mean * scale
    a = jnp.maximum(y * scale + shift, 0.0)        # (N*16, 8d) f32, rows (n,p)

    n = o_ref.shape[0]
    kk = w5_ref.shape[1]                           # KH*KW = 16
    c = w5_ref.shape[2]                            # 8d channels
    a3 = a.reshape(n, kk, c)                       # split leading rows only
    prod = a3 * w5_ref[...]                        # (n, 16, 8d), f32 VPU work
    logit = jnp.sum(jnp.sum(prod, axis=2, keepdims=True), axis=1, keepdims=True)
    o_ref[...] = jax.nn.sigmoid(logit + b5_ref[...]).astype(o_ref.dtype)


# ----------------------------------------------------------------------------
# pallas_call wrappers
# ----------------------------------------------------------------------------
def _conv_bias(patches, w, b, *, tile_r=1024):
    R, K = patches.shape
    _, C = w.shape
    tile_r = min(tile_r, R)
    if R % tile_r != 0:
        tile_r = R
    cost = pl.CostEstimate(
        flops=2 * R * K * C,
        transcendentals=0,
        bytes_accessed=patches.nbytes + w.nbytes + b.nbytes + R * C * 2,
    )
    # Row-tiled "parallel" grid: pipelines the patch DMA and lets both
    # TensorCores work on v7x. (Output lanes = Cout < 128 -> masked stores, but
    # at these sizes the store path is sub-microsecond.)
    return pl.pallas_call(
        _conv_bias_kernel,
        out_shape=jax.ShapeDtypeStruct((R, C), jnp.bfloat16),
        grid=(R // tile_r,),
        in_specs=[
            pl.BlockSpec((tile_r, K), lambda i: (i, 0)),
            pl.BlockSpec((K, C), lambda i: (0, 0)),
            pl.BlockSpec((1, C), lambda i: (0, 0)),
        ],
        out_specs=pl.BlockSpec((tile_r, C), lambda i: (i, 0)),
        compiler_params=_compiler_params(("parallel",)),
        cost_estimate=cost,
    )(patches, w, b)


def _conv_bn_relu(patches, w, gamma, beta):
    R, K = patches.shape
    _, C = w.shape
    cost = pl.CostEstimate(
        flops=2 * R * K * C + 8 * R * C,
        transcendentals=C,
        bytes_accessed=(patches.nbytes + w.nbytes + gamma.nbytes + beta.nbytes
                        + R * C * 2),
    )
    # TODO(synk): at larger batch, tile R with a split sum/sum-sq reduction so
    # BN layers can also use a "parallel" grid (v7x two-core scaling path).
    return pl.pallas_call(
        _conv_bn_relu_kernel,
        out_shape=jax.ShapeDtypeStruct((R, C), jnp.bfloat16),
        grid=(1,),
        in_specs=[
            pl.BlockSpec((R, K), lambda i: (0, 0)),
            pl.BlockSpec((K, C), lambda i: (0, 0)),
            pl.BlockSpec((1, C), lambda i: (0, 0)),
            pl.BlockSpec((1, C), lambda i: (0, 0)),
        ],
        out_specs=pl.BlockSpec((R, C), lambda i: (0, 0)),
        compiler_params=_compiler_params(("arbitrary",)),
        cost_estimate=cost,
    )(patches, w, gamma, beta)


def _conv_bn_relu_sigmoid_head(patches, w4, gamma4, beta4, w5, b5, n):
    R, K = patches.shape
    _, C = w4.shape
    kk = w5.shape[1]
    cost = pl.CostEstimate(
        flops=2 * R * K * C + 2 * n * kk * C + 10 * R * C,
        transcendentals=C + n,
        bytes_accessed=(patches.nbytes + w4.nbytes + gamma4.nbytes
                        + beta4.nbytes + w5.nbytes + b5.nbytes + n * 4),
    )
    return pl.pallas_call(
        _conv_bn_relu_head_kernel,
        out_shape=jax.ShapeDtypeStruct((n, 1, 1), jnp.float32),
        grid=(1,),
        in_specs=[
            pl.BlockSpec((R, K), lambda i: (0, 0)),
            pl.BlockSpec((K, C), lambda i: (0, 0)),
            pl.BlockSpec((1, C), lambda i: (0, 0)),
            pl.BlockSpec((1, C), lambda i: (0, 0)),
            pl.BlockSpec((1, kk, C), lambda i: (0, 0, 0)),
            pl.BlockSpec((1, 1, 1), lambda i: (0, 0, 0)),
        ],
        out_specs=pl.BlockSpec((n, 1, 1), lambda i: (0, 0, 0)),
        compiler_params=_compiler_params(("arbitrary",)),
        cost_estimate=cost,
    )(patches, w4, gamma4, beta4, w5, b5)


# ----------------------------------------------------------------------------
# Host-side glue: NHWC im2col (fused into the jit with the pallas calls)
# ----------------------------------------------------------------------------
def _im2col_nhwc(x, kh, kw, stride, pad):
    """(N,H,W,C) -> ((N*OH*OW, kh*kw*C), OH, OW).

    Column order is (kh, kw, c), matching HWIO-flattened weights, so no
    transposes are needed between layers."""
    n, h, w, c = x.shape
    xp = jnp.pad(x, ((0, 0), (pad, pad), (pad, pad), (0, 0)))
    oh = (h + 2 * pad - kh) // stride + 1
    ow = (w + 2 * pad - kw) // stride + 1
    cols = []
    for i in range(kh):
        for j in range(kw):
            cols.append(
                xp[:, i:i + stride * oh:stride, j:j + stride * ow:stride, :])
    patches = jnp.concatenate(cols, axis=-1)          # (N, OH, OW, kh*kw*C)
    return patches.reshape(n * oh * ow, kh * kw * c), oh, ow


# ----------------------------------------------------------------------------
# Parameters (deterministic synthetic, PyTorch OIHW layout)
# ----------------------------------------------------------------------------
def make_params(key, d=16):
    dims = [(d, 3), (2 * d, d), (4 * d, 2 * d), (8 * d, 4 * d), (1, 8 * d)]
    params = []
    for cout, cin in dims:
        key, kw_, kb_, kg_, kbe_ = jax.random.split(key, 5)
        W = 0.02 * jax.random.normal(kw_, (cout, cin, 4, 4), jnp.float32)
        b = 0.1 * jax.random.normal(kb_, (cout,), jnp.float32)
        gamma = 1.0 + 0.1 * jax.random.normal(kg_, (cout,), jnp.float32)
        beta = 0.1 * jax.random.normal(kbe_, (cout,), jnp.float32)
        params.append((W, b, gamma, beta))
    return params


def prepare_params(params):
    """Flatten OIHW conv weights to HWIO (kh*kw*cin, cout) bf16 matmul operands
    and reshape the small f32 vectors for the kernels. Conv biases of the BN
    layers are dropped: they cancel exactly under train-mode mean subtraction."""
    (W1, b1, _, _), (W2, _, g2, be2), (W3, _, g3, be3), \
        (W4, _, g4, be4), (W5, b5, _, _) = params

    def flat(W):  # OIHW -> (KH*KW*Cin, Cout), bf16
        cout, cin, kh, kw = W.shape
        return (W.transpose(2, 3, 1, 0)
                 .reshape(kh * kw * cin, cout).astype(jnp.bfloat16))

    def row(v):
        return v.reshape(1, -1).astype(jnp.float32)

    # conv5 weights as (1, KH*KW, Cin) for the folded VPU head (kept f32).
    w5 = (W5[0].transpose(1, 2, 0)
              .reshape(1, 16, W5.shape[1]).astype(jnp.float32))
    return dict(
        w1=flat(W1), b1=row(b1),
        w2=flat(W2), g2=row(g2), be2=row(be2),
        w3=flat(W3), g3=row(g3), be3=row(be3),
        w4=flat(W4), g4=row(g4), be4=row(be4),
        w5=w5, b5=b5.reshape(1, 1, 1).astype(jnp.float32),
    )


# ----------------------------------------------------------------------------
# Forward pass
# ----------------------------------------------------------------------------
@jax.jit
def discriminator2_forward(x_nchw, prep):
    """x: (N, 3, H, W) float32 (PyTorch layout) -> (N, 1, 1, 1) float32."""
    n = x_nchw.shape[0]
    h = jnp.transpose(x_nchw, (0, 2, 3, 1)).astype(jnp.bfloat16)  # NHWC bf16

    p, oh, ow = _im2col_nhwc(h, 4, 4, 2, 1)
    a = _conv_bias(p, prep["w1"], prep["b1"])                      # Conv 3->d
    h = a.reshape(n, oh, ow, -1)

    p, oh, ow = _im2col_nhwc(h, 4, 4, 2, 1)
    a = _conv_bn_relu(p, prep["w2"], prep["g2"], prep["be2"])      # d->2d
    h = a.reshape(n, oh, ow, -1)

    p, oh, ow = _im2col_nhwc(h, 4, 4, 2, 1)
    a = _conv_bn_relu(p, prep["w3"], prep["g3"], prep["be3"])      # 2d->4d
    h = a.reshape(n, oh, ow, -1)

    p, oh, ow = _im2col_nhwc(h, 4, 4, 2, 1)                        # 4d->8d
    out = _conv_bn_relu_sigmoid_head(                              # + head
        p, prep["w4"], prep["g4"], prep["be4"], prep["w5"], prep["b5"], n)
    return out.reshape(n, 1, 1, 1)


# ----------------------------------------------------------------------------
# Pure-XLA references (correctness check only)
# ----------------------------------------------------------------------------
def reference_forward(x, params, *, bf16_matmul=False, eps=EPS):
    """f32 PyTorch-semantics reference; with bf16_matmul=True the inputs of
    convs 1-4 are cast to bf16 (f32 accumulation) to mimic the kernels' MXU
    precision for a tight comparison."""
    cfgs = [(2, 1, False, False), (2, 1, True, False), (2, 1, True, False),
            (2, 1, True, False), (1, 0, False, True)]
    h = x
    for li, ((stride, pad, bn, sig), (W, b, gamma, beta)) in enumerate(
            zip(cfgs, params)):
        lhs, rhs = h, W
        if bf16_matmul and li < 4:
            lhs = lhs.astype(jnp.bfloat16)
            rhs = rhs.astype(jnp.bfloat16)
        h = jax.lax.conv_general_dilated(
            lhs, rhs, (stride, stride), [(pad, pad)] * 2,
            dimension_numbers=("NCHW", "OIHW", "NCHW"),
            preferred_element_type=jnp.float32,
        ) + b[None, :, None, None]
        if bn:
            mean = jnp.mean(h, axis=(0, 2, 3), keepdims=True)
            var = jnp.mean((h - mean) ** 2, axis=(0, 2, 3), keepdims=True)
            h = (h - mean) * jax.lax.rsqrt(var + eps)
            h = gamma[None, :, None, None] * h + beta[None, :, None, None]
            h = jnp.maximum(h, 0.0)
        if sig:
            h = jax.nn.sigmoid(h)
    return h


if __name__ == "__main__":
    d = 16
    key = jax.random.PRNGKey(0)
    kx, kp = jax.random.split(key)
    # 64x64 input so the final 4x4 valid conv sees a 4x4 map (DCGAN layout).
    x = jax.random.normal(kx, (2, 3, 64, 64), dtype=jnp.float32)
    params = make_params(kp, d=d)
    prep = prepare_params(params)

    out = jax.block_until_ready(discriminator2_forward(x, prep))
    assert out.shape == (2, 1, 1, 1), out.shape

    ref_bf16 = jax.block_until_ready(
        reference_forward(x, params, bf16_matmul=True))
    ref_f32 = jax.block_until_ready(reference_forward(x, params))
    err_b = float(jnp.max(jnp.abs(out - ref_bf16)))
    err_f = float(jnp.max(jnp.abs(out - ref_f32)))
    # Tight check vs an identically-quantized (bf16 MXU inputs) XLA reference,
    # looser check vs the full-f32 PyTorch-semantics reference (bf16 matmul
    # inputs bound the final sigmoid error at roughly the 1e-2 level).
    assert err_b < 5e-3, f"bf16-matched reference mismatch: {err_b}"
    assert err_f < 2e-2, f"f32 reference mismatch: {err_f}"
    print("KERNEL_OK")
</pallas_src>

<mosaic_0001>
module attributes {stable_mosaic.version = 11 : i64} {
  func.func @_conv_bias_kernel(%arg0: i32, %arg1: memref<1024x48xbf16, #tpu.memory_space<vmem>>, %arg2: memref<48x16xbf16, #tpu.memory_space<vmem>>, %arg3: memref<1x16xf32, #tpu.memory_space<vmem>>, %arg4: memref<1024x16xbf16, #tpu.memory_space<vmem>>) attributes {dimension_semantics = [#tpu.dimension_semantics<parallel>], iteration_bounds = array<i64: 2>, scalar_prefetch = 0 : i64, scratch_operands = 0 : i64, tpu.core_type = #tpu.core_type<tc>, window_params = [{transform_indices = @transform_0, window_bounds = array<i64: 1024, 48>}, {pipeline_mode = #tpu.pipeline_mode<synchronous>, transform_indices = @transform_1, window_bounds = array<i64: 48, 16>}, {pipeline_mode = #tpu.pipeline_mode<synchronous>, transform_indices = @transform_2, window_bounds = array<i64: 1, 16>}, {transform_indices = @transform_3, window_bounds = array<i64: 1024, 16>}]} {
    %c0 = arith.constant 0 : index
    %c0_0 = arith.constant 0 : index
    %0 = vector.load %arg1[%c0, %c0_0] : memref<1024x48xbf16, #tpu.memory_space<vmem>>, vector<1024x48xbf16>
    %c0_1 = arith.constant 0 : index
    %c0_2 = arith.constant 0 : index
    %1 = vector.load %arg2[%c0_1, %c0_2] : memref<48x16xbf16, #tpu.memory_space<vmem>>, vector<48x16xbf16>
    %cst = arith.constant dense<0.000000e+00> : vector<1024x16xf32>
    %2 = tpu.matmul %0, %1, %cst {dimension_numbers = #tpu.dot_dimension_numbers<[1], [0], [0], [1], [0, 0, 1, 1], [], []>} : vector<1024x48xbf16>, vector<48x16xbf16>, vector<1024x16xf32> -> vector<1024x16xf32>
    %c0_3 = arith.constant 0 : index
    %c0_4 = arith.constant 0 : index
    %3 = vector.load %arg3[%c0_3, %c0_4] : memref<1x16xf32, #tpu.memory_space<vmem>>, vector<1x16xf32>
    %4 = vector.broadcast %3 : vector<1x16xf32> to vector<1024x16xf32>
    %5 = arith.addf %2, %4 : vector<1024x16xf32>
    %6 = arith.truncf %5 : vector<1024x16xf32> to vector<1024x16xbf16>
    %c0_5 = arith.constant 0 : index
    %c0_6 = arith.constant 0 : index
    %7 = vector.load %arg4[%c0_5, %c0_6] : memref<1024x16xbf16, #tpu.memory_space<vmem>>, vector<1024x16xbf16>
    tpu.vector_store %arg4[%c0_5, %c0_6], %6 {strides = array<i32>} : memref<1024x16xbf16, #tpu.memory_space<vmem>>, vector<1024x16xbf16>,
    return
  }
  func.func @transform_0(%arg0: i32) -> (i32, i32) {
    %c0_i32 = arith.constant 0 : i32
    %c0_i32_0 = arith.constant 0 : i32
    return %arg0, %c0_i32 : i32, i32
  }
  func.func @transform_1(%arg0: i32) -> (i32, i32) {
    %c0_i32 = arith.constant 0 : i32
    %c0_i32_0 = arith.constant 0 : i32
    %c0_i32_1 = arith.constant 0 : i32
    return %c0_i32, %c0_i32_0 : i32, i32
  }
  func.func @transform_2(%arg0: i32) -> (i32, i32) {
    %c0_i32 = arith.constant 0 : i32
    %c0_i32_0 = arith.constant 0 : i32
    %c0_i32_1 = arith.constant 0 : i32
    return %c0_i32, %c0_i32_0 : i32, i32
  }
  func.func @transform_3(%arg0: i32) -> (i32, i32) {
    %c0_i32 = arith.constant 0 : i32
    %c0_i32_0 = arith.constant 0 : i32
    return %arg0, %c0_i32 : i32, i32
  }
}

module attributes {stable_mosaic.version = 11 : i64} {
  func.func @_conv_bn_relu_kernel(%arg0: i32, %arg1: memref<512x256xbf16, #tpu.memory_space<vmem>>, %arg2: memref<256x32xbf16, #tpu.memory_space<vmem>>, %arg3: memref<1x32xf32, #tpu.memory_space<vmem>>, %arg4: memref<1x32xf32, #tpu.memory_space<vmem>>, %arg5: memref<512x32xbf16, #tpu.memory_space<vmem>>) attributes {dimension_semantics = [#tpu.dimension_semantics<arbitrary>], iteration_bounds = array<i64: 1>, scalar_prefetch = 0 : i64, scratch_operands = 0 : i64, tpu.core_type = #tpu.core_type<tc>, window_params = [{pipeline_mode = #tpu.pipeline_mode<synchronous>, transform_indices = @transform_0, window_bounds = array<i64: 512, 256>}, {pipeline_mode = #tpu.pipeline_mode<synchronous>, transform_indices = @transform_1, window_bounds = array<i64: 256, 32>}, {pipeline_mode = #tpu.pipeline_mode<synchronous>, transform_indices = @transform_2, window_bounds = array<i64: 1, 32>}, {pipeline_mode = #tpu.pipeline_mode<synchronous>, transform_indices = @transform_3, window_bounds = array<i64: 1, 32>}, {pipeline_mode = #tpu.pipeline_mode<synchronous>, transform_indices = @transform_4, window_bounds = array<i64: 512, 32>}]} {
    %c0 = arith.constant 0 : index
    %c0_0 = arith.constant 0 : index
    %0 = vector.load %arg1[%c0, %c0_0] : memref<512x256xbf16, #tpu.memory_space<vmem>>, vector<512x256xbf16>
    %c0_1 = arith.constant 0 : index
    %c0_2 = arith.constant 0 : index
    %1 = vector.load %arg2[%c0_1, %c0_2] : memref<256x32xbf16, #tpu.memory_space<vmem>>, vector<256x32xbf16>
    %cst = arith.constant dense<0.000000e+00> : vector<512x32xf32>
    %2 = tpu.matmul %0, %1, %cst {dimension_numbers = #tpu.dot_dimension_numbers<[1], [0], [0], [1], [0, 0, 1, 1], [], []>} : vector<512x256xbf16>, vector<256x32xbf16>, vector<512x32xf32> -> vector<512x32xf32>
    %cst_3 = arith.constant dense<0.000000e+00> : vector<32xf32>
    %3 = vector.multi_reduction <add>, %2, %cst_3 [0] : vector<512x32xf32> to vector<32xf32>
    %4 = vector.shape_cast %3 : vector<32xf32> to vector<1x32xf32>
    %5 = arith.mulf %2, %2 : vector<512x32xf32>
    %cst_4 = arith.constant dense<0.000000e+00> : vector<32xf32>
    %6 = vector.multi_reduction <add>, %5, %cst_4 [0] : vector<512x32xf32> to vector<32xf32>
    %7 = vector.shape_cast %6 : vector<32xf32> to vector<1x32xf32>
    %cst_5 = arith.constant 0.001953125 : f32
    %8 = vector.broadcast %cst_5 : f32 to vector<1x32xf32>
    %9 = arith.mulf %4, %8 : vector<1x32xf32>
    %cst_6 = arith.constant 0.001953125 : f32
    %10 = vector.broadcast %cst_6 : f32 to vector<1x32xf32>
    %11 = arith.mulf %7, %10 : vector<1x32xf32>
    %12 = arith.mulf %9, %9 : vector<1x32xf32>
    %13 = arith.subf %11, %12 : vector<1x32xf32>
    %c0_7 = arith.constant 0 : index
    %c0_8 = arith.constant 0 : index
    %14 = vector.load %arg3[%c0_7, %c0_8] : memref<1x32xf32, #tpu.memory_space<vmem>>, vector<1x32xf32>
    %cst_9 = arith.constant 9.99999974E-6 : f32
    %15 = vector.broadcast %cst_9 : f32 to vector<1x32xf32>
    %16 = arith.addf %13, %15 : vector<1x32xf32>
    %17 = math.rsqrt %16 : vector<1x32xf32>
    %18 = arith.mulf %14, %17 : vector<1x32xf32>
    %c0_10 = arith.constant 0 : index
    %c0_11 = arith.constant 0 : index
    %19 = vector.load %arg4[%c0_10, %c0_11] : memref<1x32xf32, #tpu.memory_space<vmem>>, vector<1x32xf32>
    %20 = arith.mulf %9, %18 : vector<1x32xf32>
    %21 = arith.subf %19, %20 : vector<1x32xf32>
    %22 = vector.broadcast %18 : vector<1x32xf32> to vector<512x32xf32>
    %23 = arith.mulf %2, %22 : vector<512x32xf32>
    %24 = vector.broadcast %21 : vector<1x32xf32> to vector<512x32xf32>
    %25 = arith.addf %23, %24 : vector<512x32xf32>
    %cst_12 = arith.constant 0.000000e+00 : f32
    %26 = vector.broadcast %cst_12 : f32 to vector<512x32xf32>
    %27 = arith.maximumf %25, %26 : vector<512x32xf32>
    %28 = arith.truncf %27 : vector<512x32xf32> to vector<512x32xbf16>
    %c0_13 = arith.constant 0 : index
    %c0_14 = arith.constant 0 : index
    %29 = vector.load %arg5[%c0_13, %c0_14] : memref<512x32xbf16, #tpu.memory_space<vmem>>, vector<512x32xbf16>
    tpu.vector_store %arg5[%c0_13, %c0_14], %28 {strides = array<i32>} : memref<512x32xbf16, #tpu.memory_space<vmem>>, vector<512x32xbf16>,
    return
  }
  func.func @transform_0(%arg0: i32) -> (i32, i32) {
    %c0_i32 = arith.constant 0 : i32
    %c0_i32_0 = arith.constant 0 : i32
    %c0_i32_1 = arith.constant 0 : i32
    return %c0_i32, %c0_i32_0 : i32, i32
  }
  func.func @transform_1(%arg0: i32) -> (i32, i32) {
    %c0_i32 = arith.constant 0 : i32
    %c0_i32_0 = arith.constant 0 : i32
    %c0_i32_1 = arith.constant 0 : i32
    return %c0_i32, %c0_i32_0 : i32, i32
  }
  func.func @transform_2(%arg0: i32) -> (i32, i32) {
    %c0_i32 = arith.constant 0 : i32
    %c0_i32_0 = arith.constant 0 : i32
    %c0_i32_1 = arith.constant 0 : i32
    return %c0_i32, %c0_i32_0 : i32, i32
  }
  func.func @transform_3(%arg0: i32) -> (i32, i32) {
    %c0_i32 = arith.constant 0 : i32
    %c0_i32_0 = arith.constant 0 : i32
    %c0_i32_1 = arith.constant 0 : i32
    return %c0_i32, %c0_i32_0 : i32, i32
  }
  func.func @transform_4(%arg0: i32) -> (i32, i32) {
    %c0_i32 = arith.constant 0 : i32
    %c0_i32_0 = arith.constant 0 : i32
    %c0_i32_1 = arith.constant 0 : i32
    return %c0_i32, %c0_i32_0 : i32, i32
  }
}

module attributes {stable_mosaic.version = 11 : i64} {
  func.func @_conv_bn_relu_kernel(%arg0: i32, %arg1: memref<128x512xbf16, #tpu.memory_space<vmem>>, %arg2: memref<512x64xbf16, #tpu.memory_space<vmem>>, %arg3: memref<1x64xf32, #tpu.memory_space<vmem>>, %arg4: memref<1x64xf32, #tpu.memory_space<vmem>>, %arg5: memref<128x64xbf16, #tpu.memory_space<vmem>>) attributes {dimension_semantics = [#tpu.dimension_semantics<arbitrary>], iteration_bounds = array<i64: 1>, scalar_prefetch = 0 : i64, scratch_operands = 0 : i64, tpu.core_type = #tpu.core_type<tc>, window_params = [{pipeline_mode = #tpu.pipeline_mode<synchronous>, transform_indices = @transform_0, window_bounds = array<i64: 128, 512>}, {pipeline_mode = #tpu.pipeline_mode<synchronous>, transform_indices = @transform_1, window_bounds = array<i64: 512, 64>}, {pipeline_mode = #tpu.pipeline_mode<synchronous>, transform_indices = @transform_2, window_bounds = array<i64: 1, 64>}, {pipeline_mode = #tpu.pipeline_mode<synchronous>, transform_indices = @transform_3, window_bounds = array<i64: 1, 64>}, {pipeline_mode = #tpu.pipeline_mode<synchronous>, transform_indices = @transform_4, window_bounds = array<i64: 128, 64>}]} {
    %c0 = arith.constant 0 : index
    %c0_0 = arith.constant 0 : index
    %0 = vector.load %arg1[%c0, %c0_0] : memref<128x512xbf16, #tpu.memory_space<vmem>>, vector<128x512xbf16>
    %c0_1 = arith.constant 0 : index
    %c0_2 = arith.constant 0 : index
    %1 = vector.load %arg2[%c0_1, %c0_2] : memref<512x64xbf16, #tpu.memory_space<vmem>>, vector<512x64xbf16>
    %cst = arith.constant dense<0.000000e+00> : vector<128x64xf32>
    %2 = tpu.matmul %0, %1, %cst {dimension_numbers = #tpu.dot_dimension_numbers<[1], [0], [0], [1], [0, 0, 1, 1], [], []>} : vector<128x512xbf16>, vector<512x64xbf16>, vector<128x64xf32> -> vector<128x64xf32>
    %cst_3 = arith.constant dense<0.000000e+00> : vector<64xf32>
    %3 = vector.multi_reduction <add>, %2, %cst_3 [0] : vector<128x64xf32> to vector<64xf32>
    %4 = vector.shape_cast %3 : vector<64xf32> to vector<1x64xf32>
    %5 = arith.mulf %2, %2 : vector<128x64xf32>
    %cst_4 = arith.constant dense<0.000000e+00> : vector<64xf32>
    %6 = vector.multi_reduction <add>, %5, %cst_4 [0] : vector<128x64xf32> to vector<64xf32>
    %7 = vector.shape_cast %6 : vector<64xf32> to vector<1x64xf32>
    %cst_5 = arith.constant 7.812500e-03 : f32
    %8 = vector.broadcast %cst_5 : f32 to vector<1x64xf32>
    %9 = arith.mulf %4, %8 : vector<1x64xf32>
    %cst_6 = arith.constant 7.812500e-03 : f32
    %10 = vector.broadcast %cst_6 : f32 to vector<1x64xf32>
    %11 = arith.mulf %7, %10 : vector<1x64xf32>
    %12 = arith.mulf %9, %9 : vector<1x64xf32>
    %13 = arith.subf %11, %12 : vector<1x64xf32>
    %c0_7 = arith.constant 0 : index
    %c0_8 = arith.constant 0 : index
    %14 = vector.load %arg3[%c0_7, %c0_8] : memref<1x64xf32, #tpu.memory_space<vmem>>, vector<1x64xf32>
    %cst_9 = arith.constant 9.99999974E-6 : f32
    %15 = vector.broadcast %cst_9 : f32 to vector<1x64xf32>
    %16 = arith.addf %13, %15 : vector<1x64xf32>
    %17 = math.rsqrt %16 : vector<1x64xf32>
    %18 = arith.mulf %14, %17 : vector<1x64xf32>
    %c0_10 = arith.constant 0 : index
    %c0_11 = arith.constant 0 : index
    %19 = vector.load %arg4[%c0_10, %c0_11] : memref<1x64xf32, #tpu.memory_space<vmem>>, vector<1x64xf32>
    %20 = arith.mulf %9, %18 : vector<1x64xf32>
    %21 = arith.subf %19, %20 : vector<1x64xf32>
    %22 = vector.broadcast %18 : vector<1x64xf32> to vector<128x64xf32>
    %23 = arith.mulf %2, %22 : vector<128x64xf32>
    %24 = vector.broadcast %21 : vector<1x64xf32> to vector<128x64xf32>
    %25 = arith.addf %23, %24 : vector<128x64xf32>
    %cst_12 = arith.constant 0.000000e+00 : f32
    %26 = vector.broadcast %cst_12 : f32 to vector<128x64xf32>
    %27 = arith.maximumf %25, %26 : vector<128x64xf32>
    %28 = arith.truncf %27 : vector<128x64xf32> to vector<128x64xbf16>
    %c0_13 = arith.constant 0 : index
    %c0_14 = arith.constant 0 : index
    %29 = vector.load %arg5[%c0_13, %c0_14] : memref<128x64xbf16, #tpu.memory_space<vmem>>, vector<128x64xbf16>
    tpu.vector_store %arg5[%c0_13, %c0_14], %28 {strides = array<i32>} : memref<128x64xbf16, #tpu.memory_space<vmem>>, vector<128x64xbf16>,
    return
  }
  func.func @transform_0(%arg0: i32) -> (i32, i32) {
    %c0_i32 = arith.constant 0 : i32
    %c0_i32_0 = arith.constant 0 : i32
    %c0_i32_1 = arith.constant 0 : i32
    return %c0_i32, %c0_i32_0 : i32, i32
  }
  func.func @transform_1(%arg0: i32) -> (i32, i32) {
    %c0_i32 = arith.constant 0 : i32
    %c0_i32_0 = arith.constant 0 : i32
    %c0_i32_1 = arith.constant 0 : i32
    return %c0_i32, %c0_i32_0 : i32, i32
  }
  func.func @transform_2(%arg0: i32) -> (i32, i32) {
    %c0_i32 = arith.constant 0 : i32
    %c0_i32_0 = arith.constant 0 : i32
    %c0_i32_1 = arith.constant 0 : i32
    return %c0_i32, %c0_i32_0 : i32, i32
  }
  func.func @transform_3(%arg0: i32) -> (i32, i32) {
    %c0_i32 = arith.constant 0 : i32
    %c0_i32_0 = arith.constant 0 : i32
    %c0_i32_1 = arith.constant 0 : i32
    return %c0_i32, %c0_i32_0 : i32, i32
  }
  func.func @transform_4(%arg0: i32) -> (i32, i32) {
    %c0_i32 = arith.constant 0 : i32
    %c0_i32_0 = arith.constant 0 : i32
    %c0_i32_1 = arith.constant 0 : i32
    return %c0_i32, %c0_i32_0 : i32, i32
  }
}

module attributes {stable_mosaic.version = 11 : i64} {
  func.func @_conv_bn_relu_head_kernel(%arg0: i32, %arg1: memref<32x1024xbf16, #tpu.memory_space<vmem>>, %arg2: memref<1024x128xbf16, #tpu.memory_space<vmem>>, %arg3: memref<1x128xf32, #tpu.memory_space<vmem>>, %arg4: memref<1x128xf32, #tpu.memory_space<vmem>>, %arg5: memref<1x16x128xf32, #tpu.memory_space<vmem>>, %arg6: memref<1x1x1xf32, #tpu.memory_space<vmem>>, %arg7: memref<2x1x1xf32, #tpu.memory_space<vmem>>) attributes {dimension_semantics = [#tpu.dimension_semantics<arbitrary>], iteration_bounds = array<i64: 1>, scalar_prefetch = 0 : i64, scratch_operands = 0 : i64, tpu.core_type = #tpu.core_type<tc>, window_params = [{pipeline_mode = #tpu.pipeline_mode<synchronous>, transform_indices = @transform_0, window_bounds = array<i64: 32, 1024>}, {pipeline_mode = #tpu.pipeline_mode<synchronous>, transform_indices = @transform_1, window_bounds = array<i64: 1024, 128>}, {pipeline_mode = #tpu.pipeline_mode<synchronous>, transform_indices = @transform_2, window_bounds = array<i64: 1, 128>}, {pipeline_mode = #tpu.pipeline_mode<synchronous>, transform_indices = @transform_3, window_bounds = array<i64: 1, 128>}, {pipeline_mode = #tpu.pipeline_mode<synchronous>, transform_indices = @transform_4, window_bounds = array<i64: 1, 16, 128>}, {pipeline_mode = #tpu.pipeline_mode<synchronous>, transform_indices = @transform_5, window_bounds = array<i64: 1, 1, 1>}, {pipeline_mode = #tpu.pipeline_mode<synchronous>, transform_indices = @transform_6, window_bounds = array<i64: 2, 1, 1>}]} {
    %c0 = arith.constant 0 : index
    %c0_0 = arith.constant 0 : index
    %0 = vector.load %arg1[%c0, %c0_0] : memref<32x1024xbf16, #tpu.memory_space<vmem>>, vector<32x1024xbf16>
    %c0_1 = arith.constant 0 : index
    %c0_2 = arith.constant 0 : index
    %1 = vector.load %arg2[%c0_1, %c0_2] : memref<1024x128xbf16, #tpu.memory_space<vmem>>, vector<1024x128xbf16>
    %cst = arith.constant dense<0.000000e+00> : vector<32x128xf32>
    %2 = tpu.matmul %0, %1, %cst {dimension_numbers = #tpu.dot_dimension_numbers<[1], [0], [0], [1], [0, 0, 1, 1], [], []>} : vector<32x1024xbf16>, vector<1024x128xbf16>, vector<32x128xf32> -> vector<32x128xf32>
    %cst_3 = arith.constant dense<0.000000e+00> : vector<128xf32>
    %3 = vector.multi_reduction <add>, %2, %cst_3 [0] : vector<32x128xf32> to vector<128xf32>
    %4 = vector.shape_cast %3 : vector<128xf32> to vector<1x128xf32>
    %5 = arith.mulf %2, %2 : vector<32x128xf32>
    %cst_4 = arith.constant dense<0.000000e+00> : vector<128xf32>
    %6 = vector.multi_reduction <add>, %5, %cst_4 [0] : vector<32x128xf32> to vector<128xf32>
    %7 = vector.shape_cast %6 : vector<128xf32> to vector<1x128xf32>
    %cst_5 = arith.constant 3.125000e-02 : f32
    %8 = vector.broadcast %cst_5 : f32 to vector<1x128xf32>
    %9 = arith.mulf %4, %8 : vector<1x128xf32>
    %cst_6 = arith.constant 3.125000e-02 : f32
    %10 = vector.broadcast %cst_6 : f32 to vector<1x128xf32>
    %11 = arith.mulf %7, %10 : vector<1x128xf32>
    %12 = arith.mulf %9, %9 : vector<1x128xf32>
    %13 = arith.subf %11, %12 : vector<1x128xf32>
    %c0_7 = arith.constant 0 : index
    %c0_8 = arith.constant 0 : index
    %14 = vector.load %arg3[%c0_7, %c0_8] : memref<1x128xf32, #tpu.memory_space<vmem>>, vector<1x128xf32>
    %cst_9 = arith.constant 9.99999974E-6 : f32
    %15 = vector.broadcast %cst_9 : f32 to vector<1x128xf32>
    %16 = arith.addf %13, %15 : vector<1x128xf32>
    %17 = math.rsqrt %16 : vector<1x128xf32>
    %18 = arith.mulf %14, %17 : vector<1x128xf32>
    %c0_10 = arith.constant 0 : index
    %c0_11 = arith.constant 0 : index
    %19 = vector.load %arg4[%c0_10, %c0_11] : memref<1x128xf32, #tpu.memory_space<vmem>>, vector<1x128xf32>
    %20 = arith.mulf %9, %18 : vector<1x128xf32>
    %21 = arith.subf %19, %20 : vector<1x128xf32>
    %22 = vector.broadcast %18 : vector<1x128xf32> to vector<32x128xf32>
    %23 = arith.mulf %2, %22 : vector<32x128xf32>
    %24 = vector.broadcast %21 : vector<1x128xf32> to vector<32x128xf32>
    %25 = arith.addf %23, %24 : vector<32x128xf32>
    %cst_12 = arith.constant 0.000000e+00 : f32
    %26 = vector.broadcast %cst_12 : f32 to vector<32x128xf32>
    %27 = arith.maximumf %25, %26 : vector<32x128xf32>
    %28 = vector.shape_cast %27 : vector<32x128xf32> to vector<2x16x128xf32>
    %c0_13 = arith.constant 0 : index
    %c0_14 = arith.constant 0 : index
    %c0_15 = arith.constant 0 : index
    %29 = vector.load %arg5[%c0_13, %c0_14, %c0_15] : memref<1x16x128xf32, #tpu.memory_space<vmem>>, vector<1x16x128xf32>
    %30 = vector.broadcast %29 : vector<1x16x128xf32> to vector<2x16x128xf32>
    %31 = arith.mulf %28, %30 : vector<2x16x128xf32>
    %cst_16 = arith.constant dense<0.000000e+00> : vector<2x16xf32>
    %32 = vector.multi_reduction <add>, %31, %cst_16 [2] : vector<2x16x128xf32> to vector<2x16xf32>
    %33 = vector.shape_cast %32 : vector<2x16xf32> to vector<2x16x1xf32>
    %cst_17 = arith.constant dense<0.000000e+00> : vector<2x1xf32>
    %34 = vector.multi_reduction <add>, %33, %cst_17 [1] : vector<2x16x1xf32> to vector<2x1xf32>
    %35 = vector.shape_cast %34 : vector<2x1xf32> to vector<2x1x1xf32>
    %c0_18 = arith.constant 0 : index
    %c0_19 = arith.constant 0 : index
    %c0_20 = arith.constant 0 : index
    %36 = vector.load %arg6[%c0_18, %c0_19, %c0_20] : memref<1x1x1xf32, #tpu.memory_space<vmem>>, vector<1x1x1xf32>
    %37 = vector.broadcast %36 : vector<1x1x1xf32> to vector<2x1x1xf32>
    %38 = arith.addf %35, %37 : vector<2x1x1xf32>
    %39 = arith.negf %38 : vector<2x1x1xf32>
    %40 = math.exp %39 : vector<2x1x1xf32>
    %cst_21 = arith.constant 1.000000e+00 : f32
    %41 = vector.broadcast %cst_21 : f32 to vector<2x1x1xf32>
    %42 = arith.addf %41, %40 : vector<2x1x1xf32>
    %43 = arith.divf %41, %42 : vector<2x1x1xf32>
    %c0_22 = arith.constant 0 : index
    %c0_23 = arith.constant 0 : index
    %c0_24 = arith.constant 0 : index
    %44 = vector.load %arg7[%c0_22, %c0_23, %c0_24] : memref<2x1x1xf32, #tpu.memory_space<vmem>>, vector<2x1x1xf32>
    tpu.vector_store %arg7[%c0_22, %c0_23, %c0_24], %43 {strides = array<i32>} : memref<2x1x1xf32, #tpu.memory_space<vmem>>, vector<2x1x1xf32>,
    return
  }
  func.func @transform_0(%arg0: i32) -> (i32, i32) {
    %c0_i32 = arith.constant 0 : i32
    %c0_i32_0 = arith.constant 0 : i32
    %c0_i32_1 = arith.constant 0 : i32
    return %c0_i32, %c0_i32_0 : i32, i32
  }
  func.func @transform_1(%arg0: i32) -> (i32, i32) {
    %c0_i32 = arith.constant 0 : i32
    %c0_i32_0 = arith.constant 0 : i32
    %c0_i32_1 = arith.constant 0 : i32
    return %c0_i32, %c0_i32_0 : i32, i32
  }
  func.func @transform_2(%arg0: i32) -> (i32, i32) {
    %c0_i32 = arith.constant 0 : i32
    %c0_i32_0 = arith.constant 0 : i32
    %c0_i32_1 = arith.constant 0 : i32
    return %c0_i32, %c0_i32_0 : i32, i32
  }
  func.func @transform_3(%arg0: i32) -> (i32, i32) {
    %c0_i32 = arith.constant 0 : i32
    %c0_i32_0 = arith.constant 0 : i32
    %c0_i32_1 = arith.constant 0 : i32
    return %c0_i32, %c0_i32_0 : i32, i32
  }
  func.func @transform_4(%arg0: i32) -> (i32, i32, i32) {
    %c0_i32 = arith.constant 0 : i32
    %c0_i32_0 = arith.constant 0 : i32
    %c0_i32_1 = arith.constant 0 : i32
    %c0_i32_2 = arith.constant 0 : i32
    return %c0_i32, %c0_i32_0, %c0_i32_1 : i32, i32, i32
  }
  func.func @transform_5(%arg0: i32) -> (i32, i32, i32) {
    %c0_i32 = arith.constant 0 : i32
    %c0_i32_0 = arith.constant 0 : i32
    %c0_i32_1 = arith.constant 0 : i32
    %c0_i32_2 = arith.constant 0 : i32
    return %c0_i32, %c0_i32_0, %c0_i32_1 : i32, i32, i32
  }
  func.func @transform_6(%arg0: i32) -> (i32, i32, i32) {
    %c0_i32 = arith.constant 0 : i32
    %c0_i32_0 = arith.constant 0 : i32
    %c0_i32_1 = arith.constant 0 : i32
    %c0_i32_2 = arith.constant 0 : i32
    return %c0_i32, %c0_i32_0, %c0_i32_1 : i32, i32, i32
  }
}

</mosaic_0001>

<bundles_post_ra>
// kernel: discriminator2_forward.4
= control target key start
LH: loop header
LB: loop body
LE: loop exit
PB: predicated region body
PF: predicated region fallthrough
CT: control target
= control target key end

     0   :  { %s2798_s12 = smov 0   ;;  %s3352_s0 = inlined_call_operand.vmem [shape: bf16[2048,48], index: 0, kind: input, shape index: {}]   ;;  %s3353_s1 = inlined_call_operand.vmem [shape: bf16[48,16], index: 1, kind: input, shape index: {}]   ;;  %s3354_s2 = inlined_call_operand.vmem [shape: f32[1,16], index: 2, kind: input, shape index: {}]   ;;  %s3355_s3 = inlined_call_operand.vmem [shape: bf16[2048,16], index: 3, kind: output, shape index: {}]  }
   0x1 LB: > { %s2089_s13 = sadd.s32 4294967295, %s2776_s12   ;;  %p2093_p0 = scmp.ge.s32.totalorder %s2776_s12, 1  ;;  %s2776_s12 = sphi %s2798_s12, %s13_s12  }
   0x2   : > { %p138_p1 = scmp.lt.s32.totalorder %s2776_s12, 3 }
   0x4   : > { %p139_p2 = pnand %p2093_p0, %p138_p1 }
   0x5   : > { %v2703_v0 = vld [vmem:[%s3353_s1] sm:$0xff] (!%p139_p2)   ;;  %s2094_s16 = sshll.u32 (!%p139_p2), %s2089_s13, 7  ;;  %v2704_v1 = vld [vmem:[%s3353_s1 + $0x8] sm:$0xff] (!%p139_p2)   ;;  %v2705_v2 = vld [vmem:[%s3353_s1 + $0x10] sm:$0xff] (!%p139_p2)   ;;  %vm654_vm0 = vcmask (!%p139_p2), 392192   ;;  %vm1904_vm1 = vcmask (!%p139_p2), 125952  }
   0x6   : > { %142 = sbr.rel (%p139_p2) target bundleno = 359 (0x167), region = 32  ;;  %p163_p3 = scmp.lt.s32.totalorder (!%p139_p2), %s2094_s16, 255  ;;  %2555 = vmatprep.subr.bf16.mxu0 (!%p139_p2), %v2703_v0  ;;  %2689 = vmatprep.subr.bf16.mxu1 (!%p139_p2), %v2703_v0 }
   0x7   : > { %2556 = vmatpush3.bf16.msra.mxu0 (!%p139_p2), %v2703_v0  ;;  %2692 = vmatpush3.bf16.msra.mxu1 (!%p139_p2), %v2703_v0 }
   0x8   : > { %2557 = vmatprep.subr.bf16.mxu0 (!%p139_p2), %v2704_v1  ;;  %2690 = vmatprep.subr.bf16.mxu1 (!%p139_p2), %v2704_v1 }
   0xb   : > { %2558 = vmatpush3.bf16.msra.mxu0 (!%p139_p2), %v2704_v1  ;;  %2693 = vmatpush3.bf16.msra.mxu1 (!%p139_p2), %v2704_v1 }
   0xc   : > { %2559 = vmatprep.subr.bf16.mxu0 (!%p139_p2), %v2705_v2  ;;  %2691 = vmatprep.subr.bf16.mxu1 (!%p139_p2), %v2705_v2 }
   0xd   : > { %s3357_s16 = smov (!%p163_p3, %s2094_s16), 255 }
   0xe   : > { %s2095_s21 = sshll.u32 %s3357_s16, 2 }
   0xf   : > { %s2823_s24 = scalar_lea.vmem %s3352_s0, %s2095_s21  ;;  %2560 = vmatpush3.bf16.msra.mxu0 %v2705_v2  ;;  %2694 = vmatpush3.bf16.msra.mxu1 %v2705_v2  ;;  %s2965_s29 = scalar_lea.vmem %s3355_s3, %s2095_s21 }
  0x10   : > { %v2706_v3 = vld [vmem:[%s2823_s24] sm:$0xff]   ;;  %v2708_v5 = vld [vmem:[%s2823_s24 + $0x8] sm:$0xff]   ;;  %v2710_v7 = vld [vmem:[%s2823_s24 + $0x10] sm:$0xff]  }
  0x11   : > { %v2707_v4 = vld [vmem:[%s2823_s24 + $0x100] sm:$0xff]   ;;  %2561 = vmatprep.mubr.msk.bf16.mxu0 %vm654_vm0, %v2706_v3  ;;  %v2709_v6 = vld [vmem:[%s2823_s24 + $0x108] sm:$0xff]   ;;  %v2711_v8 = vld [vmem:[%s2823_s24 + $0x110] sm:$0xff]  }
  0x12   : > { %2625 = vmatprep.mubr.msk.bf16.mxu1 %vm654_vm0, %v2707_v4  ;;  %2562 = vmatmul.mubr.msk.bf16.vlgmr.msra.gmra.mrb[0].mxu0 %vm654_vm0, %v2708_v5  ;;  %v2712_v9 = vld [vmem:[%s2823_s24 + $0x18] sm:$0xff]   ;;  %v2714_v11 = vld [vmem:[%s2823_s24 + $0x20] sm:$0xff]   ;;  %v2716_v13 = vld [vmem:[%s2823_s24 + $0x28] sm:$0xff]  }
  0x13   : > { %2626 = vmatmul.mubr.msk.bf16.vlgmr.msra.gmra.mrb[0].mxu1 %vm654_vm0, %v2709_v6  ;;  %2565 = vmatprep.mubr.msk.bf16.mxu0 %vm654_vm0, %v2710_v7  ;;  %v2713_v10 = vld [vmem:[%s2823_s24 + $0x118] sm:$0xff]   ;;  %v2715_v12 = vld [vmem:[%s2823_s24 + $0x120] sm:$0xff]   ;;  %v2717_v14 = vld [vmem:[%s2823_s24 + $0x128] sm:$0xff]  }
  0x14   : > { %2629 = vmatprep.mubr.msk.bf16.mxu1 %vm654_vm0, %v2711_v8  ;;  %v2718_v15 = vld [vmem:[%s2823_s24 + $0x30] sm:$0xff]   ;;  %v2720_v17 = vld [vmem:[%s2823_s24 + $0x38] sm:$0xff]   ;;  %v2722_v19 = vld [vmem:[%s2823_s24 + $0x40] sm:$0xff]  }
  0x15   : > { %v2719_v16 = vld [vmem:[%s2823_s24 + $0x130] sm:$0xff]   ;;  %v2721_v18 = vld [vmem:[%s2823_s24 + $0x138] sm:$0xff]   ;;  %v2723_v20 = vld [vmem:[%s2823_s24 + $0x140] sm:$0xff]  }
  0x16   : > { %v2724_v21 = vld [vmem:[%s2823_s24 + $0x48] sm:$0xff]   ;;  %v2726_v23 = vld [vmem:[%s2823_s24 + $0x50] sm:$0xff]   ;;  %v2728_v25 = vld [vmem:[%s2823_s24 + $0x58] sm:$0xff]  }
  0x17   : > { %v2725_v22 = vld [vmem:[%s2823_s24 + $0x148] sm:$0xff]   ;;  %v2727_v24 = vld [vmem:[%s2823_s24 + $0x150] sm:$0xff]   ;;  %v2729_v26 = vld [vmem:[%s2823_s24 + $0x158] sm:$0xff]  }
  0x18   : > { %v2730_v27 = vld [vmem:[%s2823_s24 + $0x60] sm:$0xff]   ;;  %v2732_v29 = vld [vmem:[%s2823_s24 + $0x68] sm:$0xff]   ;;  %v2734_v31 = vld [vmem:[%s2823_s24 + $0x70] sm:$0xff]  }
  0x19   : > { %v2731_v28 = vld [vmem:[%s2823_s24 + $0x160] sm:$0xff]   ;;  %v2733_v30 = vld [vmem:[%s2823_s24 + $0x168] sm:$0xff]   ;;  %v2735_v32 = vld [vmem:[%s2823_s24 + $0x170] sm:$0xff]  }
  0x1a   : > { %2566 = vmatmul.mubr.msk.bf16.gmra.mrb[4].mxu0 %vm654_vm0, %v2712_v9  ;;  %v2736_v33 = vld [vmem:[%s2823_s24 + $0x78] sm:$0xff]   ;;  %v2738_v35 = vld [vmem:[%s2823_s24 + $0x80] sm:$0xff]   ;;  %v2740_v37 = vld [vmem:[%s2823_s24 + $0x88] sm:$0xff]  }
  0x1b   : > { %2630 = vmatmul.mubr.msk.bf16.gmra.mrb[4].mxu1 %vm654_vm0, %v2713_v10  ;;  %2569 = vmatprep.mubr.msk.bf16.mxu0 %vm654_vm0, %v2714_v11  ;;  %v2737_v34 = vld [vmem:[%s2823_s24 + $0x178] sm:$0xff]   ;;  %v2739_v36 = vld [vmem:[%s2823_s24 + $0x180] sm:$0xff]   ;;  %v2741_v38 = vld [vmem:[%s2823_s24 + $0x188] sm:$0xff]  }
  0x1c   : > { %2633 = vmatprep.mubr.msk.bf16.mxu1 %vm654_vm0, %v2715_v12  ;;  %v2742_v39 = vld [vmem:[%s2823_s24 + $0x90] sm:$0xff]   ;;  %v2744_v41 = vld [vmem:[%s2823_s24 + $0x98] sm:$0xff]   ;;  %v2746_v43 = vld [vmem:[%s2823_s24 + $0xa0] sm:$0xff]  }
  0x1d   : > { %v2743_v40 = vld [vmem:[%s2823_s24 + $0x190] sm:$0xff]   ;;  %v2745_v42 = vld [vmem:[%s2823_s24 + $0x198] sm:$0xff]   ;;  %v2747_v44 = vld [vmem:[%s2823_s24 + $0x1a0] sm:$0xff]  }
  0x1e   : > { %v2748_v45 = vld [vmem:[%s2823_s24 + $0xa8] sm:$0xff]   ;;  %v2750_v47 = vld [vmem:[%s2823_s24 + $0xb0] sm:$0xff]   ;;  %v2752_v49 = vld [vmem:[%s2823_s24 + $0xb8] sm:$0xff]  }
  0x1f   : > { %v2749_v46 = vld [vmem:[%s2823_s24 + $0x1a8] sm:$0xff]   ;;  %v2751_v48 = vld [vmem:[%s2823_s24 + $0x1b0] sm:$0xff]   ;;  %v2753_v50 = vld [vmem:[%s2823_s24 + $0x1b8] sm:$0xff]  }
  0x20   : > { %v2754_v51 = vld [vmem:[%s2823_s24 + $0xc0] sm:$0xff]   ;;  %v2756_v53 = vld [vmem:[%s2823_s24 + $0xc8] sm:$0xff]   ;;  %v2758_v55 = vld [vmem:[%s2823_s24 + $0xd0] sm:$0xff]  }
  0x21   : > { %v2755_v52 = vld [vmem:[%s2823_s24 + $0x1c0] sm:$0xff]   ;;  %v2757_v54 = vld [vmem:[%s2823_s24 + $0x1c8] sm:$0xff]   ;;  %v2759_v56 = vld [vmem:[%s2823_s24 + $0x1d0] sm:$0xff]  }
  0x22   : > { %2570 = vmatmul.mubr.msk.bf16.gmra.mrb[8].mxu0 %vm654_vm0, %v2716_v13  ;;  %v2760_v57 = vld [vmem:[%s2823_s24 + $0xd8] sm:$0xff]   ;;  %v2762_v59 = vld [vmem:[%s2823_s24 + $0xe0] sm:$0xff]   ;;  %v2764_v61 = vld [vmem:[%s2823_s24 + $0xe8] sm:$0xff]  }
  0x23   : > { %2634 = vmatmul.mubr.msk.bf16.gmra.mrb[8].mxu1 %vm654_vm0, %v2717_v14  ;;  %2573 = vmatprep.mubr.msk.bf16.mxu0 %vm654_vm0, %v2718_v15  ;;  %v2761_v58 = vld [vmem:[%s2823_s24 + $0x1d8] sm:$0xff]   ;;  %v2763_v60 = vld [vmem:[%s2823_s24 + $0x1e0] sm:$0xff]   ;;  %v2765_v62 = vld [vmem:[%s2823_s24 + $0x1e8] sm:$0xff]  }
  0x24   : > { %2637 = vmatprep.mubr.msk.bf16.mxu1 %vm654_vm0, %v2719_v16  ;;  %v2766_v63 = vld [vmem:[%s2823_s24 + $0xf0] sm:$0xff]   ;;  %v2768_v1 = vld [vmem:[%s2823_s24 + $0xf8] sm:$0xff]   ;;  %v2956_v3 = vld [vmem:[%s3354_s2] ss:$0 sm:$0xff] }
  0x25   : > { %v2767_v0 = vld [vmem:[%s2823_s24 + $0x1f0] sm:$0xff]   ;;  %v2769_v2 = vld [vmem:[%s2823_s24 + $0x1f8] sm:$0xff]  }
  0x2a   : > { %2574 = vmatmul.mubr.msk.bf16.gmra.mrb[12].mxu0 %vm654_vm0, %v2720_v17 }
  0x2b   : > { %2638 = vmatmul.mubr.msk.bf16.gmra.mrb[12].mxu1 %vm654_vm0, %v2721_v18  ;;  %2577 = vmatprep.mubr.msk.bf16.mxu0 %vm654_vm0, %v2722_v19 }
  0x2c   : > { %2641 = vmatprep.mubr.msk.bf16.mxu1 %vm654_vm0, %v2723_v20 }
  0x32   : > { %2578 = vmatmul.mubr.msk.bf16.gmra.mrb[16].mxu0 %vm654_vm0, %v2724_v21 }
  0x33   : > { %2642 = vmatmul.mubr.msk.bf16.gmra.mrb[16].mxu1 %vm654_vm0, %v2725_v22  ;;  %2581 = vmatprep.mubr.msk.bf16.mxu0 %vm654_vm0, %v2726_v23 }
  0x34   : > { %2645 = vmatprep.mubr.msk.bf16.mxu1 %vm654_vm0, %v2727_v24 }
  0x3a   : > { %2582 = vmatmul.mubr.msk.bf16.gmra.mrb[20].mxu0 %vm654_vm0, %v2728_v25 }
  0x3b   : > { %2646 = vmatmul.mubr.msk.bf16.gmra.mrb[20].mxu1 %vm654_vm0, %v2729_v26  ;;  %2585 = vmatprep.mubr.msk.bf16.mxu0 %vm654_vm0, %v2730_v27 }
  0x3c   : > { %2649 = vmatprep.mubr.msk.bf16.mxu1 %vm654_vm0, %v2731_v28 }
  0x42   : > { %2586 = vmatmul.mubr.msk.bf16.gmra.mrb[24].mxu0 %vm654_vm0, %v2732_v29 }
  0x43   : > { %2650 = vmatmul.mubr.msk.bf16.gmra.mrb[24].mxu1 %vm654_vm0, %v2733_v30  ;;  %2589 = vmatprep.mubr.msk.bf16.mxu0 %vm654_vm0, %v2734_v31 }
  0x44   : > { %2653 = vmatprep.mubr.msk.bf16.mxu1 %vm654_vm0, %v2735_v32 }
  0x4a   : > { %2590 = vmatmul.mubr.msk.bf16.gmra.mrb[28].mxu0 %vm654_vm0, %v2736_v33 }
  0x4b   : > { %2654 = vmatmul.mubr.msk.bf16.gmra.mrb[28].mxu1 %vm654_vm0, %v2737_v34  ;;  %2593 = vmatprep.mubr.msk.bf16.mxu0 %vm654_vm0, %v2738_v35 }
  0x4c   : > { %2657 = vmatprep.mubr.msk.bf16.mxu1 %vm654_vm0, %v2739_v36 }
  0x52   : > { %2594 = vmatmul.mubr.msk.bf16.gmra.mrb[32].mxu0 %vm654_vm0, %v2740_v37 }
  0x53   : > { %2658 = vmatmul.mubr.msk.bf16.gmra.mrb[32].mxu1 %vm654_vm0, %v2741_v38  ;;  %2597 = vmatprep.mubr.msk.bf16.mxu0 %vm654_vm0, %v2742_v39 }
  0x54   : > { %2661 = vmatprep.mubr.msk.bf16.mxu1 %vm654_vm0, %v2743_v40 }
  0x5a   : > { %2598 = vmatmul.mubr.msk.bf16.gmra.mrb[36].mxu0 %vm654_vm0, %v2744_v41 }
  0x5b   : > { %2662 = vmatmul.mubr.msk.bf16.gmra.mrb[36].mxu1 %vm654_vm0, %v2745_v42  ;;  %2601 = vmatprep.mubr.msk.bf16.mxu0 %vm654_vm0, %v2746_v43 }
  0x5c   : > { %2665 = vmatprep.mubr.msk.bf16.mxu1 %vm654_vm0, %v2747_v44 }
  0x62   : > { %2602 = vmatmul.mubr.msk.bf16.gmra.mrb[40].mxu0 %vm654_vm0, %v2748_v45 }
  0x63   : > { %2666 = vmatmul.mubr.msk.bf16.gmra.mrb[40].mxu1 %vm654_vm0, %v2749_v46  ;;  %2605 = vmatprep.mubr.msk.bf16.mxu0 %vm654_vm0, %v2750_v47 }
  0x64   : > { %2669 = vmatprep.mubr.msk.bf16.mxu1 %vm654_vm0, %v2751_v48 }
  0x6a   : > { %2606 = vmatmul.mubr.msk.bf16.gmra.mrb[44].mxu0 %vm654_vm0, %v2752_v49 }
  0x6b   : > { %2670 = vmatmul.mubr.msk.bf16.gmra.mrb[44].mxu1 %vm654_vm0, %v2753_v50  ;;  %2609 = vmatprep.mubr.msk.bf16.mxu0 %vm654_vm0, %v2754_v51 }
  0x6c   : > { %2673 = vmatprep.mubr.msk.bf16.mxu1 %vm654_vm0, %v2755_v52 }
  0x72   : > { %2610 = vmatmul.mubr.msk.bf16.gmra.mrb[48].mxu0 %vm654_vm0, %v2756_v53 }
  0x73   : > { %2674 = vmatmul.mubr.msk.bf16.gmra.mrb[48].mxu1 %vm654_vm0, %v2757_v54  ;;  %2613 = vmatprep.mubr.msk.bf16.mxu0 %vm654_vm0, %v2758_v55 }
  0x74   : > { %2677 = vmatprep.mubr.msk.bf16.mxu1 %vm654_vm0, %v2759_v56 }
  0x7a   : > { %2614 = vmatmul.mubr.msk.bf16.gmra.mrb[52].mxu0 %vm654_vm0, %v2760_v57 }
  0x7b   : > { %2678 = vmatmul.mubr.msk.bf16.gmra.mrb[52].mxu1 %vm654_vm0, %v2761_v58  ;;  %2617 = vmatprep.mubr.msk.bf16.mxu0 %vm654_vm0, %v2762_v59 }
  0x7c   : > { %2681 = vmatprep.mubr.msk.bf16.mxu1 %vm654_vm0, %v2763_v60 }
  0x82   : > { %2618 = vmatmul.mubr.msk.bf16.gmra.mrb[56].mxu0 %vm654_vm0, %v2764_v61 }
  0x83   : > { %2682 = vmatmul.mubr.msk.bf16.gmra.mrb[56].mxu1 %vm654_vm0, %v2765_v62  ;;  %2621 = vmatprep.mubr.msk.bf16.mxu0 %vm654_vm0, %v2766_v63 }
  0x84   : > { %2685 = vmatprep.mubr.msk.bf16.mxu1 %vm654_vm0, %v2767_v0 }
  0x8a   : > { %2622 = vmatmul.mubr.msk.bf16.gmra.mrb[60].mxu0 %vm654_vm0, %v2768_v1 }
  0x8b   : > { %2686 = vmatmul.mubr.msk.bf16.gmra.mrb[60].mxu1 %vm654_vm0, %v2769_v2 }
  0xe5   : > { %v2563_v4 = vpop.f32.mrb[0].mxu0 }
  0xe6   : > { %v2627_v5 = vpop.f32.mrb[0].mxu1  ;;  %v890_v6 = vadd.f32 %v2563_v4, %v2956_v3  ;;  %v881_v8 = vpop.f32.mrb[1].mxu0 }
  0xe7   : > { %v1146_v7 = vadd.f32 %v2627_v5, %v2956_v3  ;;  %v1137_v9 = vpop.f32.mrb[1].mxu1  ;;  %v882_v10 = vadd.f32 %v2956_v3, %v881_v8  ;;  %v2564_v12 = vpop.f32.mrb[2].mxu0 }
  0xe8   : > { %v1138_v11 = vadd.f32 %v2956_v3, %v1137_v9  ;;  %v2628_v13 = vpop.f32.mrb[2].mxu1  ;;  %v2362_v14 = vpack.c.bf16 %v890_v6, %v890_v6  ;;  %v893_v16 = vadd.f32 %v2564_v12, %v2956_v3  ;;  %v884_v18 = vpop.f32.mrb[3].mxu0 }
  0xe9   : > { %v2426_v15 = vpack.c.bf16 %v1146_v7, %v1146_v7  ;;  %v1149_v17 = vadd.f32 %v2628_v13, %v2956_v3  ;;  %v1140_v19 = vpop.f32.mrb[3].mxu1  ;;  %v2360_v20 = vpack.c.bf16 %v882_v10, %v882_v10  ;;  %v885_v22 = vadd.f32 %v2956_v3, %v884_v18 }
  0xea   : > { %v2424_v21 = vpack.c.bf16 %v1138_v11, %v1138_v11  ;;  %v1141_v23 = vadd.f32 %v2956_v3, %v1140_v19  ;;  %1907 = vst.msk [vmem:[%s2965_s29 + $0x8] sm:$0xf] %vm1904_vm1, %v2362_v14  ;;  %v2363_v24 = vpack.c.bf16 %v893_v16, %v893_v16 }
  0xeb   : > { %1971 = vst.msk [vmem:[%s2965_s29 + $0x108] sm:$0xf] %vm1904_vm1, %v2426_v15  ;;  %v2427_v25 = vpack.c.bf16 %v1149_v17, %v1149_v17  ;;  %1905 = vst.msk [vmem:[%s2965_s29] sm:$0xf] %vm1904_vm1, %v2360_v20  ;;  %v2361_v26 = vpack.c.bf16 %v885_v22, %v885_v22 }
  0xec   : > { %1969 = vst.msk [vmem:[%s2965_s29 + $0x100] sm:$0xf] %vm1904_vm1, %v2424_v21  ;;  %v2425_v27 = vpack.c.bf16 %v1141_v23, %v1141_v23  ;;  %1908 = vst.msk [vmem:[%s2965_s29 + $0xc] sm:$0xf] %vm1904_vm1, %v2363_v24 }
  0xed   : > { %1972 = vst.msk [vmem:[%s2965_s29 + $0x10c] sm:$0xf] %vm1904_vm1, %v2427_v25  ;;  %1906 = vst.msk [vmem:[%s2965_s29 + $0x4] sm:$0xf] %vm1904_vm1, %v2361_v26  ;;  %v2567_v28 = vpop.f32.mrb[4].mxu0 }
  0xee   : > { %1970 = vst.msk [vmem:[%s2965_s29 + $0x104] sm:$0xf] %vm1904_vm1, %v2425_v27  ;;  %v2631_v29 = vpop.f32.mrb[4].mxu1  ;;  %v906_v30 = vadd.f32 %v2567_v28, %v2956_v3  ;;  %v897_v32 = vpop.f32.mrb[5].mxu0 }
  0xef   : > { %v1162_v31 = vadd.f32 %v2631_v29, %v2956_v3  ;;  %v1153_v33 = vpop.f32.mrb[5].mxu1  ;;  %v898_v34 = vadd.f32 %v2956_v3, %v897_v32  ;;  %v2568_v36 = vpop.f32.mrb[6].mxu0 }
  0xf0   : > { %v1154_v35 = vadd.f32 %v2956_v3, %v1153_v33  ;;  %v2632_v37 = vpop.f32.mrb[6].mxu1  ;;  %v2366_v38 = vpack.c.bf16 %v906_v30, %v906_v30  ;;  %v909_v40 = vadd.f32 %v2568_v36, %v2956_v3  ;;  %v900_v42 = vpop.f32.mrb[7].mxu0 }
  0xf1   : > { %v2430_v39 = vpack.c.bf16 %v1162_v31, %v1162_v31  ;;  %v1165_v41 = vadd.f32 %v2632_v37, %v2956_v3  ;;  %v1156_v43 = vpop.f32.mrb[7].mxu1  ;;  %v2364_v44 = vpack.c.bf16 %v898_v34, %v898_v34  ;;  %v901_v46 = vadd.f32 %v2956_v3, %v900_v42 }
  0xf2   : > { %v2428_v45 = vpack.c.bf16 %v1154_v35, %v1154_v35  ;;  %v1157_v47 = vadd.f32 %v2956_v3, %v1156_v43  ;;  %1911 = vst.msk [vmem:[%s2965_s29 + $0x18] sm:$0xf] %vm1904_vm1, %v2366_v38  ;;  %v2367_v48 = vpack.c.bf16 %v909_v40, %v909_v40 }
  0xf3   : > { %1975 = vst.msk [vmem:[%s2965_s29 + $0x118] sm:$0xf] %vm1904_vm1, %v2430_v39  ;;  %v2431_v49 = vpack.c.bf16 %v1165_v41, %v1165_v41  ;;  %1909 = vst.msk [vmem:[%s2965_s29 + $0x10] sm:$0xf] %vm1904_vm1, %v2364_v44  ;;  %v2365_v50 = vpack.c.bf16 %v901_v46, %v901_v46 }
  0xf4   : > { %1973 = vst.msk [vmem:[%s2965_s29 + $0x110] sm:$0xf] %vm1904_vm1, %v2428_v45  ;;  %v2429_v51 = vpack.c.bf16 %v1157_v47, %v1157_v47  ;;  %1912 = vst.msk [vmem:[%s2965_s29 + $0x1c] sm:$0xf] %vm1904_vm1, %v2367_v48 }
  0xf5   : > { %1976 = vst.msk [vmem:[%s2965_s29 + $0x11c] sm:$0xf] %vm1904_vm1, %v2431_v49  ;;  %1910 = vst.msk [vmem:[%s2965_s29 + $0x14] sm:$0xf] %vm1904_vm1, %v2365_v50  ;;  %v2571_v52 = vpop.f32.mrb[8].mxu0 }
  0xf6   : > { %1974 = vst.msk [vmem:[%s2965_s29 + $0x114] sm:$0xf] %vm1904_vm1, %v2429_v51  ;;  %v2635_v53 = vpop.f32.mrb[8].mxu1  ;;  %v922_v54 = vadd.f32 %v2571_v52, %v2956_v3  ;;  %v913_v56 = vpop.f32.mrb[9].mxu0 }
  0xf7   : > { %v1178_v55 = vadd.f32 %v2635_v53, %v2956_v3  ;;  %v1169_v57 = vpop.f32.mrb[9].mxu1  ;;  %v914_v58 = vadd.f32 %v2956_v3, %v913_v56  ;;  %v2572_v60 = vpop.f32.mrb[10].mxu0 }
  0xf8   : > { %v1170_v59 = vadd.f32 %v2956_v3, %v1169_v57  ;;  %v2636_v61 = vpop.f32.mrb[10].mxu1  ;;  %v2370_v62 = vpack.c.bf16 %v922_v54, %v922_v54  ;;  %v925_v0 = vadd.f32 %v2572_v60, %v2956_v3  ;;  %v916_v2 = vpop.f32.mrb[11].mxu0 }
  0xf9   : > { %v2434_v63 = vpack.c.bf16 %v1178_v55, %v1178_v55  ;;  %v1181_v1 = vadd.f32 %v2636_v61, %v2956_v3  ;;  %v1172_v4 = vpop.f32.mrb[11].mxu1  ;;  %v2368_v5 = vpack.c.bf16 %v914_v58, %v914_v58  ;;  %v917_v7 = vadd.f32 %v2956_v3, %v916_v2 }
  0xfa   : > { %v2432_v6 = vpack.c.bf16 %v1170_v59, %v1170_v59  ;;  %v1173_v8 = vadd.f32 %v2956_v3, %v1172_v4  ;;  %1915 = vst.msk [vmem:[%s2965_s29 + $0x28] sm:$0xf] %vm1904_vm1, %v2370_v62  ;;  %v2371_v9 = vpack.c.bf16 %v925_v0, %v925_v0 }
  0xfb   : > { %1979 = vst.msk [vmem:[%s2965_s29 + $0x128] sm:$0xf] %vm1904_vm1, %v2434_v63  ;;  %v2435_v10 = vpack.c.bf16 %v1181_v1, %v1181_v1  ;;  %1913 = vst.msk [vmem:[%s2965_s29 + $0x20] sm:$0xf] %vm1904_vm1, %v2368_v5  ;;  %v2369_v11 = vpack.c.bf16 %v917_v7, %v917_v7 }
  0xfc   : > { %1977 = vst.msk [vmem:[%s2965_s29 + $0x120] sm:$0xf] %vm1904_vm1, %v2432_v6  ;;  %v2433_v12 = vpack.c.bf16 %v1173_v8, %v1173_v8  ;;  %1916 = vst.msk [vmem:[%s2965_s29 + $0x2c] sm:$0xf] %vm1904_vm1, %v2371_v9 }
  0xfd   : > { %1980 = vst.msk [vmem:[%s2965_s29 + $0x12c] sm:$0xf] %vm1904_vm1, %v2435_v10  ;;  %1914 = vst.msk [vmem:[%s2965_s29 + $0x24] sm:$0xf] %vm1904_vm1, %v2369_v11  ;;  %v2575_v13 = vpop.f32.mrb[12].mxu0 }
  0xfe   : > { %1978 = vst.msk [vmem:[%s2965_s29 + $0x124] sm:$0xf] %vm1904_vm1, %v2433_v12  ;;  %v2639_v14 = vpop.f32.mrb[12].mxu1  ;;  %v938_v15 = vadd.f32 %v2575_v13, %v2956_v3  ;;  %v929_v17 = vpop.f32.mrb[13].mxu0 }
  0xff   : > { %v1194_v16 = vadd.f32 %v2639_v14, %v2956_v3  ;;  %v1185_v18 = vpop.f32.mrb[13].mxu1  ;;  %v930_v19 = vadd.f32 %v2956_v3, %v929_v17  ;;  %v2576_v21 = vpop.f32.mrb[14].mxu0 }
 0x100   : > { %v1186_v20 = vadd.f32 %v2956_v3, %v1185_v18  ;;  %v2640_v22 = vpop.f32.mrb[14].mxu1  ;;  %v2374_v23 = vpack.c.bf16 %v938_v15, %v938_v15  ;;  %v941_v25 = vadd.f32 %v2576_v21, %v2956_v3  ;;  %v932_v27 = vpop.f32.mrb[15].mxu0 }
 0x101   : > { %v2438_v24 = vpack.c.bf16 %v1194_v16, %v1194_v16  ;;  %v1197_v26 = vadd.f32 %v2640_v22, %v2956_v3  ;;  %v1188_v28 = vpop.f32.mrb[15].mxu1  ;;  %v2372_v29 = vpack.c.bf16 %v930_v19, %v930_v19  ;;  %v933_v31 = vadd.f32 %v2956_v3, %v932_v27 }
 0x102   : > { %v2436_v30 = vpack.c.bf16 %v1186_v20, %v1186_v20  ;;  %v1189_v32 = vadd.f32 %v2956_v3, %v1188_v28  ;;  %1919 = vst.msk [vmem:[%s2965_s29 + $0x38] sm:$0xf] %vm1904_vm1, %v2374_v23  ;;  %v2375_v33 = vpack.c.bf16 %v941_v25, %v941_v25 }
 0x103   : > { %1983 = vst.msk [vmem:[%s2965_s29 + $0x138] sm:$0xf] %vm1904_vm1, %v2438_v24  ;;  %v2439_v34 = vpack.c.bf16 %v1197_v26, %v1197_v26  ;;  %1917 = vst.msk [vmem:[%s2965_s29 + $0x30] sm:$0xf] %vm1904_vm1, %v2372_v29  ;;  %v2373_v35 = vpack.c.bf16 %v933_v31, %v933_v31 }
 0x104   : > { %1981 = vst.msk [vmem:[%s2965_s29 + $0x130] sm:$0xf] %vm1904_vm1, %v2436_v30  ;;  %v2437_v36 = vpack.c.bf16 %v1189_v32, %v1189_v32  ;;  %1920 = vst.msk [vmem:[%s2965_s29 + $0x3c] sm:$0xf] %vm1904_vm1, %v2375_v33 }
 0x105   : > { %1984 = vst.msk [vmem:[%s2965_s29 + $0x13c] sm:$0xf] %vm1904_vm1, %v2439_v34  ;;  %1918 = vst.msk [vmem:[%s2965_s29 + $0x34] sm:$0xf] %vm1904_vm1, %v2373_v35  ;;  %v2579_v37 = vpop.f32.mrb[16].mxu0 }
 0x106   : > { %1982 = vst.msk [vmem:[%s2965_s29 + $0x134] sm:$0xf] %vm1904_vm1, %v2437_v36  ;;  %v2643_v38 = vpop.f32.mrb[16].mxu1  ;;  %v954_v39 = vadd.f32 %v2579_v37, %v2956_v3  ;;  %v945_v41 = vpop.f32.mrb[17].mxu0 }
 0x107   : > { %v1210_v40 = vadd.f32 %v2643_v38, %v2956_v3  ;;  %v1201_v42 = vpop.f32.mrb[17].mxu1  ;;  %v946_v43 = vadd.f32 %v2956_v3, %v945_v41  ;;  %v2580_v45 = vpop.f32.mrb[18].mxu0 }
 0x108   : > { %v1202_v44 = vadd.f32 %v2956_v3, %v1201_v42  ;;  %v2644_v46 = vpop.f32.mrb[18].mxu1  ;;  %v2378_v47 = vpack.c.bf16 %v954_v39, %v954_v39  ;;  %v957_v49 = vadd.f32 %v2580_v45, %v2956_v3  ;;  %v948_v51 = vpop.f32.mrb[19].mxu0 }
 0x109   : > { %v2442_v48 = vpack.c.bf16 %v1210_v40, %v1210_v40  ;;  %v1213_v50 = vadd.f32 %v2644_v46, %v2956_v3  ;;  %v1204_v52 = vpop.f32.mrb[19].mxu1  ;;  %v2376_v53 = vpack.c.bf16 %v946_v43, %v946_v43  ;;  %v949_v55 = vadd.f32 %v2956_v3, %v948_v51 }
 0x10a   : > { %v2440_v54 = vpack.c.bf16 %v1202_v44, %v1202_v44  ;;  %v1205_v56 = vadd.f32 %v2956_v3, %v1204_v52  ;;  %1923 = vst.msk [vmem:[%s2965_s29 + $0x48] sm:$0xf] %vm1904_vm1, %v2378_v47  ;;  %v2379_v57 = vpack.c.bf16 %v957_v49, %v957_v49 }
 0x10b   : > { %1987 = vst.msk [vmem:[%s2965_s29 + $0x148] sm:$0xf] %vm1904_vm1, %v2442_v48  ;;  %v2443_v58 = vpack.c.bf16 %v1213_v50, %v1213_v50  ;;  %1921 = vst.msk [vmem:[%s2965_s29 + $0x40] sm:$0xf] %vm1904_vm1, %v2376_v53  ;;  %v2377_v59 = vpack.c.bf16 %v949_v55, %v949_v55 }
 0x10c   : > { %1985 = vst.msk [vmem:[%s2965_s29 + $0x140] sm:$0xf] %vm1904_vm1, %v2440_v54  ;;  %v2441_v60 = vpack.c.bf16 %v1205_v56, %v1205_v56  ;;  %1924 = vst.msk [vmem:[%s2965_s29 + $0x4c] sm:$0xf] %vm1904_vm1, %v2379_v57 }
 0x10d   : > { %1988 = vst.msk [vmem:[%s2965_s29 + $0x14c] sm:$0xf] %vm1904_vm1, %v2443_v58  ;;  %1922 = vst.msk [vmem:[%s2965_s29 + $0x44] sm:$0xf] %vm1904_vm1, %v2377_v59  ;;  %v2583_v61 = vpop.f32.mrb[20].mxu0 }
 0x10e   : > { %1986 = vst.msk [vmem:[%s2965_s29 + $0x144] sm:$0xf] %vm1904_vm1, %v2441_v60  ;;  %v2647_v62 = vpop.f32.mrb[20].mxu1  ;;  %v970_v63 = vadd.f32 %v2583_v61, %v2956_v3  ;;  %v961_v1 = vpop.f32.mrb[21].mxu0 }
 0x10f   : > { %v1226_v0 = vadd.f32 %v2647_v62, %v2956_v3  ;;  %v1217_v2 = vpop.f32.mrb[21].mxu1  ;;  %v962_v4 = vadd.f32 %v2956_v3, %v961_v1  ;;  %v2584_v6 = vpop.f32.mrb[22].mxu0 }
 0x110   : > { %v1218_v5 = vadd.f32 %v2956_v3, %v1217_v2  ;;  %v2648_v7 = vpop.f32.mrb[22].mxu1  ;;  %v2382_v8 = vpack.c.bf16 %v970_v63, %v970_v63  ;;  %v973_v10 = vadd.f32 %v2584_v6, %v2956_v3  ;;  %v964_v12 = vpop.f32.mrb[23].mxu0 }
 0x111   : > { %v2446_v9 = vpack.c.bf16 %v1226_v0, %v1226_v0  ;;  %v1229_v11 = vadd.f32 %v2648_v7, %v2956_v3  ;;  %v1220_v13 = vpop.f32.mrb[23].mxu1  ;;  %v2380_v14 = vpack.c.bf16 %v962_v4, %v962_v4  ;;  %v965_v16 = vadd.f32 %v2956_v3, %v964_v12 }
 0x112   : > { %v2444_v15 = vpack.c.bf16 %v1218_v5, %v1218_v5  ;;  %v1221_v17 = vadd.f32 %v2956_v3, %v1220_v13  ;;  %1927 = vst.msk [vmem:[%s2965_s29 + $0x58] sm:$0xf] %vm1904_vm1, %v2382_v8  ;;  %v2383_v18 = vpack.c.bf16 %v973_v10, %v973_v10 }
 0x113   : > { %1991 = vst.msk [vmem:[%s2965_s29 + $0x158] sm:$0xf] %vm1904_vm1, %v2446_v9  ;;  %v2447_v19 = vpack.c.bf16 %v1229_v11, %v1229_v11  ;;  %1925 = vst.msk [vmem:[%s2965_s29 + $0x50] sm:$0xf] %vm1904_vm1, %v2380_v14  ;;  %v2381_v20 = vpack.c.bf16 %v965_v16, %v965_v16 }
 0x114   : > { %1989 = vst.msk [vmem:[%s2965_s29 + $0x150] sm:$0xf] %vm1904_vm1, %v2444_v15  ;;  %v2445_v21 = vpack.c.bf16 %v1221_v17, %v1221_v17  ;;  %1928 = vst.msk [vmem:[%s2965_s29 + $0x5c] sm:$0xf] %vm1904_vm1, %v2383_v18 }
 0x115   : > { %1992 = vst.msk [vmem:[%s2965_s29 + $0x15c] sm:$0xf] %vm1904_vm1, %v2447_v19  ;;  %1926 = vst.msk [vmem:[%s2965_s29 + $0x54] sm:$0xf] %vm1904_vm1, %v2381_v20  ;;  %v2587_v22 = vpop.f32.mrb[24].mxu0 }
 0x116   : > { %1990 = vst.msk [vmem:[%s2965_s29 + $0x154] sm:$0xf] %vm1904_vm1, %v2445_v21  ;;  %v2651_v23 = vpop.f32.mrb[24].mxu1  ;;  %v986_v24 = vadd.f32 %v2587_v22, %v2956_v3  ;;  %v977_v26 = vpop.f32.mrb[25].mxu0 }
 0x117   : > { %v1242_v25 = vadd.f32 %v2651_v23, %v2956_v3  ;;  %v1233_v27 = vpop.f32.mrb[25].mxu1  ;;  %v978_v28 = vadd.f32 %v2956_v3, %v977_v26  ;;  %v2588_v30 = vpop.f32.mrb[26].mxu0 }
 0x118   : > { %v1234_v29 = vadd.f32 %v2956_v3, %v1233_v27  ;;  %v2652_v31 = vpop.f32.mrb[26].mxu1  ;;  %v2386_v32 = vpack.c.bf16 %v986_v24, %v986_v24  ;;  %v989_v34 = vadd.f32 %v2588_v30, %v2956_v3  ;;  %v980_v36 = vpop.f32.mrb[27].mxu0 }
 0x119   : > { %v2450_v33 = vpack.c.bf16 %v1242_v25, %v1242_v25  ;;  %v1245_v35 = vadd.f32 %v2652_v31, %v2956_v3  ;;  %v1236_v37 = vpop.f32.mrb[27].mxu1  ;;  %v2384_v38 = vpack.c.bf16 %v978_v28, %v978_v28  ;;  %v981_v40 = vadd.f32 %v2956_v3, %v980_v36 }
 0x11a   : > { %v2448_v39 = vpack.c.bf16 %v1234_v29, %v1234_v29  ;;  %v1237_v41 = vadd.f32 %v2956_v3, %v1236_v37  ;;  %1931 = vst.msk [vmem:[%s2965_s29 + $0x68] sm:$0xf] %vm1904_vm1, %v2386_v32  ;;  %v2387_v42 = vpack.c.bf16 %v989_v34, %v989_v34 }
 0x11b   : > { %1995 = vst.msk [vmem:[%s2965_s29 + $0x168] sm:$0xf] %vm1904_vm1, %v2450_v33  ;;  %v2451_v43 = vpack.c.bf16 %v1245_v35, %v1245_v35  ;;  %1929 = vst.msk [vmem:[%s2965_s29 + $0x60] sm:$0xf] %vm1904_vm1, %v2384_v38  ;;  %v2385_v44 = vpack.c.bf16 %v981_v40, %v981_v40 }
 0x11c   : > { %1993 = vst.msk [vmem:[%s2965_s29 + $0x160] sm:$0xf] %vm1904_vm1, %v2448_v39  ;;  %v2449_v45 = vpack.c.bf16 %v1237_v41, %v1237_v41  ;;  %1932 = vst.msk [vmem:[%s2965_s29 + $0x6c] sm:$0xf] %vm1904_vm1, %v2387_v42 }
 0x11d   : > { %1996 = vst.msk [vmem:[%s2965_s29 + $0x16c] sm:$0xf] %vm1904_vm1, %v2451_v43  ;;  %1930 = vst.msk [vmem:[%s2965_s29 + $0x64] sm:$0xf] %vm1904_vm1, %v2385_v44  ;;  %v2591_v46 = vpop.f32.mrb[28].mxu0 }
 0x11e   : > { %1994 = vst.msk [vmem:[%s2965_s29 + $0x164] sm:$0xf] %vm1904_vm1, %v2449_v45  ;;  %v2655_v47 = vpop.f32.mrb[28].mxu1  ;;  %v1002_v48 = vadd.f32 %v2591_v46, %v2956_v3  ;;  %v993_v50 = vpop.f32.mrb[29].mxu0 }
 0x11f   : > { %v1258_v49 = vadd.f32 %v2655_v47, %v2956_v3  ;;  %v1249_v51 = vpop.f32.mrb[29].mxu1  ;;  %v994_v52 = vadd.f32 %v2956_v3, %v993_v50  ;;  %v2592_v54 = vpop.f32.mrb[30].mxu0 }
 0x120   : > { %v1250_v53 = vadd.f32 %v2956_v3, %v1249_v51  ;;  %v2656_v55 = vpop.f32.mrb[30].mxu1  ;;  %v2390_v56 = vpack.c.bf16 %v1002_v48, %v1002_v48  ;;  %v1005_v58 = vadd.f32 %v2592_v54, %v2956_v3  ;;  %v996_v60 = vpop.f32.mrb[31].mxu0 }
 0x121   : > { %v2454_v57 = vpack.c.bf16 %v1258_v49, %v1258_v49  ;;  %v1261_v59 = vadd.f32 %v2656_v55, %v2956_v3  ;;  %v1252_v61 = vpop.f32.mrb[31].mxu1  ;;  %v2388_v62 = vpack.c.bf16 %v994_v52, %v994_v52  ;;  %v997_v0 = vadd.f32 %v2956_v3, %v996_v60 }
 0x122   : > { %v2452_v63 = vpack.c.bf16 %v1250_v53, %v1250_v53  ;;  %v1253_v1 = vadd.f32 %v2956_v3, %v1252_v61  ;;  %1935 = vst.msk [vmem:[%s2965_s29 + $0x78] sm:$0xf] %vm1904_vm1, %v2390_v56  ;;  %v2391_v2 = vpack.c.bf16 %v1005_v58, %v1005_v58 }
 0x123   : > { %1999 = vst.msk [vmem:[%s2965_s29 + $0x178] sm:$0xf] %vm1904_vm1, %v2454_v57  ;;  %v2455_v4 = vpack.c.bf16 %v1261_v59, %v1261_v59  ;;  %1933 = vst.msk [vmem:[%s2965_s29 + $0x70] sm:$0xf] %vm1904_vm1, %v2388_v62  ;;  %v2389_v5 = vpack.c.bf16 %v997_v0, %v997_v0 }
 0x124   : > { %1997 = vst.msk [vmem:[%s2965_s29 + $0x170] sm:$0xf] %vm1904_vm1, %v2452_v63  ;;  %v2453_v6 = vpack.c.bf16 %v1253_v1, %v1253_v1  ;;  %1936 = vst.msk [vmem:[%s2965_s29 + $0x7c] sm:$0xf] %vm1904_vm1, %v2391_v2 }
 0x125   : > { %2000 = vst.msk [vmem:[%s2965_s29 + $0x17c] sm:$0xf] %vm1904_vm1, %v2455_v4  ;;  %1934 = vst.msk [vmem:[%s2965_s29 + $0x74] sm:$0xf] %vm1904_vm1, %v2389_v5  ;;  %v2595_v7 = vpop.f32.mrb[32].mxu0 }
 0x126   : > { %1998 = vst.msk [vmem:[%s2965_s29 + $0x174] sm:$0xf] %vm1904_vm1, %v2453_v6  ;;  %v2659_v8 = vpop.f32.mrb[32].mxu1  ;;  %v1018_v9 = vadd.f32 %v2595_v7, %v2956_v3  ;;  %v1009_v11 = vpop.f32.mrb[33].mxu0 }
 0x127   : > { %v1274_v10 = vadd.f32 %v2659_v8, %v2956_v3  ;;  %v1265_v12 = vpop.f32.mrb[33].mxu1  ;;  %v1010_v13 = vadd.f32 %v2956_v3, %v1009_v11  ;;  %v2596_v15 = vpop.f32.mrb[34].mxu0 }
 0x128   : > { %v1266_v14 = vadd.f32 %v2956_v3, %v1265_v12  ;;  %v2660_v16 = vpop.f32.mrb[34].mxu1  ;;  %v2394_v17 = vpack.c.bf16 %v1018_v9, %v1018_v9  ;;  %v1021_v19 = vadd.f32 %v2596_v15, %v2956_v3  ;;  %v1012_v21 = vpop.f32.mrb[35].mxu0 }
 0x129   : > { %v2458_v18 = vpack.c.bf16 %v1274_v10, %v1274_v10  ;;  %v1277_v20 = vadd.f32 %v2660_v16, %v2956_v3  ;;  %v1268_v22 = vpop.f32.mrb[35].mxu1  ;;  %v2392_v23 = vpack.c.bf16 %v1010_v13, %v1010_v13  ;;  %v1013_v25 = vadd.f32 %v2956_v3, %v1012_v21 }
 0x12a   : > { %v2456_v24 = vpack.c.bf16 %v1266_v14, %v1266_v14  ;;  %v1269_v26 = vadd.f32 %v2956_v3, %v1268_v22  ;;  %1939 = vst.msk [vmem:[%s2965_s29 + $0x88] sm:$0xf] %vm1904_vm1, %v2394_v17  ;;  %v2395_v27 = vpack.c.bf16 %v1021_v19, %v1021_v19 }
 0x12b   : > { %2003 = vst.msk [vmem:[%s2965_s29 + $0x188] sm:$0xf] %vm1904_vm1, %v2458_v18  ;;  %v2459_v28 = vpack.c.bf16 %v1277_v20, %v1277_v20  ;;  %1937 = vst.msk [vmem:[%s2965_s29 + $0x80] sm:$0xf] %vm1904_vm1, %v2392_v23  ;;  %v2393_v29 = vpack.c.bf16 %v1013_v25, %v1013_v25 }
 0x12c   : > { %2001 = vst.msk [vmem:[%s2965_s29 + $0x180] sm:$0xf] %vm1904_vm1, %v2456_v24  ;;  %v2457_v30 = vpack.c.bf16 %v1269_v26, %v1269_v26  ;;  %1940 = vst.msk [vmem:[%s2965_s29 + $0x8c] sm:$0xf] %vm1904_vm1, %v2395_v27 }
 0x12d   : > { %2004 = vst.msk [vmem:[%s2965_s29 + $0x18c] sm:$0xf] %vm1904_vm1, %v2459_v28  ;;  %1938 = vst.msk [vmem:[%s2965_s29 + $0x84] sm:$0xf] %vm1904_vm1, %v2393_v29  ;;  %v2599_v31 = vpop.f32.mrb[36].mxu0 }
 0x12e   : > { %2002 = vst.msk [vmem:[%s2965_s29 + $0x184] sm:$0xf] %vm1904_vm1, %v2457_v30  ;;  %v2663_v32 = vpop.f32.mrb[36].mxu1  ;;  %v1034_v33 = vadd.f32 %v2599_v31, %v2956_v3  ;;  %v1025_v35 = vpop.f32.mrb[37].mxu0 }
 0x12f   : > { %v1290_v34 = vadd.f32 %v2663_v32, %v2956_v3  ;;  %v1281_v36 = vpop.f32.mrb[37].mxu1  ;;  %v1026_v37 = vadd.f32 %v2956_v3, %v1025_v35  ;;  %v2600_v39 = vpop.f32.mrb[38].mxu0 }
 0x130   : > { %v1282_v38 = vadd.f32 %v2956_v3, %v1281_v36  ;;  %v2664_v40 = vpop.f32.mrb[38].mxu1  ;;  %v2398_v41 = vpack.c.bf16 %v1034_v33, %v1034_v33  ;;  %v1037_v43 = vadd.f32 %v2600_v39, %v2956_v3  ;;  %v1028_v45 = vpop.f32.mrb[39].mxu0 }
 0x131   : > { %v2462_v42 = vpack.c.bf16 %v1290_v34, %v1290_v34  ;;  %v1293_v44 = vadd.f32 %v2664_v40, %v2956_v3  ;;  %v1284_v46 = vpop.f32.mrb[39].mxu1  ;;  %v2396_v47 = vpack.c.bf16 %v1026_v37, %v1026_v37  ;;  %v1029_v49 = vadd.f32 %v2956_v3, %v1028_v45 }
 0x132   : > { %v2460_v48 = vpack.c.bf16 %v1282_v38, %v1282_v38  ;;  %v1285_v50 = vadd.f32 %v2956_v3, %v1284_v46  ;;  %1943 = vst.msk [vmem:[%s2965_s29 + $0x98] sm:$0xf] %vm1904_vm1, %v2398_v41  ;;  %v2399_v51 = vpack.c.bf16 %v1037_v43, %v1037_v43 }
 0x133   : > { %2007 = vst.msk [vmem:[%s2965_s29 + $0x198] sm:$0xf] %vm1904_vm1, %v2462_v42  ;;  %v2463_v52 = vpack.c.bf16 %v1293_v44, %v1293_v44  ;;  %1941 = vst.msk [vmem:[%s2965_s29 + $0x90] sm:$0xf] %vm1904_vm1, %v2396_v47  ;;  %v2397_v53 = vpack.c.bf16 %v1029_v49, %v1029_v49 }
 0x134   : > { %2005 = vst.msk [vmem:[%s2965_s29 + $0x190] sm:$0xf] %vm1904_vm1, %v2460_v48  ;;  %v2461_v54 = vpack.c.bf16 %v1285_v50, %v1285_v50  ;;  %1944 = vst.msk [vmem:[%s2965_s29 + $0x9c] sm:$0xf] %vm1904_vm1, %v2399_v51 }
 0x135   : > { %2008 = vst.msk [vmem:[%s2965_s29 + $0x19c] sm:$0xf] %vm1904_vm1, %v2463_v52  ;;  %1942 = vst.msk [vmem:[%s2965_s29 + $0x94] sm:$0xf] %vm1904_vm1, %v2397_v53  ;;  %v2603_v55 = vpop.f32.mrb[40].mxu0 }
 0x136   : > { %2006 = vst.msk [vmem:[%s2965_s29 + $0x194] sm:$0xf] %vm1904_vm1, %v2461_v54  ;;  %v2667_v56 = vpop.f32.mrb[40].mxu1  ;;  %v1050_v57 = vadd.f32 %v2603_v55, %v2956_v3  ;;  %v1041_v59 = vpop.f32.mrb[41].mxu0 }
 0x137   : > { %v1306_v58 = vadd.f32 %v2667_v56, %v2956_v3  ;;  %v1297_v60 = vpop.f32.mrb[41].mxu1  ;;  %v1042_v61 = vadd.f32 %v2956_v3, %v1041_v59  ;;  %v2604_v63 = vpop.f32.mrb[42].mxu0 }
 0x138   : > { %v1298_v62 = vadd.f32 %v2956_v3, %v1297_v60  ;;  %v2668_v0 = vpop.f32.mrb[42].mxu1  ;;  %v2402_v1 = vpack.c.bf16 %v1050_v57, %v1050_v57  ;;  %v1053_v4 = vadd.f32 %v2604_v63, %v2956_v3  ;;  %v1044_v6 = vpop.f32.mrb[43].mxu0 }
 0x139   : > { %v2466_v2 = vpack.c.bf16 %v1306_v58, %v1306_v58  ;;  %v1309_v5 = vadd.f32 %v2668_v0, %v2956_v3  ;;  %v1300_v7 = vpop.f32.mrb[43].mxu1  ;;  %v2400_v8 = vpack.c.bf16 %v1042_v61, %v1042_v61  ;;  %v1045_v10 = vadd.f32 %v2956_v3, %v1044_v6 }
 0x13a   : > { %v2464_v9 = vpack.c.bf16 %v1298_v62, %v1298_v62  ;;  %v1301_v11 = vadd.f32 %v2956_v3, %v1300_v7  ;;  %1947 = vst.msk [vmem:[%s2965_s29 + $0xa8] sm:$0xf] %vm1904_vm1, %v2402_v1  ;;  %v2403_v12 = vpack.c.bf16 %v1053_v4, %v1053_v4 }
 0x13b   : > { %2011 = vst.msk [vmem:[%s2965_s29 + $0x1a8] sm:$0xf] %vm1904_vm1, %v2466_v2  ;;  %v2467_v13 = vpack.c.bf16 %v1309_v5, %v1309_v5  ;;  %1945 = vst.msk [vmem:[%s2965_s29 + $0xa0] sm:$0xf] %vm1904_vm1, %v2400_v8  ;;  %v2401_v14 = vpack.c.bf16 %v1045_v10, %v1045_v10 }
 0x13c   : > { %2009 = vst.msk [vmem:[%s2965_s29 + $0x1a0] sm:$0xf] %vm1904_vm1, %v2464_v9  ;;  %v2465_v15 = vpack.c.bf16 %v1301_v11, %v1301_v11  ;;  %1948 = vst.msk [vmem:[%s2965_s29 + $0xac] sm:$0xf] %vm1904_vm1, %v2403_v12 }
 0x13d   : > { %2012 = vst.msk [vmem:[%s2965_s29 + $0x1ac] sm:$0xf] %vm1904_vm1, %v2467_v13  ;;  %1946 = vst.msk [vmem:[%s2965_s29 + $0xa4] sm:$0xf] %vm1904_vm1, %v2401_v14  ;;  %v2607_v16 = vpop.f32.mrb[44].mxu0 }
 0x13e   : > { %2010 = vst.msk [vmem:[%s2965_s29 + $0x1a4] sm:$0xf] %vm1904_vm1, %v2465_v15  ;;  %v2671_v17 = vpop.f32.mrb[44].mxu1  ;;  %v1066_v18 = vadd.f32 %v2607_v16, %v2956_v3  ;;  %v1057_v20 = vpop.f32.mrb[45].mxu0 }
 0x13f   : > { %v1322_v19 = vadd.f32 %v2671_v17, %v2956_v3  ;;  %v1313_v21 = vpop.f32.mrb[45].mxu1  ;;  %v1058_v22 = vadd.f32 %v2956_v3, %v1057_v20  ;;  %v2608_v24 = vpop.f32.mrb[46].mxu0 }
 0x140   : > { %v1314_v23 = vadd.f32 %v2956_v3, %v1313_v21  ;;  %v2672_v25 = vpop.f32.mrb[46].mxu1  ;;  %v2406_v26 = vpack.c.bf16 %v1066_v18, %v1066_v18  ;;  %v1069_v28 = vadd.f32 %v2608_v24, %v2956_v3  ;;  %v1060_v30 = vpop.f32.mrb[47].mxu0 }
 0x141   : > { %v2470_v27 = vpack.c.bf16 %v1322_v19, %v1322_v19  ;;  %v1325_v29 = vadd.f32 %v2672_v25, %v2956_v3  ;;  %v1316_v31 = vpop.f32.mrb[47].mxu1  ;;  %v2404_v32 = vpack.c.bf16 %v1058_v22, %v1058_v22  ;;  %v1061_v34 = vadd.f32 %v2956_v3, %v1060_v30 }
 0x142   : > { %v2468_v33 = vpack.c.bf16 %v1314_v23, %v1314_v23  ;;  %v1317_v35 = vadd.f32 %v2956_v3, %v1316_v31  ;;  %1951 = vst.msk [vmem:[%s2965_s29 + $0xb8] sm:$0xf] %vm1904_vm1, %v2406_v26  ;;  %v2407_v36 = vpack.c.bf16 %v1069_v28, %v1069_v28 }
 0x143   : > { %2015 = vst.msk [vmem:[%s2965_s29 + $0x1b8] sm:$0xf] %vm1904_vm1, %v2470_v27  ;;  %v2471_v37 = vpack.c.bf16 %v1325_v29, %v1325_v29  ;;  %1949 = vst.msk [vmem:[%s2965_s29 + $0xb0] sm:$0xf] %vm1904_vm1, %v2404_v32  ;;  %v2405_v38 = vpack.c.bf16 %v1061_v34, %v1061_v34 }
 0x144   : > { %2013 = vst.msk [vmem:[%s2965_s29 + $0x1b0] sm:$0xf] %vm1904_vm1, %v2468_v33  ;;  %v2469_v39 = vpack.c.bf16 %v1317_v35, %v1317_v35  ;;  %1952 = vst.msk [vmem:[%s2965_s29 + $0xbc] sm:$0xf] %vm1904_vm1, %v2407_v36 }
 0x145   : > { %2016 = vst.msk [vmem:[%s2965_s29 + $0x1bc] sm:$0xf] %vm1904_vm1, %v2471_v37  ;;  %1950 = vst.msk [vmem:[%s2965_s29 + $0xb4] sm:$0xf] %vm1904_vm1, %v2405_v38  ;;  %v2611_v40 = vpop.f32.mrb[48].mxu0 }
 0x146   : > { %2014 = vst.msk [vmem:[%s2965_s29 + $0x1b4] sm:$0xf] %vm1904_vm1, %v2469_v39  ;;  %v2675_v41 = vpop.f32.mrb[48].mxu1  ;;  %v1082_v42 = vadd.f32 %v2611_v40, %v2956_v3  ;;  %v1073_v44 = vpop.f32.mrb[49].mxu0 }
 0x147   : > { %v1338_v43 = vadd.f32 %v2675_v41, %v2956_v3  ;;  %v1329_v45 = vpop.f32.mrb[49].mxu1  ;;  %v1074_v46 = vadd.f32 %v2956_v3, %v1073_v44  ;;  %v2612_v48 = vpop.f32.mrb[50].mxu0 }
 0x148   : > { %v1330_v47 = vadd.f32 %v2956_v3, %v1329_v45  ;;  %v2676_v49 = vpop.f32.mrb[50].mxu1  ;;  %v2410_v50 = vpack.c.bf16 %v1082_v42, %v1082_v42  ;;  %v1085_v52 = vadd.f32 %v2612_v48, %v2956_v3  ;;  %v1076_v54 = vpop.f32.mrb[51].mxu0 }
 0x149   : > { %v2474_v51 = vpack.c.bf16 %v1338_v43, %v1338_v43  ;;  %v1341_v53 = vadd.f32 %v2676_v49, %v2956_v3  ;;  %v1332_v55 = vpop.f32.mrb[51].mxu1  ;;  %v2408_v56 = vpack.c.bf16 %v1074_v46, %v1074_v46  ;;  %v1077_v58 = vadd.f32 %v2956_v3, %v1076_v54 }
 0x14a   : > { %v2472_v57 = vpack.c.bf16 %v1330_v47, %v1330_v47  ;;  %v1333_v59 = vadd.f32 %v2956_v3, %v1332_v55  ;;  %1955 = vst.msk [vmem:[%s2965_s29 + $0xc8] sm:$0xf] %vm1904_vm1, %v2410_v50  ;;  %v2411_v60 = vpack.c.bf16 %v1085_v52, %v1085_v52 }
 0x14b   : > { %2019 = vst.msk [vmem:[%s2965_s29 + $0x1c8] sm:$0xf] %vm1904_vm1, %v2474_v51  ;;  %v2475_v61 = vpack.c.bf16 %v1341_v53, %v1341_v53  ;;  %1953 = vst.msk [vmem:[%s2965_s29 + $0xc0] sm:$0xf] %vm1904_vm1, %v2408_v56  ;;  %v2409_v62 = vpack.c.bf16 %v1077_v58, %v1077_v58 }
 0x14c   : > { %2017 = vst.msk [vmem:[%s2965_s29 + $0x1c0] sm:$0xf] %vm1904_vm1, %v2472_v57  ;;  %v2473_v63 = vpack.c.bf16 %v1333_v59, %v1333_v59  ;;  %1956 = vst.msk [vmem:[%s2965_s29 + $0xcc] sm:$0xf] %vm1904_vm1, %v2411_v60 }
 0x14d   : > { %2020 = vst.msk [vmem:[%s2965_s29 + $0x1cc] sm:$0xf] %vm1904_vm1, %v2475_v61  ;;  %1954 = vst.msk [vmem:[%s2965_s29 + $0xc4] sm:$0xf] %vm1904_vm1, %v2409_v62  ;;  %v2615_v0 = vpop.f32.mrb[52].mxu0 }
 0x14e   : > { %2018 = vst.msk [vmem:[%s2965_s29 + $0x1c4] sm:$0xf] %vm1904_vm1, %v2473_v63  ;;  %v2679_v1 = vpop.f32.mrb[52].mxu1  ;;  %v1098_v2 = vadd.f32 %v2615_v0, %v2956_v3  ;;  %v1089_v5 = vpop.f32.mrb[53].mxu0 }
 0x14f   : > { %v1354_v4 = vadd.f32 %v2679_v1, %v2956_v3  ;;  %v1345_v6 = vpop.f32.mrb[53].mxu1  ;;  %v1090_v7 = vadd.f32 %v2956_v3, %v1089_v5  ;;  %v2616_v9 = vpop.f32.mrb[54].mxu0 }
 0x150   : > { %v1346_v8 = vadd.f32 %v2956_v3, %v1345_v6  ;;  %v2680_v10 = vpop.f32.mrb[54].mxu1  ;;  %v2414_v11 = vpack.c.bf16 %v1098_v2, %v1098_v2  ;;  %v1101_v13 = vadd.f32 %v2616_v9, %v2956_v3  ;;  %v1092_v15 = vpop.f32.mrb[55].mxu0 }
 0x151   : > { %v2478_v12 = vpack.c.bf16 %v1354_v4, %v1354_v4  ;;  %v1357_v14 = vadd.f32 %v2680_v10, %v2956_v3  ;;  %v1348_v16 = vpop.f32.mrb[55].mxu1  ;;  %v2412_v17 = vpack.c.bf16 %v1090_v7, %v1090_v7  ;;  %v1093_v19 = vadd.f32 %v2956_v3, %v1092_v15 }
 0x152   : > { %v2476_v18 = vpack.c.bf16 %v1346_v8, %v1346_v8  ;;  %v1349_v20 = vadd.f32 %v2956_v3, %v1348_v16  ;;  %1959 = vst.msk [vmem:[%s2965_s29 + $0xd8] sm:$0xf] %vm1904_vm1, %v2414_v11  ;;  %v2415_v21 = vpack.c.bf16 %v1101_v13, %v1101_v13 }
 0x153   : > { %2023 = vst.msk [vmem:[%s2965_s29 + $0x1d8] sm:$0xf] %vm1904_vm1, %v2478_v12  ;;  %v2479_v22 = vpack.c.bf16 %v1357_v14, %v1357_v14  ;;  %1957 = vst.msk [vmem:[%s2965_s29 + $0xd0] sm:$0xf] %vm1904_vm1, %v2412_v17  ;;  %v2413_v23 = vpack.c.bf16 %v1093_v19, %v1093_v19 }
 0x154   : > { %2021 = vst.msk [vmem:[%s2965_s29 + $0x1d0] sm:$0xf] %vm1904_vm1, %v2476_v18  ;;  %v2477_v24 = vpack.c.bf16 %v1349_v20, %v1349_v20  ;;  %1960 = vst.msk [vmem:[%s2965_s29 + $0xdc] sm:$0xf] %vm1904_vm1, %v2415_v21 }
 0x155   : > { %2024 = vst.msk [vmem:[%s2965_s29 + $0x1dc] sm:$0xf] %vm1904_vm1, %v2479_v22  ;;  %1958 = vst.msk [vmem:[%s2965_s29 + $0xd4] sm:$0xf] %vm1904_vm1, %v2413_v23  ;;  %v2619_v25 = vpop.f32.mrb[56].mxu0 }
 0x156   : > { %2022 = vst.msk [vmem:[%s2965_s29 + $0x1d4] sm:$0xf] %vm1904_vm1, %v2477_v24  ;;  %v2683_v26 = vpop.f32.mrb[56].mxu1  ;;  %v1114_v27 = vadd.f32 %v2619_v25, %v2956_v3  ;;  %v1105_v29 = vpop.f32.mrb[57].mxu0 }
 0x157   : > { %v1370_v28 = vadd.f32 %v2683_v26, %v2956_v3  ;;  %v1361_v30 = vpop.f32.mrb[57].mxu1  ;;  %v1106_v31 = vadd.f32 %v2956_v3, %v1105_v29  ;;  %v2620_v33 = vpop.f32.mrb[58].mxu0 }
 0x158   : > { %v1362_v32 = vadd.f32 %v2956_v3, %v1361_v30  ;;  %v2684_v34 = vpop.f32.mrb[58].mxu1  ;;  %v2418_v35 = vpack.c.bf16 %v1114_v27, %v1114_v27  ;;  %v1117_v37 = vadd.f32 %v2620_v33, %v2956_v3  ;;  %v1108_v39 = vpop.f32.mrb[59].mxu0 }
 0x159   : > { %v2482_v36 = vpack.c.bf16 %v1370_v28, %v1370_v28  ;;  %v1373_v38 = vadd.f32 %v2684_v34, %v2956_v3  ;;  %v1364_v40 = vpop.f32.mrb[59].mxu1  ;;  %v2416_v41 = vpack.c.bf16 %v1106_v31, %v1106_v31  ;;  %v1109_v43 = vadd.f32 %v2956_v3, %v1108_v39 }
 0x15a   : > { %v2480_v42 = vpack.c.bf16 %v1362_v32, %v1362_v32  ;;  %v1365_v44 = vadd.f32 %v2956_v3, %v1364_v40  ;;  %1963 = vst.msk [vmem:[%s2965_s29 + $0xe8] sm:$0xf] %vm1904_vm1, %v2418_v35  ;;  %v2419_v45 = vpack.c.bf16 %v1117_v37, %v1117_v37 }
 0x15b   : > { %2027 = vst.msk [vmem:[%s2965_s29 + $0x1e8] sm:$0xf] %vm1904_vm1, %v2482_v36  ;;  %v2483_v46 = vpack.c.bf16 %v1373_v38, %v1373_v38  ;;  %1961 = vst.msk [vmem:[%s2965_s29 + $0xe0] sm:$0xf] %vm1904_vm1, %v2416_v41  ;;  %v2417_v47 = vpack.c.bf16 %v1109_v43, %v1109_v43 }
 0x15c   : > { %2025 = vst.msk [vmem:[%s2965_s29 + $0x1e0] sm:$0xf] %vm1904_vm1, %v2480_v42  ;;  %v2481_v48 = vpack.c.bf16 %v1365_v44, %v1365_v44  ;;  %1964 = vst.msk [vmem:[%s2965_s29 + $0xec] sm:$0xf] %vm1904_vm1, %v2419_v45 }
 0x15d   : > { %2028 = vst.msk [vmem:[%s2965_s29 + $0x1ec] sm:$0xf] %vm1904_vm1, %v2483_v46  ;;  %1962 = vst.msk [vmem:[%s2965_s29 + $0xe4] sm:$0xf] %vm1904_vm1, %v2417_v47  ;;  %v2623_v49 = vpop.f32.mrb[60].mxu0 }
 0x15e   : > { %2026 = vst.msk [vmem:[%s2965_s29 + $0x1e4] sm:$0xf] %vm1904_vm1, %v2481_v48  ;;  %v2687_v50 = vpop.f32.mrb[60].mxu1  ;;  %v1130_v51 = vadd.f32 %v2623_v49, %v2956_v3  ;;  %v1121_v53 = vpop.f32.mrb[61].mxu0 }
 0x15f   : > { %v1386_v52 = vadd.f32 %v2687_v50, %v2956_v3  ;;  %v1377_v54 = vpop.f32.mrb[61].mxu1  ;;  %v1122_v55 = vadd.f32 %v2956_v3, %v1121_v53  ;;  %v2624_v57 = vpop.f32.mrb[62].mxu0 }
 0x160   : > { %v1378_v56 = vadd.f32 %v2956_v3, %v1377_v54  ;;  %v2688_v58 = vpop.f32.mrb[62].mxu1  ;;  %v2422_v59 = vpack.c.bf16 %v1130_v51, %v1130_v51  ;;  %v1133_v61 = vadd.f32 %v2624_v57, %v2956_v3  ;;  %v1124_v63 = vpop.f32.mrb[63].mxu0 }
 0x161   : > { %v2486_v60 = vpack.c.bf16 %v1386_v52, %v1386_v52  ;;  %v1389_v62 = vadd.f32 %v2688_v58, %v2956_v3  ;;  %v1380_v0 = vpop.f32.mrb[63].mxu1  ;;  %v2420_v1 = vpack.c.bf16 %v1122_v55, %v1122_v55  ;;  %v1125_v4 = vadd.f32 %v2956_v3, %v1124_v63 }
 0x162   : > { %v2484_v2 = vpack.c.bf16 %v1378_v56, %v1378_v56  ;;  %v1381_v5 = vadd.f32 %v2956_v3, %v1380_v0  ;;  %1967 = vst.msk [vmem:[%s2965_s29 + $0xf8] sm:$0xf] %vm1904_vm1, %v2422_v59  ;;  %v2423_v6 = vpack.c.bf16 %v1133_v61, %v1133_v61 }
 0x163   : > { %2031 = vst.msk [vmem:[%s2965_s29 + $0x1f8] sm:$0xf] %vm1904_vm1, %v2486_v60  ;;  %v2487_v7 = vpack.c.bf16 %v1389_v62, %v1389_v62  ;;  %1965 = vst.msk [vmem:[%s2965_s29 + $0xf0] sm:$0xf] %vm1904_vm1, %v2420_v1  ;;  %v2421_v8 = vpack.c.bf16 %v1125_v4, %v1125_v4 }
 0x164   : > { %2029 = vst.msk [vmem:[%s2965_s29 + $0x1f0] sm:$0xf] %vm1904_vm1, %v2484_v2  ;;  %v2485_v9 = vpack.c.bf16 %v1381_v5, %v1381_v5  ;;  %1968 = vst.msk [vmem:[%s2965_s29 + $0xfc] sm:$0xf] %vm1904_vm1, %v2423_v6 }
 0x165   : > { %2032 = vst.msk [vmem:[%s2965_s29 + $0x1fc] sm:$0xf] %vm1904_vm1, %v2487_v7  ;;  %1966 = vst.msk [vmem:[%s2965_s29 + $0xf4] sm:$0xf] %vm1904_vm1, %v2421_v8 }
 0x166   : > { %2030 = vst.msk [vmem:[%s2965_s29 + $0x1f4] sm:$0xf] %vm1904_vm1, %v2485_v9 }
 0x167 PF: > { %s13_s12 = sadd.s32 1, %s2776_s12  }
 0x168   : > { %p10_p4 = scmp.ge.s32.totalorder %s13_s12, 4  }
 0x16a   :  { %12 = sbr.rel (!%p10_p4) target bundleno = 1 (0x1), region = 62 }

// kernel: discriminator2_forward.5
= control target key start
LH: loop header
LB: loop body
LE: loop exit
PB: predicated region body
PF: predicated region fallthrough
CT: control target
= control target key end

     0   :  { %v2045_v0 = vmov 0   ;;  %vm819_vm0 = vcmask 261120   ;;  %vm1621_vm1 = vcmask 257024   ;;  %s3841_s1 = inlined_call_operand.vmem [shape: bf16[256,32], index: 1, kind: input, shape index: {}]   ;;  %s3842_s0 = inlined_call_operand.vmem [shape: bf16[512,256], index: 0, kind: input, shape index: {}]   ;;  %s3843_s2 = inlined_call_operand.vmem [shape: f32[1,32], index: 2, kind: input, shape index: {}]   ;;  %s3844_s3 = inlined_call_operand.vmem [shape: f32[1,32], index: 3, kind: input, shape index: {}]   ;;  %s3845_s4 = inlined_call_operand.vmem [shape: bf16[512,32], index: 4, kind: output, shape index: {}]  }
   0x1   :  { %530 = vmatprep.subr.bf16.mxu0 %v2045_v0  ;;  %v1931_v1 = vld [vmem:[%s3841_s1] sm:$0xff]   ;;  %1898 = vmatprep.subr.bf16.mxu1 %v2045_v0  ;;  %v1932_v2 = vld [vmem:[%s3841_s1 + $0x8] sm:$0xff]   ;;  %v1933_v3 = vld [vmem:[%s3841_s1 + $0x10] sm:$0xff]  }
   0x2   :  { %531 = vmatpush1.bf16.msra.mxu0 %v1931_v1  ;;  %1914 = vmatpush1.bf16.msra.mxu1 %v1931_v1  ;;  %v1934_v4 = vld [vmem:[%s3841_s1 + $0x18] sm:$0xff]   ;;  %v1935_v5 = vld [vmem:[%s3841_s1 + $0x20] sm:$0xff]   ;;  %v1936_v7 = vld [vmem:[%s3841_s1 + $0x28] sm:$0xff]  }
   0x3   :  { %532 = vmatprep.subr.bf16.mxu0 %v2045_v0  ;;  %1899 = vmatprep.subr.bf16.mxu1 %v2045_v0  ;;  %v1949_v6 = vld [vmem:[%s3842_s0 + $0x4] ss:$8 sps:$4 sm:$0xff]   ;;  %v1937_v8 = vld [vmem:[%s3841_s1 + $0x30] sm:$0xff]   ;;  %v1938_v9 = vld [vmem:[%s3841_s1 + $0x38] sm:$0xff]  }
   0x4   :  { %562 = vmatprep.mubr.bf16.mxu0 %v1949_v6  ;;  %v1973_v10 = vld [vmem:[%s3842_s0 + $0x104] ss:$8 sps:$4 sm:$0xff]   ;;  %v1941_v13 = vld [vmem:[%s3841_s1 + $0x50] sm:$0xff]   ;;  %v1942_v14 = vld [vmem:[%s3841_s1 + $0x58] sm:$0xff]  }
   0x5   :  { %690 = vmatprep.mubr.bf16.mxu1 %v1973_v10  ;;  %v1939_v11 = vld [vmem:[%s3841_s1 + $0x40] sm:$0xff]   ;;  %v1940_v12 = vld [vmem:[%s3841_s1 + $0x48] sm:$0xff]   ;;  %v1945_v17 = vld [vmem:[%s3841_s1 + $0x70] sm:$0xff]  }
   0x6   :  { %533 = vmatpush1.bf16.msra.mxu0 %v1932_v2  ;;  %1915 = vmatpush1.bf16.msra.mxu1 %v1932_v2  ;;  %v1943_v15 = vld [vmem:[%s3841_s1 + $0x60] sm:$0xff]   ;;  %v1944_v16 = vld [vmem:[%s3841_s1 + $0x68] sm:$0xff]   ;;  %v1946_v18 = vld [vmem:[%s3841_s1 + $0x78] sm:$0xff]  }
   0x7   :  { %534 = vmatprep.subr.bf16.mxu0 %v2045_v0  ;;  %1900 = vmatprep.subr.bf16.mxu1 %v2045_v0  ;;  %v1947_v19 = vld [vmem:[%s3842_s0] ss:$8 sps:$4 sm:$0xff]   ;;  %v1950_v21 = vld [vmem:[%s3842_s0 + $0x14] ss:$8 sps:$4 sm:$0xff]   ;;  %v1952_v23 = vld [vmem:[%s3842_s0 + $0x10] ss:$8 sps:$4 sm:$0xff]  }
   0x8   :  { %v1971_v20 = vld [vmem:[%s3842_s0 + $0x100] ss:$8 sps:$4 sm:$0xff]   ;;  %v1977_v22 = vld [vmem:[%s3842_s0 + $0x114] ss:$8 sps:$4 sm:$0xff]   ;;  %v1979_v24 = vld [vmem:[%s3842_s0 + $0x110] ss:$8 sps:$4 sm:$0xff]  }
   0x9   :  { %v1953_v25 = vld [vmem:[%s3842_s0 + $0x24] ss:$8 sps:$4 sm:$0xff]   ;;  %v1955_v27 = vld [vmem:[%s3842_s0 + $0x20] ss:$8 sps:$4 sm:$0xff]   ;;  %v1956_v29 = vld [vmem:[%s3842_s0 + $0x34] ss:$8 sps:$4 sm:$0xff]  }
   0xa   :  { %535 = vmatpush1.bf16.msra.mxu0 %v1933_v3  ;;  %1916 = vmatpush1.bf16.msra.mxu1 %v1933_v3  ;;  %v1983_v26 = vld [vmem:[%s3842_s0 + $0x124] ss:$8 sps:$4 sm:$0xff]   ;;  %v1985_v28 = vld [vmem:[%s3842_s0 + $0x120] ss:$8 sps:$4 sm:$0xff]   ;;  %v1989_v30 = vld [vmem:[%s3842_s0 + $0x134] ss:$8 sps:$4 sm:$0xff]  }
   0xb   :  { %536 = vmatprep.subr.bf16.mxu0 %v2045_v0  ;;  %1901 = vmatprep.subr.bf16.mxu1 %v2045_v0  ;;  %v1958_v31 = vld [vmem:[%s3842_s0 + $0x30] ss:$8 sps:$4 sm:$0xff]   ;;  %v1959_v33 = vld [vmem:[%s3842_s0 + $0x44] ss:$8 sps:$4 sm:$0xff]   ;;  %v1961_v35 = vld [vmem:[%s3842_s0 + $0x40] ss:$8 sps:$4 sm:$0xff]  }
   0xc   :  { %v1991_v32 = vld [vmem:[%s3842_s0 + $0x130] ss:$8 sps:$4 sm:$0xff]   ;;  %v1995_v34 = vld [vmem:[%s3842_s0 + $0x144] ss:$8 sps:$4 sm:$0xff]   ;;  %v1997_v36 = vld [vmem:[%s3842_s0 + $0x140] ss:$8 sps:$4 sm:$0xff]  }
   0xd   :  { %v1962_v37 = vld [vmem:[%s3842_s0 + $0x54] ss:$8 sps:$4 sm:$0xff]   ;;  %v1964_v39 = vld [vmem:[%s3842_s0 + $0x50] ss:$8 sps:$4 sm:$0xff]   ;;  %v1965_v41 = vld [vmem:[%s3842_s0 + $0x64] ss:$8 sps:$4 sm:$0xff]  }
   0xe   :  { %537 = vmatpush1.bf16.msra.mxu0 %v1934_v4  ;;  %1917 = vmatpush1.bf16.msra.mxu1 %v1934_v4  ;;  %v2001_v38 = vld [vmem:[%s3842_s0 + $0x154] ss:$8 sps:$4 sm:$0xff]   ;;  %v2003_v40 = vld [vmem:[%s3842_s0 + $0x150] ss:$8 sps:$4 sm:$0xff]   ;;  %v2007_v42 = vld [vmem:[%s3842_s0 + $0x164] ss:$8 sps:$4 sm:$0xff]  }
   0xf   :  { %538 = vmatprep.subr.bf16.mxu0 %v2045_v0  ;;  %1902 = vmatprep.subr.bf16.mxu1 %v2045_v0  ;;  %v1967_v43 = vld [vmem:[%s3842_s0 + $0x60] ss:$8 sps:$4 sm:$0xff]   ;;  %v1968_v45 = vld [vmem:[%s3842_s0 + $0x74] ss:$8 sps:$4 sm:$0xff]   ;;  %v1970_v47 = vld [vmem:[%s3842_s0 + $0x70] ss:$8 sps:$4 sm:$0xff]  }
  0x10   :  { %v2009_v44 = vld [vmem:[%s3842_s0 + $0x160] ss:$8 sps:$4 sm:$0xff]   ;;  %v2013_v46 = vld [vmem:[%s3842_s0 + $0x174] ss:$8 sps:$4 sm:$0xff]   ;;  %v2015_v48 = vld [vmem:[%s3842_s0 + $0x170] ss:$8 sps:$4 sm:$0xff]  }
  0x11   :  { %v1974_v49 = vld [vmem:[%s3842_s0 + $0x84] ss:$8 sps:$4 sm:$0xff]   ;;  %v1976_v51 = vld [vmem:[%s3842_s0 + $0x80] ss:$8 sps:$4 sm:$0xff]   ;;  %v1980_v53 = vld [vmem:[%s3842_s0 + $0x94] ss:$8 sps:$4 sm:$0xff]  }
  0x12   :  { %539 = vmatpush1.bf16.msra.mxu0 %v1935_v5  ;;  %1918 = vmatpush1.bf16.msra.mxu1 %v1935_v5  ;;  %v2019_v50 = vld [vmem:[%s3842_s0 + $0x184] ss:$8 sps:$4 sm:$0xff]   ;;  %v2021_v52 = vld [vmem:[%s3842_s0 + $0x180] ss:$8 sps:$4 sm:$0xff]   ;;  %v2022_v54 = vld [vmem:[%s3842_s0 + $0x194] ss:$8 sps:$4 sm:$0xff]  }
  0x13   :  { %540 = vmatprep.subr.bf16.mxu0 %v2045_v0  ;;  %1903 = vmatprep.subr.bf16.mxu1 %v2045_v0  ;;  %v1982_v55 = vld [vmem:[%s3842_s0 + $0x90] ss:$8 sps:$4 sm:$0xff]   ;;  %v1986_v57 = vld [vmem:[%s3842_s0 + $0xa4] ss:$8 sps:$4 sm:$0xff]   ;;  %v1988_v59 = vld [vmem:[%s3842_s0 + $0xa0] ss:$8 sps:$4 sm:$0xff]  }
  0x14   :  { %v2024_v56 = vld [vmem:[%s3842_s0 + $0x190] ss:$8 sps:$4 sm:$0xff]   ;;  %v2025_v58 = vld [vmem:[%s3842_s0 + $0x1a4] ss:$8 sps:$4 sm:$0xff]   ;;  %v2027_v60 = vld [vmem:[%s3842_s0 + $0x1a0] ss:$8 sps:$4 sm:$0xff]  }
  0x15   :  { %v1992_v61 = vld [vmem:[%s3842_s0 + $0xb4] ss:$8 sps:$4 sm:$0xff]   ;;  %v1994_v63 = vld [vmem:[%s3842_s0 + $0xb0] ss:$8 sps:$4 sm:$0xff]   ;;  %v1998_v1 = vld [vmem:[%s3842_s0 + $0xc4] ss:$8 sps:$4 sm:$0xff]  }
  0x16   :  { %541 = vmatpush1.bf16.msra.mxu0 %v1936_v7  ;;  %1919 = vmatpush1.bf16.msra.mxu1 %v1936_v7  ;;  %v2028_v62 = vld [vmem:[%s3842_s0 + $0x1b4] ss:$8 sps:$4 sm:$0xff]   ;;  %v2031_v2 = vld [vmem:[%s3842_s0 + $0x1c4] ss:$8 sps:$4 sm:$0xff]   ;;  %v2000_v3 = vld [vmem:[%s3842_s0 + $0xc0] ss:$8 sps:$4 sm:$0xff]  }
  0x17   :  { %542 = vmatprep.subr.bf16.mxu0 %v2045_v0  ;;  %1904 = vmatprep.subr.bf16.mxu1 %v2045_v0  ;;  %v2033_v4 = vld [vmem:[%s3842_s0 + $0x1c0] ss:$8 sps:$4 sm:$0xff]   ;;  %v2004_v5 = vld [vmem:[%s3842_s0 + $0xd4] ss:$8 sps:$4 sm:$0xff]   ;;  %v2006_v7 = vld [vmem:[%s3842_s0 + $0xd0] ss:$8 sps:$4 sm:$0xff]  }
  0x18   :  { %v2034_v6 = vld [vmem:[%s3842_s0 + $0x1d4] ss:$8 sps:$4 sm:$0xff]   ;;  %v2037_v10 = vld [vmem:[%s3842_s0 + $0x1e4] ss:$8 sps:$4 sm:$0xff]  }
  0x1a   :  { %543 = vmatpush1.bf16.msra.mxu0 %v1937_v8  ;;  %1920 = vmatpush1.bf16.msra.mxu1 %v1937_v8  ;;  %v2036_v8 = vld [vmem:[%s3842_s0 + $0x1d0] ss:$8 sps:$4 sm:$0xff]  }
  0x1b   :  { %544 = vmatprep.subr.bf16.mxu0 %v2045_v0  ;;  %1905 = vmatprep.subr.bf16.mxu1 %v2045_v0 }
  0x1e   :  { %545 = vmatpush1.bf16.msra.mxu0 %v1938_v9  ;;  %1921 = vmatpush1.bf16.msra.mxu1 %v1938_v9  ;;  %v2010_v9 = vld [vmem:[%s3842_s0 + $0xe4] ss:$8 sps:$4 sm:$0xff]  }
  0x1f   :  { %546 = vmatprep.subr.bf16.mxu0 %v2045_v0  ;;  %1906 = vmatprep.subr.bf16.mxu1 %v2045_v0 }
  0x22   :  { %547 = vmatpush1.bf16.msra.mxu0 %v1939_v11  ;;  %1922 = vmatpush1.bf16.msra.mxu1 %v1939_v11  ;;  %v2012_v11 = vld [vmem:[%s3842_s0 + $0xe0] ss:$8 sps:$4 sm:$0xff]  }
  0x23   :  { %548 = vmatprep.subr.bf16.mxu0 %v2045_v0  ;;  %1907 = vmatprep.subr.bf16.mxu1 %v2045_v0 }
  0x26   :  { %549 = vmatpush1.bf16.msra.mxu0 %v1940_v12  ;;  %1923 = vmatpush1.bf16.msra.mxu1 %v1940_v12  ;;  %v2039_v12 = vld [vmem:[%s3842_s0 + $0x1e0] ss:$8 sps:$4 sm:$0xff]  }
  0x27   :  { %550 = vmatprep.subr.bf16.mxu0 %v2045_v0  ;;  %1908 = vmatprep.subr.bf16.mxu1 %v2045_v0 }
  0x2a   :  { %551 = vmatpush1.bf16.msra.mxu0 %v1941_v13  ;;  %1924 = vmatpush1.bf16.msra.mxu1 %v1941_v13  ;;  %v2016_v13 = vld [vmem:[%s3842_s0 + $0xf4] ss:$8 sps:$4 sm:$0xff]  }
  0x2b   :  { %552 = vmatprep.subr.bf16.mxu0 %v2045_v0  ;;  %1909 = vmatprep.subr.bf16.mxu1 %v2045_v0 }
  0x2e   :  { %553 = vmatpush1.bf16.msra.mxu0 %v1942_v14  ;;  %1925 = vmatpush1.bf16.msra.mxu1 %v1942_v14  ;;  %v2040_v14 = vld [vmem:[%s3842_s0 + $0x1f4] ss:$8 sps:$4 sm:$0xff]  }
  0x2f   :  { %554 = vmatprep.subr.bf16.mxu0 %v2045_v0  ;;  %1910 = vmatprep.subr.bf16.mxu1 %v2045_v0 }
  0x32   :  { %555 = vmatpush1.bf16.msra.mxu0 %v1943_v15  ;;  %1926 = vmatpush1.bf16.msra.mxu1 %v1943_v15  ;;  %v2018_v15 = vld [vmem:[%s3842_s0 + $0xf0] ss:$8 sps:$4 sm:$0xff]  }
  0x33   :  { %556 = vmatprep.subr.bf16.mxu0 %v2045_v0  ;;  %1911 = vmatprep.subr.bf16.mxu1 %v2045_v0 }
  0x36   :  { %557 = vmatpush1.bf16.msra.mxu0 %v1944_v16  ;;  %1927 = vmatpush1.bf16.msra.mxu1 %v1944_v16  ;;  %v2042_v16 = vld [vmem:[%s3842_s0 + $0x1f0] ss:$8 sps:$4 sm:$0xff]  }
  0x37   :  { %558 = vmatprep.subr.bf16.mxu0 %v2045_v0  ;;  %1912 = vmatprep.subr.bf16.mxu1 %v2045_v0 }
  0x3a   :  { %559 = vmatpush1.bf16.msra.mxu0 %v1945_v17  ;;  %1928 = vmatpush1.bf16.msra.mxu1 %v1945_v17 }
  0x3b   :  { %560 = vmatprep.subr.bf16.mxu0 %v2045_v0  ;;  %1913 = vmatprep.subr.bf16.mxu1 %v2045_v0  ;;  %v2030_v0 = vld [vmem:[%s3842_s0 + $0x1b0] ss:$8 sps:$4 sm:$0xff]  }
  0x3e   :  { %561 = vmatpush1.bf16.msra.mxu0 %v1946_v18  ;;  %1929 = vmatpush1.bf16.msra.mxu1 %v1946_v18 }
  0x41   :  { %563 = vmatmul.mubr.bf16.vlgmr.msra.gmra.mrb[0].mxu0 %v1947_v19  ;;  %691 = vmatmul.mubr.bf16.vlgmr.msra.gmra.mrb[0].mxu1 %v1971_v20 }
  0x42   :  { %570 = vmatprep.mubr.bf16.mxu0 %v1950_v21  ;;  %698 = vmatprep.mubr.bf16.mxu1 %v1977_v22 }
  0x49   :  { %571 = vmatmul.mubr.bf16.gmra.mrb[4].mxu0 %v1952_v23  ;;  %699 = vmatmul.mubr.bf16.gmra.mrb[4].mxu1 %v1979_v24 }
  0x4a   :  { %578 = vmatprep.mubr.bf16.mxu0 %v1953_v25  ;;  %706 = vmatprep.mubr.bf16.mxu1 %v1983_v26 }
  0x51   :  { %579 = vmatmul.mubr.bf16.gmra.mrb[8].mxu0 %v1955_v27  ;;  %707 = vmatmul.mubr.bf16.gmra.mrb[8].mxu1 %v1985_v28 }
  0x52   :  { %586 = vmatprep.mubr.bf16.mxu0 %v1956_v29  ;;  %714 = vmatprep.mubr.bf16.mxu1 %v1989_v30 }
  0x59   :  { %587 = vmatmul.mubr.bf16.gmra.mrb[12].mxu0 %v1958_v31  ;;  %715 = vmatmul.mubr.bf16.gmra.mrb[12].mxu1 %v1991_v32 }
  0x5a   :  { %594 = vmatprep.mubr.bf16.mxu0 %v1959_v33  ;;  %722 = vmatprep.mubr.bf16.mxu1 %v1995_v34 }
  0x61   :  { %595 = vmatmul.mubr.bf16.gmra.mrb[16].mxu0 %v1961_v35  ;;  %723 = vmatmul.mubr.bf16.gmra.mrb[16].mxu1 %v1997_v36 }
  0x62   :  { %602 = vmatprep.mubr.bf16.mxu0 %v1962_v37  ;;  %730 = vmatprep.mubr.bf16.mxu1 %v2001_v38 }
  0x69   :  { %603 = vmatmul.mubr.bf16.gmra.mrb[20].mxu0 %v1964_v39  ;;  %731 = vmatmul.mubr.bf16.gmra.mrb[20].mxu1 %v2003_v40 }
  0x6a   :  { %610 = vmatprep.mubr.bf16.mxu0 %v1965_v41  ;;  %738 = vmatprep.mubr.bf16.mxu1 %v2007_v42 }
  0x71   :  { %611 = vmatmul.mubr.bf16.gmra.mrb[24].mxu0 %v1967_v43  ;;  %739 = vmatmul.mubr.bf16.gmra.mrb[24].mxu1 %v2009_v44 }
  0x72   :  { %618 = vmatprep.mubr.bf16.mxu0 %v1968_v45  ;;  %746 = vmatprep.mubr.bf16.mxu1 %v2013_v46 }
  0x79   :  { %619 = vmatmul.mubr.bf16.gmra.mrb[28].mxu0 %v1970_v47  ;;  %747 = vmatmul.mubr.bf16.gmra.mrb[28].mxu1 %v2015_v48 }
  0x7a   :  { %626 = vmatprep.mubr.bf16.mxu0 %v1974_v49  ;;  %754 = vmatprep.mubr.bf16.mxu1 %v2019_v50 }
  0x81   :  { %627 = vmatmul.mubr.bf16.gmra.mrb[32].mxu0 %v1976_v51  ;;  %755 = vmatmul.mubr.bf16.gmra.mrb[32].mxu1 %v2021_v52 }
  0x82   :  { %634 = vmatprep.mubr.bf16.mxu0 %v1980_v53  ;;  %762 = vmatprep.mubr.bf16.mxu1 %v2022_v54 }
  0x89   :  { %635 = vmatmul.mubr.bf16.gmra.mrb[36].mxu0 %v1982_v55  ;;  %763 = vmatmul.mubr.bf16.gmra.mrb[36].mxu1 %v2024_v56 }
  0x8a   :  { %642 = vmatprep.mubr.bf16.mxu0 %v1986_v57  ;;  %770 = vmatprep.mubr.bf16.mxu1 %v2025_v58 }
  0x91   :  { %643 = vmatmul.mubr.bf16.gmra.mrb[40].mxu0 %v1988_v59  ;;  %771 = vmatmul.mubr.bf16.gmra.mrb[40].mxu1 %v2027_v60 }
  0x92   :  { %650 = vmatprep.mubr.bf16.mxu0 %v1992_v61  ;;  %778 = vmatprep.mubr.bf16.mxu1 %v2028_v62 }
  0x99   :  { %651 = vmatmul.mubr.bf16.gmra.mrb[44].mxu0 %v1994_v63  ;;  %779 = vmatmul.mubr.bf16.gmra.mrb[44].mxu1 %v2030_v0 }
  0x9a   :  { %658 = vmatprep.mubr.bf16.mxu0 %v1998_v1  ;;  %786 = vmatprep.mubr.bf16.mxu1 %v2031_v2 }
  0xa1   :  { %659 = vmatmul.mubr.bf16.gmra.mrb[48].mxu0 %v2000_v3  ;;  %787 = vmatmul.mubr.bf16.gmra.mrb[48].mxu1 %v2033_v4 }
  0xa2   :  { %666 = vmatprep.mubr.bf16.mxu0 %v2004_v5  ;;  %794 = vmatprep.mubr.bf16.mxu1 %v2034_v6 }
  0xa9   :  { %667 = vmatmul.mubr.bf16.gmra.mrb[52].mxu0 %v2006_v7  ;;  %795 = vmatmul.mubr.bf16.gmra.mrb[52].mxu1 %v2036_v8 }
  0xaa   :  { %674 = vmatprep.mubr.bf16.mxu0 %v2010_v9  ;;  %802 = vmatprep.mubr.bf16.mxu1 %v2037_v10 }
  0xb1   :  { %675 = vmatmul.mubr.bf16.gmra.mrb[56].mxu0 %v2012_v11  ;;  %803 = vmatmul.mubr.bf16.gmra.mrb[56].mxu1 %v2039_v12 }
  0xb2   :  { %682 = vmatprep.mubr.bf16.mxu0 %v2016_v13  ;;  %810 = vmatprep.mubr.bf16.mxu1 %v2040_v14 }
  0xb9   :  { %683 = vmatmul.mubr.bf16.gmra.mrb[60].mxu0 %v2018_v15  ;;  %811 = vmatmul.mubr.bf16.gmra.mrb[60].mxu1 %v2042_v16 }
 0x114   :  { %v2343_v17 = vpop.f32.mrb[0].mxu0  ;;  %v2345_v18 = vpop.f32.mrb[0].mxu1 }
 0x115   :  { %v953_v19 = vmul.f32 %v2343_v17, %v2343_v17  ;;  %v566_v20 = vpop.f32.mrb[1].mxu0  ;;  %v694_v21 = vpop.f32.mrb[1].mxu1  ;;  %v820_v24 = vsel %vm819_vm0, %v2343_v17, 0.0 }
 0x116   :  { %v2349_v22 = vpop.f32.mrb[2].mxu0  ;;  %v2351_v23 = vpop.f32.mrb[2].mxu1 }
 0x117   :  { %v821_v25 = vsel %vm819_vm0, %v2349_v22, 0.0  ;;  %v954_v26 = vmul.f32 %v2349_v22, %v2349_v22  ;;  %v569_v27 = vpop.f32.mrb[3].mxu0  ;;  %v697_v28 = vpop.f32.mrb[3].mxu1  ;;  %v1017_v30 = vsel %vm819_vm0, %v953_v19, 0.0 }
 0x118   :  { %v822_v29 = vadd.f32 %v821_v25, %v820_v24 }
 0x119   :  { %v1018_v31 = vsel %vm819_vm0, %v954_v26, 0.0 }
 0x11a   :  { %v1019_v32 = vadd.f32 %v1018_v31, %v1017_v30 }
 0x11c   :  { %v2361_v33 = vpop.f32.mrb[4].mxu0  ;;  %v2363_v34 = vpop.f32.mrb[4].mxu1 }
 0x11d   :  { %v823_v35 = vsel %vm819_vm0, %v2361_v33, 0.0  ;;  %v955_v36 = vmul.f32 %v2361_v33, %v2361_v33  ;;  %v574_v37 = vpop.f32.mrb[5].mxu0  ;;  %v702_v38 = vpop.f32.mrb[5].mxu1 }
 0x11e   :  { %v824_v39 = vadd.f32 %v823_v35, %v822_v29  ;;  %v2369_v40 = vpop.f32.mrb[6].mxu0  ;;  %v2371_v41 = vpop.f32.mrb[6].mxu1 }
 0x11f   :  { %v1020_v42 = vsel %vm819_vm0, %v955_v36, 0.0  ;;  %v825_v43 = vsel %vm819_vm0, %v2369_v40, 0.0  ;;  %v956_v44 = vmul.f32 %v2369_v40, %v2369_v40  ;;  %v577_v45 = vpop.f32.mrb[7].mxu0  ;;  %v705_v46 = vpop.f32.mrb[7].mxu1 }
 0x120   :  { %v1021_v47 = vadd.f32 %v1020_v42, %v1019_v32  ;;  %v826_v48 = vadd.f32 %v825_v43, %v824_v39 }
 0x121   :  { %v1022_v49 = vsel %vm819_vm0, %v956_v44, 0.0 }
 0x122   :  { %v1023_v50 = vadd.f32 %v1022_v49, %v1021_v47 }
 0x124   :  { %v2379_v51 = vpop.f32.mrb[8].mxu0  ;;  %v2381_v52 = vpop.f32.mrb[8].mxu1 }
 0x125   :  { %v827_v53 = vsel %vm819_vm0, %v2379_v51, 0.0  ;;  %v957_v54 = vmul.f32 %v2379_v51, %v2379_v51  ;;  %v582_v55 = vpop.f32.mrb[9].mxu0  ;;  %v710_v56 = vpop.f32.mrb[9].mxu1 }
 0x126   :  { %v828_v57 = vadd.f32 %v827_v53, %v826_v48  ;;  %v2387_v58 = vpop.f32.mrb[10].mxu0  ;;  %v2389_v59 = vpop.f32.mrb[10].mxu1 }
 0x127   :  { %v1024_v60 = vsel %vm819_vm0, %v957_v54, 0.0  ;;  %v829_v61 = vsel %vm819_vm0, %v2387_v58, 0.0  ;;  %v958_v62 = vmul.f32 %v2387_v58, %v2387_v58  ;;  %v585_v63 = vpop.f32.mrb[11].mxu0  ;;  %v713_v0 = vpop.f32.mrb[11].mxu1 }
 0x128   :  { %v1025_v1 = vadd.f32 %v1024_v60, %v1023_v50  ;;  %v830_v2 = vadd.f32 %v829_v61, %v828_v57 }
 0x129   :  { %v1026_v3 = vsel %vm819_vm0, %v958_v62, 0.0 }
 0x12a   :  { %v1027_v4 = vadd.f32 %v1026_v3, %v1025_v1 }
 0x12c   :  { %v2397_v5 = vpop.f32.mrb[12].mxu0  ;;  %v2399_v6 = vpop.f32.mrb[12].mxu1 }
 0x12d   :  { %v831_v7 = vsel %vm819_vm0, %v2397_v5, 0.0  ;;  %v959_v8 = vmul.f32 %v2397_v5, %v2397_v5  ;;  %v590_v9 = vpop.f32.mrb[13].mxu0  ;;  %v718_v10 = vpop.f32.mrb[13].mxu1 }
 0x12e   :  { %v832_v11 = vadd.f32 %v831_v7, %v830_v2  ;;  %v2405_v12 = vpop.f32.mrb[14].mxu0  ;;  %v2407_v13 = vpop.f32.mrb[14].mxu1 }
 0x12f   :  { %v1028_v14 = vsel %vm819_vm0, %v959_v8, 0.0  ;;  %v833_v15 = vsel %vm819_vm0, %v2405_v12, 0.0  ;;  %v960_v16 = vmul.f32 %v2405_v12, %v2405_v12  ;;  %v593_v19 = vpop.f32.mrb[15].mxu0  ;;  %v721_v20 = vpop.f32.mrb[15].mxu1 }
 0x130   :  { %v1029_v21 = vadd.f32 %v1028_v14, %v1027_v4  ;;  %v834_v24 = vadd.f32 %v833_v15, %v832_v11 }
 0x131   :  { %v1030_v25 = vsel %vm819_vm0, %v960_v16, 0.0 }
 0x132   :  { %v1031_v26 = vadd.f32 %v1030_v25, %v1029_v21 }
 0x134   :  { %v2415_v27 = vpop.f32.mrb[16].mxu0  ;;  %v2417_v28 = vpop.f32.mrb[16].mxu1 }
 0x135   :  { %v835_v29 = vsel %vm819_vm0, %v2415_v27, 0.0  ;;  %v961_v30 = vmul.f32 %v2415_v27, %v2415_v27  ;;  %v598_v31 = vpop.f32.mrb[17].mxu0  ;;  %v726_v32 = vpop.f32.mrb[17].mxu1 }
 0x136   :  { %v836_v35 = vadd.f32 %v835_v29, %v834_v24  ;;  %v2423_v36 = vpop.f32.mrb[18].mxu0  ;;  %v2425_v37 = vpop.f32.mrb[18].mxu1 }
 0x137   :  { %v1032_v38 = vsel %vm819_vm0, %v961_v30, 0.0  ;;  %v837_v39 = vsel %vm819_vm0, %v2423_v36, 0.0  ;;  %v962_v42 = vmul.f32 %v2423_v36, %v2423_v36  ;;  %v601_v43 = vpop.f32.mrb[19].mxu0  ;;  %v729_v44 = vpop.f32.mrb[19].mxu1 }
 0x138   :  { %v1033_v45 = vadd.f32 %v1032_v38, %v1031_v26  ;;  %v838_v46 = vadd.f32 %v837_v39, %v836_v35 }
 0x139   :  { %v1034_v47 = vsel %vm819_vm0, %v962_v42, 0.0 }
 0x13a   :  { %v1035_v48 = vadd.f32 %v1034_v47, %v1033_v45 }
 0x13c   :  { %v2433_v49 = vpop.f32.mrb[20].mxu0  ;;  %v2435_v50 = vpop.f32.mrb[20].mxu1 }
 0x13d   :  { %v839_v53 = vsel %vm819_vm0, %v2433_v49, 0.0  ;;  %v963_v54 = vmul.f32 %v2433_v49, %v2433_v49  ;;  %v606_v55 = vpop.f32.mrb[21].mxu0  ;;  %v734_v56 = vpop.f32.mrb[21].mxu1 }
 0x13e   :  { %v840_v57 = vadd.f32 %v839_v53, %v838_v46  ;;  %v2441_v60 = vpop.f32.mrb[22].mxu0  ;;  %v2443_v61 = vpop.f32.mrb[22].mxu1 }
 0x13f   :  { %v1036_v62 = vsel %vm819_vm0, %v963_v54, 0.0  ;;  %v841_v63 = vsel %vm819_vm0, %v2441_v60, 0.0  ;;  %v964_v0 = vmul.f32 %v2441_v60, %v2441_v60  ;;  %v609_v1 = vpop.f32.mrb[23].mxu0  ;;  %v737_v2 = vpop.f32.mrb[23].mxu1 }
 0x140   :  { %v1037_v3 = vadd.f32 %v1036_v62, %v1035_v48  ;;  %v842_v4 = vadd.f32 %v841_v63, %v840_v57 }
 0x141   :  { %v1038_v7 = vsel %vm819_vm0, %v964_v0, 0.0 }
 0x142   :  { %v1039_v8 = vadd.f32 %v1038_v7, %v1037_v3 }
 0x144   :  { %v2451_v9 = vpop.f32.mrb[24].mxu0  ;;  %v2453_v10 = vpop.f32.mrb[24].mxu1 }
 0x145   :  { %v843_v11 = vsel %vm819_vm0, %v2451_v9, 0.0  ;;  %v965_v14 = vmul.f32 %v2451_v9, %v2451_v9  ;;  %v614_v15 = vpop.f32.mrb[25].mxu0  ;;  %v742_v16 = vpop.f32.mrb[25].mxu1 }
 0x146   :  { %v844_v19 = vadd.f32 %v843_v11, %v842_v4  ;;  %v2459_v20 = vpop.f32.mrb[26].mxu0  ;;  %v2461_v21 = vpop.f32.mrb[26].mxu1 }
 0x147   :  { %v1040_v24 = vsel %vm819_vm0, %v965_v14, 0.0  ;;  %v845_v25 = vsel %vm819_vm0, %v2459_v20, 0.0  ;;  %v966_v26 = vmul.f32 %v2459_v20, %v2459_v20  ;;  %v617_v29 = vpop.f32.mrb[27].mxu0  ;;  %v745_v30 = vpop.f32.mrb[27].mxu1 }
 0x148   :  { %v1041_v31 = vadd.f32 %v1040_v24, %v1039_v8  ;;  %v846_v32 = vadd.f32 %v845_v25, %v844_v19 }
 0x149   :  { %v1042_v35 = vsel %vm819_vm0, %v966_v26, 0.0 }
 0x14a   :  { %v1043_v38 = vadd.f32 %v1042_v35, %v1041_v31 }
 0x14c   :  { %v2469_v39 = vpop.f32.mrb[28].mxu0  ;;  %v2471_v42 = vpop.f32.mrb[28].mxu1 }
 0x14d   :  { %3888 = vst [vmem:[#allocation2_spill] sm:$0xff] %v2469_v39  ;;  %v847_v43 = vsel %vm819_vm0, %v2469_v39, 0.0  ;;  %v967_v44 = vmul.f32 %v2469_v39, %v2469_v39  ;;  %v622_v45 = vpop.f32.mrb[29].mxu0  ;;  %v750_v46 = vpop.f32.mrb[29].mxu1  ;;  %v885_v39 = vsel %vm819_vm0, %v2351_v23, 0.0 }
 0x14e   :  { %v848_v47 = vadd.f32 %v847_v43, %v846_v32  ;;  %v2477_v48 = vpop.f32.mrb[30].mxu0  ;;  %v2479_v53 = vpop.f32.mrb[30].mxu1 }
 0x14f   :  { %3889 = vst [vmem:[#allocation3_spill] sm:$0xff] %v2477_v48  ;;  %v1044_v54 = vsel %vm819_vm0, %v967_v44, 0.0  ;;  %v849_v55 = vsel %vm819_vm0, %v2477_v48, 0.0  ;;  %v968_v56 = vmul.f32 %v2477_v48, %v2477_v48  ;;  %v625_v57 = vpop.f32.mrb[31].mxu0  ;;  %v753_v62 = vpop.f32.mrb[31].mxu1 }
 0x150   :  { %v1045_v63 = vadd.f32 %v1044_v54, %v1043_v38  ;;  %v850_v0 = vadd.f32 %v849_v55, %v848_v47 }
 0x151   :  { %v1046_v1 = vsel %vm819_vm0, %v968_v56, 0.0 }
 0x152   :  { %v1047_v2 = vadd.f32 %v1046_v1, %v1045_v63 }
 0x154   :  { %v2487_v3 = vpop.f32.mrb[32].mxu0  ;;  %v2489_v4 = vpop.f32.mrb[32].mxu1 }
 0x155   :  { %3890 = vst [vmem:[#allocation4_spill] sm:$0xff] %v2487_v3  ;;  %v851_v7 = vsel %vm819_vm0, %v2487_v3, 0.0  ;;  %v969_v8 = vmul.f32 %v2487_v3, %v2487_v3  ;;  %v630_v11 = vpop.f32.mrb[33].mxu0  ;;  %v758_v14 = vpop.f32.mrb[33].mxu1 }
 0x156   :  { %v852_v15 = vadd.f32 %v851_v7, %v850_v0  ;;  %v2495_v16 = vpop.f32.mrb[34].mxu0  ;;  %v2497_v19 = vpop.f32.mrb[34].mxu1 }
 0x157   :  { %3891 = vst [vmem:[#allocation5_spill] sm:$0xff] %v2495_v16  ;;  %v1048_v24 = vsel %vm819_vm0, %v969_v8, 0.0  ;;  %v853_v25 = vsel %vm819_vm0, %v2495_v16, 0.0  ;;  %v970_v26 = vmul.f32 %v2495_v16, %v2495_v16  ;;  %v633_v29 = vpop.f32.mrb[35].mxu0  ;;  %v761_v30 = vpop.f32.mrb[35].mxu1 }
 0x158   :  { %v1049_v31 = vadd.f32 %v1048_v24, %v1047_v2  ;;  %v854_v32 = vadd.f32 %v853_v25, %v852_v15 }
 0x159   :  { %v1050_v35 = vsel %vm819_vm0, %v970_v26, 0.0 }
 0x15a   :  { %v1051_v38 = vadd.f32 %v1050_v35, %v1049_v31 }
 0x15c   :  { %v2505_v43 = vpop.f32.mrb[36].mxu0  ;;  %v2507_v44 = vpop.f32.mrb[36].mxu1 }
 0x15d   :  { %3892 = vst [vmem:[#allocation6_spill] sm:$0xff] %v2505_v43  ;;  %v855_v45 = vsel %vm819_vm0, %v2505_v43, 0.0  ;;  %v971_v46 = vmul.f32 %v2505_v43, %v2505_v43  ;;  %v638_v47 = vpop.f32.mrb[37].mxu0  ;;  %v766_v54 = vpop.f32.mrb[37].mxu1 }
 0x15e   :  { %v856_v55 = vadd.f32 %v855_v45, %v854_v32  ;;  %v2513_v56 = vpop.f32.mrb[38].mxu0  ;;  %v2515_v57 = vpop.f32.mrb[38].mxu1 }
 0x15f   :  { %3893 = vst [vmem:[#allocation7_spill] sm:$0xff] %v2513_v56  ;;  %v1052_v62 = vsel %vm819_vm0, %v971_v46, 0.0  ;;  %v857_v63 = vsel %vm819_vm0, %v2513_v56, 0.0  ;;  %v972_v0 = vmul.f32 %v2513_v56, %v2513_v56  ;;  %v641_v1 = vpop.f32.mrb[39].mxu0  ;;  %v769_v2 = vpop.f32.mrb[39].mxu1 }
 0x160   :  { %v1053_v7 = vadd.f32 %v1052_v62, %v1051_v38  ;;  %v858_v8 = vadd.f32 %v857_v63, %v856_v55 }
 0x161   :  { %v1054_v11 = vsel %vm819_vm0, %v972_v0, 0.0 }
 0x162   :  { %v1055_v14 = vadd.f32 %v1054_v11, %v1053_v7 }
 0x164   :  { %v2523_v15 = vpop.f32.mrb[40].mxu0  ;;  %v2525_v24 = vpop.f32.mrb[40].mxu1 }
 0x165   :  { %3894 = vst [vmem:[#allocation8_spill] sm:$0xff] %v2523_v15  ;;  %v859_v25 = vsel %vm819_vm0, %v2523_v15, 0.0  ;;  %v973_v26 = vmul.f32 %v2523_v15, %v2523_v15  ;;  %v646_v29 = vpop.f32.mrb[41].mxu0  ;;  %v774_v30 = vpop.f32.mrb[41].mxu1 }
 0x166   :  { %v860_v31 = vadd.f32 %v859_v25, %v858_v8  ;;  %v2531_v32 = vpop.f32.mrb[42].mxu0  ;;  %v2533_v35 = vpop.f32.mrb[42].mxu1 }
 0x167   :  { %3895 = vst [vmem:[#allocation9_spill] sm:$0xff] %v2531_v32  ;;  %v1056_v38 = vsel %vm819_vm0, %v973_v26, 0.0  ;;  %v861_v45 = vsel %vm819_vm0, %v2531_v32, 0.0  ;;  %v974_v46 = vmul.f32 %v2531_v32, %v2531_v32  ;;  %v649_v47 = vpop.f32.mrb[43].mxu0  ;;  %v777_v54 = vpop.f32.mrb[43].mxu1 }
 0x168   :  { %v1057_v55 = vadd.f32 %v1056_v38, %v1055_v14  ;;  %v862_v62 = vadd.f32 %v861_v45, %v860_v31 }
 0x169   :  { %v1058_v63 = vsel %vm819_vm0, %v974_v46, 0.0 }
 0x16a   :  { %v1059_v0 = vadd.f32 %v1058_v63, %v1057_v55 }
 0x16c   :  { %v2541_v1 = vpop.f32.mrb[44].mxu0  ;;  %v2543_v2 = vpop.f32.mrb[44].mxu1 }
 0x16d   :  { %3896 = vst [vmem:[#allocation10_spill] sm:$0xff] %v2541_v1  ;;  %v863_v7 = vsel %vm819_vm0, %v2541_v1, 0.0  ;;  %v975_v8 = vmul.f32 %v2541_v1, %v2541_v1  ;;  %v654_v11 = vpop.f32.mrb[45].mxu0  ;;  %v782_v25 = vpop.f32.mrb[45].mxu1 }
 0x16e   :  { %v864_v26 = vadd.f32 %v863_v7, %v862_v62  ;;  %v2549_v29 = vpop.f32.mrb[46].mxu0  ;;  %v2551_v14 = vpop.f32.mrb[46].mxu1 }
 0x16f   :  { %3897 = vst [vmem:[#allocation11_spill] sm:$0xff] %v2549_v29  ;;  %v1060_v30 = vsel %vm819_vm0, %v975_v8, 0.0  ;;  %v865_v31 = vsel %vm819_vm0, %v2549_v29, 0.0  ;;  %v976_v38 = vmul.f32 %v2549_v29, %v2549_v29  ;;  %v657_v45 = vpop.f32.mrb[47].mxu0  ;;  %v785_v46 = vpop.f32.mrb[47].mxu1 }
 0x170   :  { %v1061_v47 = vadd.f32 %v1060_v30, %v1059_v0  ;;  %v866_v54 = vadd.f32 %v865_v31, %v864_v26 }
 0x171   :  { %v1062_v55 = vsel %vm819_vm0, %v976_v38, 0.0 }
 0x172   :  { %v1063_v63 = vadd.f32 %v1062_v55, %v1061_v47 }
 0x174   :  { %v2559_v62 = vpop.f32.mrb[48].mxu0  ;;  %v2561_v7 = vpop.f32.mrb[48].mxu1 }
 0x175   :  { %3898 = vst [vmem:[#allocation12_spill] sm:$0xff] %v2559_v62  ;;  %v867_v8 = vsel %vm819_vm0, %v2559_v62, 0.0  ;;  %v977_v11 = vmul.f32 %v2559_v62, %v2559_v62  ;;  %v662_v25 = vpop.f32.mrb[49].mxu0  ;;  %v790_v1 = vpop.f32.mrb[49].mxu1 }
 0x176   :  { %v868_v29 = vadd.f32 %v867_v8, %v866_v54  ;;  %v2567_v45 = vpop.f32.mrb[50].mxu0  ;;  %v2569_v0 = vpop.f32.mrb[50].mxu1 }
 0x177   :  { %3899 = vst [vmem:[#allocation13_spill] sm:$0xff] %v2567_v45  ;;  %3900 = vst [vmem:[#allocation14_spill] sm:$0xff] %v2569_v0  ;;  %v1064_v26 = vsel %vm819_vm0, %v977_v11, 0.0  ;;  %v869_v30 = vsel %vm819_vm0, %v2567_v45, 0.0  ;;  %v978_v31 = vmul.f32 %v2567_v45, %v2567_v45  ;;  %v665_v38 = vpop.f32.mrb[51].mxu0  ;;  %v793_v46 = vpop.f32.mrb[51].mxu1 }
 0x178   :  { %v1065_v47 = vadd.f32 %v1064_v26, %v1063_v63  ;;  %v870_v55 = vadd.f32 %v869_v30, %v868_v29 }
 0x179   :  { %v1066_v25 = vsel %vm819_vm0, %v978_v31, 0.0 }
 0x17a   :  { %v1067_v1 = vadd.f32 %v1066_v25, %v1065_v47 }
 0x17c   :  { %v2577_v54 = vpop.f32.mrb[52].mxu0  ;;  %v2579_v8 = vpop.f32.mrb[52].mxu1 }
 0x17d   :  { %3901 = vst [vmem:[#allocation15_spill] sm:$0xff] %v2577_v54  ;;  %3902 = vst [vmem:[#allocation16_spill] sm:$0xff] %v2579_v8  ;;  %v871_v11 = vsel %vm819_vm0, %v2577_v54, 0.0  ;;  %v979_v62 = vmul.f32 %v2577_v54, %v2577_v54  ;;  %v670_v32 = vpop.f32.mrb[53].mxu0  ;;  %v798_v15 = vpop.f32.mrb[53].mxu1 }
 0x17e   :  { %v872_v45 = vadd.f32 %v871_v11, %v870_v55  ;;  %v2585_v38 = vpop.f32.mrb[54].mxu0  ;;  %v2587_v63 = vpop.f32.mrb[54].mxu1 }
 0x17f   :  { %3903 = vst [vmem:[#allocation17_spill] sm:$0xff] %v2585_v38  ;;  %3904 = vst [vmem:[#allocation18_spill] sm:$0xff] %v2587_v63  ;;  %v1068_v29 = vsel %vm819_vm0, %v979_v62, 0.0  ;;  %v873_v26 = vsel %vm819_vm0, %v2585_v38, 0.0  ;;  %v980_v30 = vmul.f32 %v2585_v38, %v2585_v38  ;;  %v673_v31 = vpop.f32.mrb[55].mxu0  ;;  %v801_v46 = vpop.f32.mrb[55].mxu1 }
 0x180   :  { %v1069_v47 = vadd.f32 %v1068_v29, %v1067_v1  ;;  %v874_v25 = vadd.f32 %v873_v26, %v872_v45 }
 0x181   :  { %v1070_v32 = vsel %vm819_vm0, %v980_v30, 0.0 }
 0x182   :  { %v1071_v15 = vadd.f32 %v1070_v32, %v1069_v47 }
 0x184   :  { %v2595_v55 = vpop.f32.mrb[56].mxu0  ;;  %v2597_v11 = vpop.f32.mrb[56].mxu1 }
 0x185   :  { %3905 = vst [vmem:[#allocation19_spill] sm:$0xff] %v2595_v55  ;;  %3906 = vst [vmem:[#allocation20_spill] sm:$0xff] %v2597_v11  ;;  %v875_v62 = vsel %vm819_vm0, %v2595_v55, 0.0  ;;  %v981_v54 = vmul.f32 %v2595_v55, %v2595_v55  ;;  %v678_v56 = vpop.f32.mrb[57].mxu0  ;;  %v806_v43 = vpop.f32.mrb[57].mxu1 }
 0x186   :  { %v876_v38 = vadd.f32 %v875_v62, %v874_v25  ;;  %v2603_v31 = vpop.f32.mrb[58].mxu0  ;;  %v2605_v1 = vpop.f32.mrb[58].mxu1 }
 0x187   :  { %3907 = vst [vmem:[#allocation21_spill] sm:$0xff] %v2603_v31  ;;  %3908 = vst [vmem:[#allocation22_spill] sm:$0xff] %v2605_v1  ;;  %v1072_v45 = vsel %vm819_vm0, %v981_v54, 0.0  ;;  %v877_v29 = vsel %vm819_vm0, %v2603_v31, 0.0  ;;  %v982_v26 = vmul.f32 %v2603_v31, %v2603_v31  ;;  %v681_v30 = vpop.f32.mrb[59].mxu0  ;;  %v809_v46 = vpop.f32.mrb[59].mxu1 }
 0x188   :  { %v1073_v47 = vadd.f32 %v1072_v45, %v1071_v15  ;;  %v878_v32 = vadd.f32 %v877_v29, %v876_v38  ;;  %v985_v38 = vmul.f32 %v2345_v18, %v2345_v18 }
 0x189   :  { %v1074_v56 = vsel %vm819_vm0, %v982_v26, 0.0 }
 0x18a   :  { %v1075_v43 = vadd.f32 %v1074_v56, %v1073_v47  ;;  %v986_v56 = vmul.f32 %v2351_v23, %v2351_v23  ;;  %v1080_v48 = vsel %vm819_vm0, %v985_v38, 0.0 }
 0x18c   :  { %v2613_v25 = vpop.f32.mrb[60].mxu0  ;;  %v2615_v62 = vpop.f32.mrb[60].mxu1 }
 0x18d   :  { %3909 = vst [vmem:[#allocation23_spill] sm:$0xff] %v2613_v25  ;;  %3910 = vst [vmem:[#allocation24_spill] sm:$0xff] %v2615_v62  ;;  %v879_v54 = vsel %vm819_vm0, %v2613_v25, 0.0  ;;  %v983_v55 = vmul.f32 %v2613_v25, %v2613_v25  ;;  %v686_v16 = vpop.f32.mrb[61].mxu0  ;;  %v814_v3 = vpop.f32.mrb[61].mxu1 }
 0x18e   :  { %v880_v31 = vadd.f32 %v879_v54, %v878_v32  ;;  %v2621_v30 = vpop.f32.mrb[62].mxu0  ;;  %v2623_v15 = vpop.f32.mrb[62].mxu1  ;;  %v883_v32 = vsel %vm819_vm0, %v2345_v18, 0.0 }
 0x18f   :  { %3911 = vst [vmem:[#allocation25_spill] sm:$0xff] %v2623_v15  ;;  %v1076_v45 = vsel %vm819_vm0, %v983_v55, 0.0  ;;  %v881_v29 = vsel %vm819_vm0, %v2621_v30, 0.0  ;;  %v984_v26 = vmul.f32 %v2621_v30, %v2621_v30  ;;  %v689_v46 = vpop.f32.mrb[63].mxu0  ;;  %v817_v47 = vpop.f32.mrb[63].mxu1 }
 0x190   :  { %v1077_v16 = vadd.f32 %v1076_v45, %v1075_v43  ;;  %v882_v3 = vadd.f32 %v881_v29, %v880_v31  ;;  %v987_v46 = vmul.f32 %v2363_v34, %v2363_v34  ;;  %v1082_v45 = vsel %vm819_vm0, %v986_v56, 0.0 }
 0x191   :  { %v1078_v54 = vsel %vm819_vm0, %v984_v26, 0.0  ;;  %v887_v29 = vsel %vm819_vm0, %v2363_v34, 0.0  ;;  %v988_v26 = vmul.f32 %v2371_v41, %v2371_v41  ;;  %v891_v56 = vsel %vm819_vm0, %v2381_v52, 0.0 }
 0x192   :  { %v884_v25 = vadd.f32 %v883_v32, %v882_v3  ;;  %v1079_v55 = vadd.f32 %v1078_v54, %v1077_v16  ;;  %v1084_v38 = vsel %vm819_vm0, %v987_v46, 0.0  ;;  %v889_v3 = vsel %vm819_vm0, %v2371_v41, 0.0 }
 0x193   :  { %v989_v32 = vmul.f32 %v2381_v52, %v2381_v52  ;;  %v990_v54 = vmul.f32 %v2389_v59, %v2389_v59 }
 0x194   :  { %v886_v43 = vadd.f32 %v885_v39, %v884_v25  ;;  %v1081_v31 = vadd.f32 %v1080_v48, %v1079_v55  ;;  %v1086_v25 = vsel %vm819_vm0, %v988_v26, 0.0 }
 0x195   :  { %v1088_v46 = vsel %vm819_vm0, %v989_v32, 0.0  ;;  %v1090_v26 = vsel %vm819_vm0, %v990_v54, 0.0 }
 0x196   :  { %v888_v47 = vadd.f32 %v887_v29, %v886_v43  ;;  %v1083_v16 = vadd.f32 %v1082_v45, %v1081_v31  ;;  %v893_v31 = vsel %vm819_vm0, %v2389_v59, 0.0  ;;  %v991_v45 = vmul.f32 %v2399_v6, %v2399_v6 }
 0x198   :  { %v890_v39 = vadd.f32 %v889_v3, %v888_v47  ;;  %v1085_v48 = vadd.f32 %v1084_v38, %v1083_v16  ;;  %v895_v16 = vsel %vm819_vm0, %v2399_v6, 0.0  ;;  %v992_v38 = vmul.f32 %v2407_v13, %v2407_v13 }
 0x199   :  { %v1092_v32 = vsel %vm819_vm0, %v991_v45, 0.0 }
 0x19a   :  { %v892_v55 = vadd.f32 %v891_v56, %v890_v39  ;;  %v1087_v43 = vadd.f32 %v1086_v25, %v1085_v48  ;;  %v897_v48 = vsel %vm819_vm0, %v2407_v13, 0.0  ;;  %v993_v25 = vmul.f32 %v2417_v28, %v2417_v28 }
 0x19b   :  { %v1094_v54 = vsel %vm819_vm0, %v992_v38, 0.0 }
 0x19c   :  { %v894_v29 = vadd.f32 %v893_v31, %v892_v55  ;;  %v1089_v47 = vadd.f32 %v1088_v46, %v1087_v43  ;;  %v899_v43 = vsel %vm819_vm0, %v2417_v28, 0.0  ;;  %v994_v46 = vmul.f32 %v2425_v37, %v2425_v37 }
 0x19d   :  { %v1096_v45 = vsel %vm819_vm0, %v993_v25, 0.0 }
 0x19e   :  { %v896_v3 = vadd.f32 %v895_v16, %v894_v29  ;;  %v1091_v39 = vadd.f32 %v1090_v26, %v1089_v47  ;;  %v901_v47 = vsel %vm819_vm0, %v2425_v37, 0.0  ;;  %v995_v26 = vmul.f32 %v2435_v50, %v2435_v50 }
 0x19f   :  { %v1098_v38 = vsel %vm819_vm0, %v994_v46, 0.0 }
 0x1a0   :  { %v898_v56 = vadd.f32 %v897_v48, %v896_v3  ;;  %v1093_v55 = vadd.f32 %v1092_v32, %v1091_v39  ;;  %v903_v39 = vsel %vm819_vm0, %v2435_v50, 0.0  ;;  %v996_v32 = vmul.f32 %v2443_v61, %v2443_v61 }
 0x1a1   :  { %v1100_v25 = vsel %vm819_vm0, %v995_v26, 0.0 }
 0x1a2   :  { %v1095_v31 = vadd.f32 %v1094_v54, %v1093_v55  ;;  %v900_v29 = vadd.f32 %v899_v43, %v898_v56  ;;  %v905_v55 = vsel %vm819_vm0, %v2443_v61, 0.0  ;;  %v997_v54 = vmul.f32 %v2453_v10, %v2453_v10 }
 0x1a3   :  { %v1102_v46 = vsel %vm819_vm0, %v996_v32, 0.0 }
 0x1a4   :  { %v902_v16 = vadd.f32 %v901_v47, %v900_v29  ;;  %v1097_v3 = vadd.f32 %v1096_v45, %v1095_v31  ;;  %v907_v29 = vsel %vm819_vm0, %v2453_v10, 0.0  ;;  %v998_v45 = vmul.f32 %v2461_v21, %v2461_v21 }
 0x1a5   :  { %v1104_v26 = vsel %vm819_vm0, %v997_v54, 0.0 }
 0x1a6   :  { %v904_v48 = vadd.f32 %v903_v39, %v902_v16  ;;  %v1099_v56 = vadd.f32 %v1098_v38, %v1097_v3  ;;  %v909_v3 = vsel %vm819_vm0, %v2461_v21, 0.0  ;;  %v999_v38 = vmul.f32 %v2471_v42, %v2471_v42 }
 0x1a7   :  { %v1106_v32 = vsel %vm819_vm0, %v998_v45, 0.0 }
 0x1a8   :  { %v906_v43 = vadd.f32 %v905_v55, %v904_v48  ;;  %v1101_v31 = vadd.f32 %v1100_v25, %v1099_v56  ;;  %v911_v56 = vsel %vm819_vm0, %v2471_v42, 0.0  ;;  %v1000_v25 = vmul.f32 %v2479_v53, %v2479_v53 }
 0x1a9   :  { %v1108_v54 = vsel %vm819_vm0, %v999_v38, 0.0 }
 0x1aa   :  { %v908_v47 = vadd.f32 %v907_v29, %v906_v43  ;;  %v1103_v16 = vadd.f32 %v1102_v46, %v1101_v31  ;;  %v913_v31 = vsel %vm819_vm0, %v2479_v53, 0.0  ;;  %v1001_v46 = vmul.f32 %v2489_v4, %v2489_v4 }
 0x1ab   :  { %v1110_v45 = vsel %vm819_vm0, %v1000_v25, 0.0 }
 0x1ac   :  { %v910_v39 = vadd.f32 %v909_v3, %v908_v47  ;;  %v1105_v48 = vadd.f32 %v1104_v26, %v1103_v16  ;;  %v915_v16 = vsel %vm819_vm0, %v2489_v4, 0.0  ;;  %v1002_v26 = vmul.f32 %v2497_v19, %v2497_v19 }
 0x1ad   :  { %v1112_v38 = vsel %vm819_vm0, %v1001_v46, 0.0 }
 0x1ae   :  { %v912_v55 = vadd.f32 %v911_v56, %v910_v39  ;;  %v1107_v43 = vadd.f32 %v1106_v32, %v1105_v48  ;;  %v917_v48 = vsel %vm819_vm0, %v2497_v19, 0.0  ;;  %v1003_v32 = vmul.f32 %v2507_v44, %v2507_v44 }
 0x1af   :  { %v1114_v25 = vsel %vm819_vm0, %v1002_v26, 0.0 }
 0x1b0   :  { %v914_v29 = vadd.f32 %v913_v31, %v912_v55  ;;  %v1109_v47 = vadd.f32 %v1108_v54, %v1107_v43  ;;  %v919_v43 = vsel %vm819_vm0, %v2507_v44, 0.0  ;;  %v1004_v54 = vmul.f32 %v2515_v57, %v2515_v57 }
 0x1b1   :  { %v1116_v46 = vsel %vm819_vm0, %v1003_v32, 0.0 }
 0x1b2   :  { %v916_v3 = vadd.f32 %v915_v16, %v914_v29  ;;  %v1111_v39 = vadd.f32 %v1110_v45, %v1109_v47  ;;  %v921_v47 = vsel %vm819_vm0, %v2515_v57, 0.0  ;;  %v1005_v45 = vmul.f32 %v2525_v24, %v2525_v24 }
 0x1b3   :  { %v1118_v26 = vsel %vm819_vm0, %v1004_v54, 0.0 }
 0x1b4   :  { %v1113_v56 = vadd.f32 %v1112_v38, %v1111_v39  ;;  %v918_v55 = vadd.f32 %v917_v48, %v916_v3  ;;  %v923_v39 = vsel %vm819_vm0, %v2525_v24, 0.0  ;;  %v1006_v38 = vmul.f32 %v2533_v35, %v2533_v35 }
 0x1b5   :  { %v1120_v32 = vsel %vm819_vm0, %v1005_v45, 0.0 }
 0x1b6   :  { %v1115_v31 = vadd.f32 %v1114_v25, %v1113_v56  ;;  %v920_v29 = vadd.f32 %v919_v43, %v918_v55  ;;  %v925_v55 = vsel %vm819_vm0, %v2533_v35, 0.0  ;;  %v1007_v25 = vmul.f32 %v2543_v2, %v2543_v2 }
 0x1b7   :  { %v1122_v54 = vsel %vm819_vm0, %v1006_v38, 0.0 }
 0x1b8   :  { %v1117_v16 = vadd.f32 %v1116_v46, %v1115_v31  ;;  %v922_v3 = vadd.f32 %v921_v47, %v920_v29  ;;  %v927_v29 = vsel %vm819_vm0, %v2543_v2, 0.0  ;;  %v1008_v46 = vmul.f32 %v2551_v14, %v2551_v14 }
 0x1b9   :  { %v1124_v45 = vsel %vm819_vm0, %v1007_v25, 0.0 }
 0x1ba   :  { %v1119_v48 = vadd.f32 %v1118_v26, %v1117_v16  ;;  %v924_v56 = vadd.f32 %v923_v39, %v922_v3  ;;  %v929_v3 = vsel %vm819_vm0, %v2551_v14, 0.0  ;;  %v1009_v26 = vmul.f32 %v2561_v7, %v2561_v7 }
 0x1bb   :  { %v1126_v38 = vsel %vm819_vm0, %v1008_v46, 0.0 }
 0x1bc   :  { %v1121_v43 = vadd.f32 %v1120_v32, %v1119_v48  ;;  %v926_v31 = vadd.f32 %v925_v55, %v924_v56  ;;  %v931_v56 = vsel %vm819_vm0, %v2561_v7, 0.0  ;;  %v1010_v32 = vmul.f32 %v2569_v0, %v2569_v0 }
 0x1bd   :  { %v1128_v25 = vsel %vm819_vm0, %v1009_v26, 0.0 }
 0x1be   :  { %v1123_v47 = vadd.f32 %v1122_v54, %v1121_v43  ;;  %v928_v16 = vadd.f32 %v927_v29, %v926_v31  ;;  %v933_v31 = vsel %vm819_vm0, %v2569_v0, 0.0  ;;  %v1011_v54 = vmul.f32 %v2579_v8, %v2579_v8 }
 0x1bf   :  { %v1130_v46 = vsel %vm819_vm0, %v1010_v32, 0.0 }
 0x1c0   :  { %v1125_v39 = vadd.f32 %v1124_v45, %v1123_v47  ;;  %v930_v48 = vadd.f32 %v929_v3, %v928_v16  ;;  %v935_v16 = vsel %vm819_vm0, %v2579_v8, 0.0  ;;  %v1012_v45 = vmul.f32 %v2587_v63, %v2587_v63 }
 0x1c1   :  { %v1132_v26 = vsel %vm819_vm0, %v1011_v54, 0.0 }
 0x1c2   :  { %v1127_v55 = vadd.f32 %v1126_v38, %v1125_v39  ;;  %v932_v43 = vadd.f32 %v931_v56, %v930_v48  ;;  %v937_v48 = vsel %vm819_vm0, %v2587_v63, 0.0  ;;  %v1013_v38 = vmul.f32 %v2597_v11, %v2597_v11 }
 0x1c3   :  { %v1134_v32 = vsel %vm819_vm0, %v1012_v45, 0.0 }
 0x1c4   :  { %v1129_v29 = vadd.f32 %v1128_v25, %v1127_v55  ;;  %v934_v47 = vadd.f32 %v933_v31, %v932_v43  ;;  %v939_v43 = vsel %vm819_vm0, %v2597_v11, 0.0  ;;  %v1014_v25 = vmul.f32 %v2605_v1, %v2605_v1 }
 0x1c5   :  { %v1015_v31 = vmul.f32 %v2615_v62, %v2615_v62 }
 0x1c6   :  { %v1131_v3 = vadd.f32 %v1130_v46, %v1129_v29  ;;  %v936_v39 = vadd.f32 %v935_v16, %v934_v47  ;;  %v1136_v47 = vsel %vm819_vm0, %v1013_v38, 0.0  ;;  %v941_v46 = vsel %vm819_vm0, %v2605_v1, 0.0 }
 0x1c7   :  { %v943_v16 = vsel %vm819_vm0, %v2615_v62, 0.0  ;;  %v945_v38 = vsel %vm819_vm0, %v2623_v15, 0.0 }
 0x1c8   :  { %v1133_v56 = vadd.f32 %v1132_v26, %v1131_v3  ;;  %v938_v55 = vadd.f32 %v937_v48, %v936_v39  ;;  %v1138_v39 = vsel %vm819_vm0, %v1014_v25, 0.0  ;;  %v1140_v26 = vsel %vm819_vm0, %v1015_v31, 0.0 }
 0x1c9   :  { %v1016_v48 = vmul.f32 %v2623_v15, %v2623_v15 }
 0x1ca   :  { %v1135_v54 = vadd.f32 %v1134_v32, %v1133_v56  ;;  %v940_v29 = vadd.f32 %v939_v43, %v938_v55 }
 0x1cb   :  { %v1142_v43 = vsel %vm819_vm0, %v1016_v48, 0.0  ;;  %v1162_v48 = vlaneseq }
 0x1cc   :  { %v1137_v45 = vadd.f32 %v1136_v47, %v1135_v54  ;;  %v942_v3 = vadd.f32 %v941_v46, %v940_v29 }
 0x1ce   :  { %v1139_v11 = vadd.f32 %v1138_v39, %v1137_v45  ;;  %v944_v56 = vadd.f32 %v943_v16, %v942_v3 }
 0x1d0   :  { %v1141_v55 = vadd.f32 %v1140_v26, %v1139_v11  ;;  %v946_v32 = vadd.f32 %v945_v38, %v944_v56  ;;  %v2791_v56 = vshrl.u32 %v1162_v48, 7  ;;  %v3919_v48 = vld [vmem:[#allocation9_spill] sm:$0xff] }
 0x1d2   :  { %v947_v1 = vrot.slane %v946_v32, 4  ;;  %v1143_v62 = vadd.f32 %v1142_v43, %v1141_v55 }
 0x1d4   :  { %v948_v54 = vadd.f32 %v947_v1, %v946_v32  ;;  %v1144_v29 = vrot.slane %v1143_v62, 4  ;;  %v1154_v1 = vld [vmem:[%s3843_s2] sm:$0x1] }
 0x1d6   :  { %v949_v47 = vrot.slane %v948_v54, 2  ;;  %v1145_v25 = vadd.f32 %v1144_v29, %v1143_v62  ;;  %v3870_v62 = vsub.s32 0, %v2791_v56 }
 0x1d8   :  { %v950_v46 = vadd.f32 %v949_v47, %v948_v54  ;;  %v1146_v31 = vrot.slane %v1145_v25, 2 }
 0x1da   :  { %v951_v63 = vrot.slane %v950_v46, 1  ;;  %v1147_v8 = vadd.f32 %v1146_v31, %v1145_v25  ;;  %v3912_v25 = vld [vmem:[#allocation2_spill] sm:$0xff]  ;;  %v3914_v31 = vld [vmem:[#allocation4_spill] sm:$0xff] }
 0x1dc   :  { %v952_v0 = vadd.f32 %v951_v63, %v950_v46  ;;  %v1148_v45 = vrot.slane %v1147_v8, 1  ;;  %v3913_v46 = vld [vmem:[#allocation3_spill] sm:$0xff] }
 0x1de   :  { %v1149_v16 = vadd.f32 %v1148_v45, %v1147_v8  ;;  %v1150_v3 = vmul.f32 0.001953125, %v952_v0  ;;  %v2800_v0 = vld [vmem:[%s3844_s3] sm:$0x1]  ;;  %v3915_v45 = vld [vmem:[#allocation5_spill] sm:$0xff] }
 0x1e0   :  { %v1151_v39 = vmul.f32 0.001953125, %v1149_v16  ;;  %v1152_v15 = vmul.f32 %v1150_v3, %v1150_v3  ;;  %v3916_v16 = vld [vmem:[#allocation6_spill] sm:$0xff] }
 0x1e2   :  { %v1153_v11 = vsub.f32 %v1151_v39, %v1152_v15  ;;  %v3927_v15 = vld [vmem:[#allocation17_spill] sm:$0xff] }
 0x1e4   :  { %v1155_v26 = vadd.f32 1e-05, %v1153_v11  ;;  %v3918_v11 = vld [vmem:[#allocation8_spill] sm:$0xff] }
 0x1e6   :  { %2043 = vrsqrt.f32 %v1155_v26 }
 0x1f0   :  { %v2044_v38 = vpop.eup %2043 }
 0x1f1   :  { %v1157_v55 = vmul.f32 %v2044_v38, %v1154_v1  ;;  %v3920_v38 = vld [vmem:[#allocation10_spill] sm:$0xff] }
 0x1f3   :  { %v2802_v8 = vmul.f32 %v1157_v55, %v1150_v3  ;;  %v2806_v63 = vrot.slane %v1157_v55, %v3870_v62  ;;  %v3917_v3 = vld [vmem:[#allocation7_spill] sm:$0xff] }
 0x1f4   :  { %v3928_v62 = vld [vmem:[#allocation19_spill] sm:$0xff] }
 0x1f5   :  { %v2812_v32 = vmul.f32 %v2806_v63, %v2343_v17  ;;  %v2816_v43 = vmul.f32 %v2806_v63, %v2349_v22  ;;  %v2820_v54 = vmul.f32 %v2806_v63, %v2361_v33  ;;  %v2824_v29 = vmul.f32 %v2806_v63, %v2369_v40 }
 0x1f6   :  { %v2828_v47 = vmul.f32 %v2806_v63, %v2379_v51  ;;  %v2832_v17 = vmul.f32 %v2806_v63, %v2387_v58  ;;  %v2836_v22 = vmul.f32 %v2806_v63, %v2397_v5  ;;  %v2840_v33 = vmul.f32 %v2806_v63, %v2405_v12 }
 0x1f7   :  { %v2844_v40 = vmul.f32 %v2806_v63, %v2415_v27  ;;  %v2848_v51 = vmul.f32 %v2806_v63, %v2423_v36  ;;  %v2852_v58 = vmul.f32 %v2806_v63, %v2433_v49  ;;  %v2856_v5 = vmul.f32 %v2806_v63, %v2441_v60 }
 0x1f8   :  { %v2860_v12 = vmul.f32 %v2806_v63, %v2451_v9  ;;  %v2864_v27 = vmul.f32 %v2806_v63, %v2459_v20  ;;  %v2868_v36 = vmul.f32 %v2806_v63, %v3912_v25  ;;  %v2872_v49 = vmul.f32 %v2806_v63, %v3913_v46  ;;  %v3921_v25 = vld [vmem:[#allocation11_spill] sm:$0xff] }
 0x1f9   :  { %v2876_v60 = vmul.f32 %v2806_v63, %v3914_v31  ;;  %v2880_v9 = vmul.f32 %v2806_v63, %v3915_v45  ;;  %v2884_v20 = vmul.f32 %v2806_v63, %v3916_v16  ;;  %v2888_v39 = vmul.f32 %v2806_v63, %v3917_v3  ;;  %v3923_v31 = vld [vmem:[#allocation12_spill] sm:$0xff]  ;;  %v3925_v16 = vld [vmem:[#allocation13_spill] sm:$0xff] }
 0x1fa   :  { %v2892_v26 = vmul.f32 %v2806_v63, %v3918_v11  ;;  %v2896_v1 = vmul.f32 %v2806_v63, %v3919_v48  ;;  %v2900_v55 = vmul.f32 %v2806_v63, %v3920_v38  ;;  %v2904_v46 = vmul.f32 %v2806_v63, %v3921_v25  ;;  %v3926_v11 = vld [vmem:[#allocation15_spill] sm:$0xff] }
 0x1fb   :  { %v2908_v45 = vmul.f32 %v2806_v63, %v3923_v31  ;;  %v2912_v3 = vmul.f32 %v2806_v63, %v3925_v16  ;;  %v2916_v48 = vmul.f32 %v2806_v63, %v3926_v11  ;;  %v2920_v38 = vmul.f32 %v2806_v63, %v3927_v15 }
 0x1fc   :  { %3922 = vst [vmem:[#allocation2_spill] sm:$0xff] %v2904_v46  ;;  %v2924_v25 = vmul.f32 %v2806_v63, %v3928_v62  ;;  %v3929_v46 = vld [vmem:[#allocation21_spill] sm:$0xff]  ;;  %v2936_v11 = vmul.f32 %v2806_v63, %v2621_v30  ;;  %v2940_v15 = vmul.f32 %v2806_v63, %v2345_v18  ;;  %v2944_v62 = vmul.f32 %v2806_v63, %v2351_v23 }
 0x1fd   :  { %3924 = vst [vmem:[#allocation3_spill] sm:$0xff] %v2908_v45  ;;  %v2928_v31 = vmul.f32 %v2806_v63, %v3929_v46  ;;  %v3930_v45 = vld [vmem:[#allocation23_spill] sm:$0xff]  ;;  %v2948_v46 = vmul.f32 %v2806_v63, %v2363_v34  ;;  %v2956_v30 = vmul.f32 %v2806_v63, %v2381_v52  ;;  %v2960_v18 = vmul.f32 %v2806_v63, %v2389_v59 }
 0x1fe   :  { %v2932_v16 = vmul.f32 %v2806_v63, %v3930_v45  ;;  %v2952_v45 = vmul.f32 %v2806_v63, %v2371_v41  ;;  %v2964_v23 = vmul.f32 %v2806_v63, %v2399_v6  ;;  %v2968_v34 = vmul.f32 %v2806_v63, %v2407_v13 }
 0x1ff   :  { %v2972_v41 = vmul.f32 %v2806_v63, %v2417_v28  ;;  %v2976_v52 = vmul.f32 %v2806_v63, %v2425_v37  ;;  %v2980_v59 = vmul.f32 %v2806_v63, %v2435_v50  ;;  %v2984_v6 = vmul.f32 %v2806_v63, %v2443_v61 }
 0x200   :  { %v2988_v13 = vmul.f32 %v2806_v63, %v2453_v10  ;;  %v2992_v28 = vmul.f32 %v2806_v63, %v2461_v21  ;;  %v2996_v37 = vmul.f32 %v2806_v63, %v2471_v42  ;;  %v3000_v50 = vmul.f32 %v2806_v63, %v2479_v53 }
 0x201   :  { %v3004_v61 = vmul.f32 %v2806_v63, %v2489_v4  ;;  %v3008_v10 = vmul.f32 %v2806_v63, %v2497_v19  ;;  %v3012_v21 = vmul.f32 %v2806_v63, %v2507_v44  ;;  %v3016_v42 = vmul.f32 %v2806_v63, %v2515_v57 }
 0x202   :  { %v3020_v53 = vmul.f32 %v2806_v63, %v2525_v24  ;;  %v3024_v4 = vmul.f32 %v2806_v63, %v2533_v35  ;;  %v3028_v19 = vmul.f32 %v2806_v63, %v2543_v2  ;;  %v3032_v44 = vmul.f32 %v2806_v63, %v2551_v14 }
 0x203   :  { %3931 = vst [vmem:[#allocation4_spill] sm:$0xff] %v3016_v42  ;;  %v3036_v57 = vmul.f32 %v2806_v63, %v2561_v7  ;;  %v3937_v42 = vld [vmem:[#allocation14_spill] sm:$0xff] }
 0x204   :  { %3932 = vst [vmem:[#allocation5_spill] sm:$0xff] %v3020_v53  ;;  %3933 = vst [vmem:[#allocation6_spill] sm:$0xff] %v3024_v4  ;;  %v3040_v24 = vmul.f32 %v2806_v63, %v3937_v42  ;;  %v3939_v53 = vld [vmem:[#allocation16_spill] sm:$0xff]  ;;  %v3941_v4 = vld [vmem:[#allocation18_spill] sm:$0xff] }
 0x205   :  { %3934 = vst [vmem:[#allocation7_spill] sm:$0xff] %v3028_v19  ;;  %3935 = vst [vmem:[#allocation8_spill] sm:$0xff] %v3032_v44  ;;  %v3044_v35 = vmul.f32 %v2806_v63, %v3939_v53  ;;  %v3048_v2 = vmul.f32 %v2806_v63, %v3941_v4  ;;  %v3943_v19 = vld [vmem:[#allocation20_spill] sm:$0xff]  ;;  %v3944_v44 = vld [vmem:[#allocation22_spill] sm:$0xff]  ;;  %v3948_v4 = vsub.f32 %v2800_v0, %v2802_v8 }
 0x206   :  { %3936 = vst [vmem:[#allocation9_spill] sm:$0xff] %v3036_v57  ;;  %3938 = vst [vmem:[#allocation10_spill] sm:$0xff] %v3040_v24  ;;  %v3052_v14 = vmul.f32 %v2806_v63, %v3943_v19  ;;  %v3056_v7 = vmul.f32 %v2806_v63, %v3944_v44  ;;  %v3945_v57 = vld [vmem:[#allocation24_spill] sm:$0xff]  ;;  %v3946_v24 = vld [vmem:[#allocation25_spill] sm:$0xff] }
 0x207   :  { %3940 = vst [vmem:[#allocation11_spill] sm:$0xff] %v3044_v35  ;;  %3942 = vst [vmem:[#allocation12_spill] sm:$0xff] %v3048_v2  ;;  %v3060_v42 = vmul.f32 %v2806_v63, %v3945_v57  ;;  %v3064_v53 = vmul.f32 %v2806_v63, %v3946_v24  ;;  %v3947_v35 = vsub.s32 0, %v2791_v56 }
 0x209   :  { %v3071_v2 = vrot.slane %v3948_v4, %v3947_v35 }
 0x20a   :  { %v3960_v4 = vld [vmem:[#allocation4_spill] sm:$0xff] }
 0x20b   :  { %v3075_v19 = vadd.f32 %v3071_v2, %v2812_v32  ;;  %v3079_v44 = vadd.f32 %v3071_v2, %v2816_v43  ;;  %v3083_v57 = vadd.f32 %v3071_v2, %v2820_v54  ;;  %v3087_v56 = vadd.f32 %v3071_v2, %v2824_v29 }
 0x20c   :  { %v3091_v0 = vadd.f32 %v3071_v2, %v2828_v47  ;;  %v3095_v8 = vadd.f32 %v3071_v2, %v2832_v17  ;;  %v3099_v63 = vadd.f32 %v3071_v2, %v2836_v22  ;;  %v3103_v32 = vadd.f32 %v3071_v2, %v2840_v33 }
 0x20d   :  { %v3107_v43 = vadd.f32 %v3071_v2, %v2844_v40  ;;  %v3111_v54 = vadd.f32 %v3071_v2, %v2848_v51  ;;  %v3115_v29 = vadd.f32 %v3071_v2, %v2852_v58  ;;  %v3119_v47 = vadd.f32 %v3071_v2, %v2856_v5 }
 0x20e   :  { %v3123_v17 = vadd.f32 %v3071_v2, %v2860_v12  ;;  %v3127_v22 = vadd.f32 %v3071_v2, %v2864_v27  ;;  %v3131_v33 = vadd.f32 %v3071_v2, %v2868_v36  ;;  %v3135_v40 = vadd.f32 %v3071_v2, %v2872_v49 }
 0x20f   :  { %v3139_v51 = vadd.f32 %v3071_v2, %v2876_v60  ;;  %v3143_v58 = vadd.f32 %v3071_v2, %v2880_v9  ;;  %v3147_v5 = vadd.f32 %v3071_v2, %v2884_v20  ;;  %v3151_v12 = vadd.f32 %v3071_v2, %v2888_v39  ;;  %v3949_v60 = vld [vmem:[#allocation2_spill] sm:$0xff]  ;;  %v3950_v20 = vld [vmem:[#allocation3_spill] sm:$0xff] }
 0x210   :  { %v3155_v27 = vadd.f32 %v3071_v2, %v2892_v26  ;;  %v3159_v36 = vadd.f32 %v3071_v2, %v2896_v1  ;;  %v3163_v49 = vadd.f32 %v3071_v2, %v2900_v55  ;;  %v3167_v9 = vadd.f32 %v3071_v2, %v3949_v60  ;;  %v3962_v60 = vld [vmem:[#allocation5_spill] sm:$0xff] }
 0x211   :  { %v3171_v39 = vadd.f32 %v3071_v2, %v3950_v20  ;;  %v3175_v26 = vadd.f32 %v3071_v2, %v2912_v3  ;;  %v3179_v1 = vadd.f32 %v3071_v2, %v2916_v48  ;;  %v3183_v55 = vadd.f32 %v3071_v2, %v2920_v38  ;;  %v3964_v20 = vld [vmem:[#allocation6_spill] sm:$0xff] }
 0x212   :  { %v3187_v24 = vadd.f32 %v3071_v2, %v2924_v25  ;;  %v3191_v35 = vadd.f32 %v3071_v2, %v2928_v31  ;;  %v3195_v3 = vadd.f32 %v3071_v2, %v2932_v16  ;;  %v3199_v48 = vadd.f32 %v3071_v2, %v2936_v11 }
 0x213   :  { %v3203_v38 = vadd.f32 %v3071_v2, %v2940_v15  ;;  %v3207_v25 = vadd.f32 %v3071_v2, %v2944_v62  ;;  %v3211_v31 = vadd.f32 %v3071_v2, %v2948_v46  ;;  %v3215_v16 = vadd.f32 %v3071_v2, %v2952_v45 }
 0x214   :  { %v3219_v11 = vadd.f32 %v3071_v2, %v2956_v30  ;;  %v3223_v15 = vadd.f32 %v3071_v2, %v2960_v18  ;;  %v3227_v62 = vadd.f32 %v3071_v2, %v2964_v23  ;;  %v3231_v46 = vadd.f32 %v3071_v2, %v2968_v34 }
 0x215   :  { %v3235_v45 = vadd.f32 %v3071_v2, %v2972_v41  ;;  %v3239_v30 = vadd.f32 %v3071_v2, %v2976_v52  ;;  %v3243_v18 = vadd.f32 %v3071_v2, %v2980_v59  ;;  %v3247_v23 = vadd.f32 %v3071_v2, %v2984_v6 }
 0x216   :  { %3951 = vst [vmem:[#allocation13_spill] sm:$0xff] %v3227_v62  ;;  %3952 = vst [vmem:[#allocation15_spill] sm:$0xff] %v3231_v46  ;;  %v3251_v34 = vadd.f32 %v3071_v2, %v2988_v13  ;;  %v3255_v41 = vadd.f32 %v3071_v2, %v2992_v28  ;;  %v3259_v52 = vadd.f32 %v3071_v2, %v2996_v37 }
 0x217   :  { %3953 = vst [vmem:[#allocation17_spill] sm:$0xff] %v3235_v45  ;;  %3954 = vst [vmem:[#allocation19_spill] sm:$0xff] %v3239_v30  ;;  %v3263_v59 = vadd.f32 %v3071_v2, %v3000_v50  ;;  %v3267_v6 = vadd.f32 %v3071_v2, %v3004_v61  ;;  %v3271_v13 = vadd.f32 %v3071_v2, %v3008_v10 }
 0x218   :  { %3955 = vst [vmem:[#allocation21_spill] sm:$0xff] %v3243_v18  ;;  %v3275_v28 = vadd.f32 %v3071_v2, %v3012_v21  ;;  %v3279_v37 = vadd.f32 %v3071_v2, %v3960_v4  ;;  %v3283_v50 = vadd.f32 %v3071_v2, %v3962_v60  ;;  %v3287_v61 = vadd.f32 %v3071_v2, %v3964_v20 }
 0x219   :  { %3956 = vst [vmem:[#allocation23_spill] sm:$0xff] %v3263_v59  ;;  %3957 = vst [vmem:[#allocation14_spill] sm:$0xff] %v3267_v6  ;;  %v3966_v6 = vld [vmem:[#allocation7_spill] sm:$0xff] }
 0x21a   :  { %3958 = vst [vmem:[#allocation16_spill] sm:$0xff] %v3271_v13  ;;  %3959 = vst [vmem:[#allocation18_spill] sm:$0xff] %v3275_v28  ;;  %v3291_v10 = vadd.f32 %v3071_v2, %v3966_v6  ;;  %v3967_v13 = vld [vmem:[#allocation8_spill] sm:$0xff]  ;;  %v3968_v28 = vld [vmem:[#allocation9_spill] sm:$0xff] }
 0x21b   :  { %3961 = vst [vmem:[#allocation20_spill] sm:$0xff] %v3279_v37  ;;  %3963 = vst [vmem:[#allocation22_spill] sm:$0xff] %v3283_v50  ;;  %v3295_v21 = vadd.f32 %v3071_v2, %v3967_v13  ;;  %v3299_v4 = vadd.f32 %v3071_v2, %v3968_v28  ;;  %v3969_v37 = vld [vmem:[#allocation10_spill] sm:$0xff]  ;;  %v3970_v50 = vld [vmem:[#allocation11_spill] sm:$0xff]  ;;  %v3315_v13 = vadd.f32 %v3071_v2, %v3052_v14 }
 0x21c   :  { %3965 = vst [vmem:[#allocation24_spill] sm:$0xff] %v3287_v61  ;;  %v3303_v60 = vadd.f32 %v3071_v2, %v3969_v37  ;;  %v3307_v20 = vadd.f32 %v3071_v2, %v3970_v50  ;;  %v3972_v61 = vld [vmem:[#allocation12_spill] sm:$0xff]  ;;  %v3319_v28 = vadd.f32 %v3071_v2, %v3056_v7  ;;  %v3323_v37 = vadd.f32 %v3071_v2, %v3060_v42 }
 0x21d   :  { %v3311_v6 = vadd.f32 %v3071_v2, %v3972_v61  ;;  %3974 = vst [vmem:[#allocation3_spill] sm:$0xff] %v3315_v13  ;;  %v3327_v50 = vadd.f32 %v3071_v2, %v3064_v53  ;;  %v3985_v62 = vmov %v3315_v13  ;;  %v3988_v13 = vmax.f32 %v3075_v19, 0.0 }
 0x21e   :  { %3971 = vst [vmem:[#allocation25_spill] sm:$0xff] %v3307_v20  ;;  %3975 = vst [vmem:[#allocation4_spill] sm:$0xff] %v3319_v28  ;;  %v3986_v46 = vmov %v3319_v28  ;;  %v3987_v45 = vmov %v3323_v37  ;;  %v3989_v28 = vmax.f32 %v3079_v44, 0.0  ;;  %v3991_v53 = vmax.f32 %v3087_v56, 0.0 }
 0x21f   :  { %3973 = vst [vmem:[#allocation2_spill] sm:$0xff] %v3311_v6  ;;  %3976 = vst [vmem:[#allocation5_spill] sm:$0xff] %v3323_v37  ;;  %v3984_v20 = vmov %v3311_v6  ;;  %v1834_v7 = vpack.c.bf16 %v3988_v13, %v3988_v13  ;;  %v3990_v37 = vmax.f32 %v3083_v57, 0.0  ;;  %v3992_v6 = vmax.f32 %v3091_v0, 0.0 }
 0x220   :  { %v1835_v42 = vpack.c.bf16 %v3989_v28, %v3989_v28  ;;  %v1837_v61 = vpack.c.bf16 %v3991_v53, %v3991_v53  ;;  %v3993_v19 = vmax.f32 %v3095_v8, 0.0  ;;  %v3994_v44 = vmax.f32 %v3099_v63, 0.0 }
 0x221   :  { %v1836_v2 = vpack.c.bf16 %v3990_v37, %v3990_v37  ;;  %v1838_v14 = vpack.c.bf16 %v3992_v6, %v3992_v6  ;;  %v3995_v57 = vmax.f32 %v3103_v32, 0.0  ;;  %v3996_v56 = vmax.f32 %v3107_v43, 0.0  ;;  %1622 = vst.msk [vmem:[%s3845_s4] sm:$0xf] %vm1621_vm1, %v1834_v7 }
 0x222   :  { %v3981_v30 = vld [vmem:[#allocation22_spill] sm:$0xff]  ;;  %v1839_v13 = vpack.c.bf16 %v3993_v19, %v3993_v19  ;;  %v1840_v28 = vpack.c.bf16 %v3994_v44, %v3994_v44  ;;  %v3997_v0 = vmax.f32 %v3111_v54, 0.0  ;;  %v3998_v8 = vmax.f32 %v3115_v29, 0.0  ;;  %1623 = vst.msk [vmem:[%s3845_s4 + $0x4] sm:$0xf] %vm1621_vm1, %v1835_v42 }
 0x223   :  { %v3982_v18 = vld [vmem:[#allocation24_spill] sm:$0xff]  ;;  %v1841_v37 = vpack.c.bf16 %v3995_v57, %v3995_v57  ;;  %v1842_v53 = vpack.c.bf16 %v3996_v56, %v3996_v56  ;;  %v3999_v63 = vmax.f32 %v3119_v47, 0.0  ;;  %1624 = vst.msk [vmem:[%s3845_s4 + $0x8] sm:$0xf] %vm1621_vm1, %v1836_v2  ;;  %1625 = vst.msk [vmem:[%s3845_s4 + $0xc] sm:$0xf] %vm1621_vm1, %v1837_v61 }
 0x224   :  { %v1843_v6 = vpack.c.bf16 %v3997_v0, %v3997_v0  ;;  %v1844_v19 = vpack.c.bf16 %v3998_v8, %v3998_v8  ;;  %v4000_v32 = vmax.f32 %v3123_v17, 0.0  ;;  %v4001_v54 = vmax.f32 %v3127_v22, 0.0  ;;  %1626 = vst.msk [vmem:[%s3845_s4 + $0x10] sm:$0xf] %vm1621_vm1, %v1838_v14  ;;  %1627 = vst.msk [vmem:[%s3845_s4 + $0x14] sm:$0xf] %vm1621_vm1, %v1839_v13 }
 0x225   :  { %v3983_v59 = vld [vmem:[#allocation25_spill] sm:$0xff]  ;;  %v1845_v44 = vpack.c.bf16 %v3999_v63, %v3999_v63  ;;  %v4002_v47 = vmax.f32 %v3131_v33, 0.0  ;;  %v4003_v42 = vmax.f32 %v3135_v40, 0.0  ;;  %1628 = vst.msk [vmem:[%s3845_s4 + $0x18] sm:$0xf] %vm1621_vm1, %v1840_v28  ;;  %v4004_v17 = vmax.f32 %v3139_v51, 0.0 }
 0x226   :  { %v1846_v43 = vpack.c.bf16 %v4000_v32, %v4000_v32  ;;  %v1847_v29 = vpack.c.bf16 %v4001_v54, %v4001_v54  ;;  %1629 = vst.msk [vmem:[%s3845_s4 + $0x1c] sm:$0xf] %vm1621_vm1, %v1841_v37  ;;  %v4005_v33 = vmax.f32 %v3143_v58, 0.0  ;;  %v4006_v61 = vmax.f32 %v3147_v5, 0.0  ;;  %1630 = vst.msk [vmem:[%s3845_s4 + $0x20] sm:$0xf] %vm1621_vm1, %v1842_v53 }
 0x227   :  { %v1848_v7 = vpack.c.bf16 %v4002_v47, %v4002_v47  ;;  %v1849_v2 = vpack.c.bf16 %v4003_v42, %v4003_v42  ;;  %v1850_v22 = vpack.c.bf16 %v4004_v17, %v4004_v17  ;;  %v4007_v13 = vmax.f32 %v3151_v12, 0.0  ;;  %1631 = vst.msk [vmem:[%s3845_s4 + $0x24] sm:$0xf] %vm1621_vm1, %v1843_v6  ;;  %1632 = vst.msk [vmem:[%s3845_s4 + $0x28] sm:$0xf] %vm1621_vm1, %v1844_v19  ;;  %v4026_v42 = vld [vmem:[#allocation13_spill] sm:$0xff] }
 0x228   :  { %v1851_v40 = vpack.c.bf16 %v4005_v33, %v4005_v33  ;;  %v1852_v14 = vpack.c.bf16 %v4006_v61, %v4006_v61  ;;  %1633 = vst.msk [vmem:[%s3845_s4 + $0x2c] sm:$0xf] %vm1621_vm1, %v1845_v44  ;;  %v4008_v51 = vmax.f32 %v3155_v27, 0.0  ;;  %v4009_v5 = vmax.f32 %v3159_v36, 0.0  ;;  %1634 = vst.msk [vmem:[%s3845_s4 + $0x30] sm:$0xf] %vm1621_vm1, %v1846_v43 }
 0x229   :  { %v1853_v28 = vpack.c.bf16 %v4007_v13, %v4007_v13  ;;  %v4010_v57 = vmax.f32 %v3163_v49, 0.0  ;;  %v4011_v56 = vmax.f32 %v3167_v9, 0.0  ;;  %1635 = vst.msk [vmem:[%s3845_s4 + $0x34] sm:$0xf] %vm1621_vm1, %v1847_v29  ;;  %1636 = vst.msk [vmem:[%s3845_s4 + $0x38] sm:$0xf] %vm1621_vm1, %v1848_v7 }
 0x22a   :  { %v1854_v58 = vpack.c.bf16 %v4008_v51, %v4008_v51  ;;  %v1855_v12 = vpack.c.bf16 %v4009_v5, %v4009_v5  ;;  %1637 = vst.msk [vmem:[%s3845_s4 + $0x3c] sm:$0xf] %vm1621_vm1, %v1849_v2  ;;  %v4012_v27 = vmax.f32 %v3171_v39, 0.0  ;;  %v4013_v49 = vmax.f32 %v3175_v26, 0.0  ;;  %1638 = vst.msk [vmem:[%s3845_s4 + $0x40] sm:$0xf] %vm1621_vm1, %v1850_v22 }
 0x22b   :  { %v1856_v37 = vpack.c.bf16 %v4010_v57, %v4010_v57  ;;  %v1857_v53 = vpack.c.bf16 %v4011_v56, %v4011_v56  ;;  %v4014_v0 = vmax.f32 %v3179_v1, 0.0  ;;  %v4015_v8 = vmax.f32 %v3183_v55, 0.0  ;;  %1639 = vst.msk [vmem:[%s3845_s4 + $0x44] sm:$0xf] %vm1621_vm1, %v1851_v40  ;;  %1640 = vst.msk [vmem:[%s3845_s4 + $0x48] sm:$0xf] %vm1621_vm1, %v1852_v14 }
 0x22c   :  { %v1858_v36 = vpack.c.bf16 %v4012_v27, %v4012_v27  ;;  %v1859_v9 = vpack.c.bf16 %v4013_v49, %v4013_v49  ;;  %1641 = vst.msk [vmem:[%s3845_s4 + $0x4c] sm:$0xf] %vm1621_vm1, %v1853_v28  ;;  %v4016_v39 = vmax.f32 %v3187_v24, 0.0  ;;  %v4017_v1 = vmax.f32 %v3191_v35, 0.0  ;;  %1642 = vst.msk [vmem:[%s3845_s4 + $0x50] sm:$0xf] %vm1621_vm1, %v1854_v58 }
 0x22d   :  { %v1860_v6 = vpack.c.bf16 %v4014_v0, %v4014_v0  ;;  %v1861_v19 = vpack.c.bf16 %v4015_v8, %v4015_v8  ;;  %v4018_v63 = vmax.f32 %v3195_v3, 0.0  ;;  %v4019_v32 = vmax.f32 %v3199_v48, 0.0  ;;  %1643 = vst.msk [vmem:[%s3845_s4 + $0x54] sm:$0xf] %vm1621_vm1, %v1855_v12  ;;  %1644 = vst.msk [vmem:[%s3845_s4 + $0x58] sm:$0xf] %vm1621_vm1, %v1856_v37 }
 0x22e   :  { %v1862_v26 = vpack.c.bf16 %v4016_v39, %v4016_v39  ;;  %v1863_v55 = vpack.c.bf16 %v4017_v1, %v4017_v1  ;;  %1645 = vst.msk [vmem:[%s3845_s4 + $0x5c] sm:$0xf] %vm1621_vm1, %v1857_v53  ;;  %v4020_v24 = vmax.f32 %v3203_v38, 0.0  ;;  %v4021_v3 = vmax.f32 %v3207_v25, 0.0  ;;  %1646 = vst.msk [vmem:[%s3845_s4 + $0x60] sm:$0xf] %vm1621_vm1, %v1858_v36 }
 0x22f   :  { %v1864_v44 = vpack.c.bf16 %v4018_v63, %v4018_v63  ;;  %v1865_v43 = vpack.c.bf16 %v4019_v32, %v4019_v32  ;;  %v4022_v54 = vmax.f32 %v3211_v31, 0.0  ;;  %v4023_v47 = vmax.f32 %v3215_v16, 0.0  ;;  %1647 = vst.msk [vmem:[%s3845_s4 + $0x64] sm:$0xf] %vm1621_vm1, %v1859_v9  ;;  %1648 = vst.msk [vmem:[%s3845_s4 + $0x68] sm:$0xf] %vm1621_vm1, %v1860_v6 }
 0x230   :  { %v1866_v35 = vpack.c.bf16 %v4020_v24, %v4020_v24  ;;  %v1867_v48 = vpack.c.bf16 %v4021_v3, %v4021_v3  ;;  %1649 = vst.msk [vmem:[%s3845_s4 + $0x6c] sm:$0xf] %vm1621_vm1, %v1861_v19  ;;  %v4024_v38 = vmax.f32 %v3219_v11, 0.0  ;;  %v4025_v31 = vmax.f32 %v3223_v15, 0.0  ;;  %v4028_v22 = vld [vmem:[#allocation15_spill] sm:$0xff]  ;;  %v4030_v11 = vld [vmem:[#allocation17_spill] sm:$0xff] }
 0x231   :  { %v1868_v29 = vpack.c.bf16 %v4022_v54, %v4022_v54  ;;  %v1869_v7 = vpack.c.bf16 %v4023_v47, %v4023_v47  ;;  %v4027_v2 = vmax.f32 %v4026_v42, 0.0  ;;  %v4029_v33 = vmax.f32 %v4028_v22, 0.0  ;;  %1650 = vst.msk [vmem:[%s3845_s4 + $0x70] sm:$0xf] %vm1621_vm1, %v1862_v26  ;;  %1651 = vst.msk [vmem:[%s3845_s4 + $0x74] sm:$0xf] %vm1621_vm1, %v1863_v55 }
 0x232   :  { %v1870_v25 = vpack.c.bf16 %v4024_v38, %v4024_v38  ;;  %v1871_v16 = vpack.c.bf16 %v4025_v31, %v4025_v31  ;;  %1652 = vst.msk [vmem:[%s3845_s4 + $0x78] sm:$0xf] %vm1621_vm1, %v1864_v44  ;;  %1653 = vst.msk [vmem:[%s3845_s4 + $0x7c] sm:$0xf] %vm1621_vm1, %v1865_v43  ;;  %v4031_v15 = vmax.f32 %v4030_v11, 0.0  ;;  %v4032_v14 = vld [vmem:[#allocation19_spill] sm:$0xff] }
 0x233   :  { %v1872_v17 = vpack.c.bf16 %v4027_v2, %v4027_v2  ;;  %v1873_v40 = vpack.c.bf16 %v4029_v33, %v4029_v33  ;;  %v4033_v13 = vmax.f32 %v4032_v14, 0.0  ;;  %v4034_v51 = vld [vmem:[#allocation21_spill] sm:$0xff]  ;;  %v4036_v12 = vmax.f32 %v3247_v23, 0.0  ;;  %1654 = vst.msk [vmem:[%s3845_s4 + $0x80] sm:$0xf] %vm1621_vm1, %v1866_v35  ;;  %v4040_v49 = vld [vmem:[#allocation23_spill] sm:$0xff] }
 0x234   :  { %v1874_v61 = vpack.c.bf16 %v4031_v15, %v4031_v15  ;;  %v4035_v58 = vmax.f32 %v4034_v51, 0.0  ;;  %1655 = vst.msk [vmem:[%s3845_s4 + $0x84] sm:$0xf] %vm1621_vm1, %v1867_v48  ;;  %1656 = vst.msk [vmem:[%s3845_s4 + $0x88] sm:$0xf] %vm1621_vm1, %v1868_v29  ;;  %v4037_v23 = vmax.f32 %v3251_v34, 0.0 }
 0x235   :  { %v1875_v28 = vpack.c.bf16 %v4033_v13, %v4033_v13  ;;  %v1877_v57 = vpack.c.bf16 %v4036_v12, %v4036_v12  ;;  %1657 = vst.msk [vmem:[%s3845_s4 + $0x8c] sm:$0xf] %vm1621_vm1, %v1869_v7  ;;  %v4038_v56 = vmax.f32 %v3255_v41, 0.0  ;;  %v4039_v27 = vmax.f32 %v3259_v52, 0.0  ;;  %1658 = vst.msk [vmem:[%s3845_s4 + $0x90] sm:$0xf] %vm1621_vm1, %v1870_v25 }
 0x236   :  { %v1876_v5 = vpack.c.bf16 %v4035_v58, %v4035_v58  ;;  %v1878_v37 = vpack.c.bf16 %v4037_v23, %v4037_v23  ;;  %v4041_v9 = vmax.f32 %v4040_v49, 0.0  ;;  %1659 = vst.msk [vmem:[%s3845_s4 + $0x94] sm:$0xf] %vm1621_vm1, %v1871_v16  ;;  %1660 = vst.msk [vmem:[%s3845_s4 + $0x98] sm:$0xf] %vm1621_vm1, %v1872_v17  ;;  %v4042_v34 = vld [vmem:[#allocation14_spill] sm:$0xff] }
 0x237   :  { %v1879_v53 = vpack.c.bf16 %v4038_v56, %v4038_v56  ;;  %v1880_v36 = vpack.c.bf16 %v4039_v27, %v4039_v27  ;;  %1661 = vst.msk [vmem:[%s3845_s4 + $0x9c] sm:$0xf] %vm1621_vm1, %v1873_v40  ;;  %v4043_v41 = vmax.f32 %v4042_v34, 0.0  ;;  %v4044_v6 = vld [vmem:[#allocation16_spill] sm:$0xff]  ;;  %v4046_v39 = vld [vmem:[#allocation18_spill] sm:$0xff]  ;;  %v4050_v32 = vmax.f32 %v3981_v30, 0.0 }
 0x238   :  { %v1881_v0 = vpack.c.bf16 %v4041_v9, %v4041_v9  ;;  %v4045_v8 = vmax.f32 %v4044_v6, 0.0  ;;  %v4047_v26 = vmax.f32 %v4046_v39, 0.0  ;;  %v4048_v55 = vld [vmem:[#allocation20_spill] sm:$0xff]  ;;  %1662 = vst.msk [vmem:[%s3845_s4 + $0xa0] sm:$0xf] %vm1621_vm1, %v1874_v61  ;;  %v4051_v24 = vmax.f32 %v3982_v18, 0.0 }
 0x239   :  { %v1882_v52 = vpack.c.bf16 %v4043_v41, %v4043_v41  ;;  %v4049_v63 = vmax.f32 %v4048_v55, 0.0  ;;  %1663 = vst.msk [vmem:[%s3845_s4 + $0xa4] sm:$0xf] %vm1621_vm1, %v1875_v28  ;;  %1664 = vst.msk [vmem:[%s3845_s4 + $0xa8] sm:$0xf] %vm1621_vm1, %v1876_v5  ;;  %v1886_v43 = vpack.c.bf16 %v4050_v32, %v4050_v32  ;;  %v4052_v3 = vmax.f32 %v3291_v10, 0.0 }
 0x23a   :  { %v1883_v19 = vpack.c.bf16 %v4045_v8, %v4045_v8  ;;  %v1884_v1 = vpack.c.bf16 %v4047_v26, %v4047_v26  ;;  %1665 = vst.msk [vmem:[%s3845_s4 + $0xac] sm:$0xf] %vm1621_vm1, %v1877_v57  ;;  %v1887_v35 = vpack.c.bf16 %v4051_v24, %v4051_v24  ;;  %v4053_v54 = vmax.f32 %v3295_v21, 0.0  ;;  %1666 = vst.msk [vmem:[%s3845_s4 + $0xb0] sm:$0xf] %vm1621_vm1, %v1878_v37 }
 0x23b   :  { %v1885_v44 = vpack.c.bf16 %v4049_v63, %v4049_v63  ;;  %v1888_v48 = vpack.c.bf16 %v4052_v3, %v4052_v3  ;;  %1667 = vst.msk [vmem:[%s3845_s4 + $0xb4] sm:$0xf] %vm1621_vm1, %v1879_v53  ;;  %1668 = vst.msk [vmem:[%s3845_s4 + $0xb8] sm:$0xf] %vm1621_vm1, %v1880_v36  ;;  %v4054_v30 = vmax.f32 %v3299_v4, 0.0  ;;  %v4055_v10 = vmax.f32 %v3303_v60, 0.0 }
 0x23c   :  { %v1889_v29 = vpack.c.bf16 %v4053_v54, %v4053_v54  ;;  %1669 = vst.msk [vmem:[%s3845_s4 + $0xbc] sm:$0xf] %vm1621_vm1, %v1881_v0  ;;  %v4056_v47 = vmax.f32 %v3983_v59, 0.0  ;;  %v4057_v38 = vmax.f32 %v3984_v20, 0.0  ;;  %1670 = vst.msk [vmem:[%s3845_s4 + $0xc0] sm:$0xf] %vm1621_vm1, %v1882_v52 }
 0x23d   :  { %v1890_v18 = vpack.c.bf16 %v4054_v30, %v4054_v30  ;;  %v1891_v21 = vpack.c.bf16 %v4055_v10, %v4055_v10  ;;  %1671 = vst.msk [vmem:[%s3845_s4 + $0xc4] sm:$0xf] %vm1621_vm1, %v1883_v19  ;;  %1672 = vst.msk [vmem:[%s3845_s4 + $0xc8] sm:$0xf] %vm1621_vm1, %v1884_v1  ;;  %v4058_v59 = vmax.f32 %v3985_v62, 0.0  ;;  %v4059_v60 = vmax.f32 %v3986_v46, 0.0 }
 0x23e   :  { %v1892_v7 = vpack.c.bf16 %v4056_v47, %v4056_v47  ;;  %v1893_v25 = vpack.c.bf16 %v4057_v38, %v4057_v38  ;;  %1673 = vst.msk [vmem:[%s3845_s4 + $0xcc] sm:$0xf] %vm1621_vm1, %v1885_v44  ;;  %v4060_v31 = vmax.f32 %v3987_v45, 0.0  ;;  %v4061_v42 = vmax.f32 %v3327_v50, 0.0  ;;  %1674 = vst.msk [vmem:[%s3845_s4 + $0xd0] sm:$0xf] %vm1621_vm1, %v1886_v43 }
 0x23f   :  { %v1894_v4 = vpack.c.bf16 %v4058_v59, %v4058_v59  ;;  %v1895_v20 = vpack.c.bf16 %v4059_v60, %v4059_v60  ;;  %1675 = vst.msk [vmem:[%s3845_s4 + $0xd4] sm:$0xf] %vm1621_vm1, %v1887_v35  ;;  %1676 = vst.msk [vmem:[%s3845_s4 + $0xd8] sm:$0xf] %vm1621_vm1, %v1888_v48 }
 0x240   :  { %v1896_v16 = vpack.c.bf16 %v4060_v31, %v4060_v31  ;;  %v1897_v2 = vpack.c.bf16 %v4061_v42, %v4061_v42  ;;  %1677 = vst.msk [vmem:[%s3845_s4 + $0xdc] sm:$0xf] %vm1621_vm1, %v1889_v29  ;;  %1678 = vst.msk [vmem:[%s3845_s4 + $0xe0] sm:$0xf] %vm1621_vm1, %v1890_v18 }
 0x241   :  { %1679 = vst.msk [vmem:[%s3845_s4 + $0xe4] sm:$0xf] %vm1621_vm1, %v1891_v21  ;;  %1680 = vst.msk [vmem:[%s3845_s4 + $0xe8] sm:$0xf] %vm1621_vm1, %v1892_v7 }
 0x242   :  { %1681 = vst.msk [vmem:[%s3845_s4 + $0xec] sm:$0xf] %vm1621_vm1, %v1893_v25  ;;  %1682 = vst.msk [vmem:[%s3845_s4 + $0xf0] sm:$0xf] %vm1621_vm1, %v1894_v4 }
 0x243   :  { %1683 = vst.msk [vmem:[%s3845_s4 + $0xf4] sm:$0xf] %vm1621_vm1, %v1895_v20  ;;  %1684 = vst.msk [vmem:[%s3845_s4 + $0xf8] sm:$0xf] %vm1621_vm1, %v1896_v16 }
 0x244   :  { %1685 = vst.msk [vmem:[%s3845_s4 + $0xfc] sm:$0xf] %vm1621_vm1, %v1897_v2 }

// kernel: discriminator2_forward.6
= control target key start
LH: loop header
LB: loop body
LE: loop exit
PB: predicated region body
PF: predicated region fallthrough
CT: control target
= control target key end

     0   :  { %vm660_vm0 = vcmask 523264   ;;  %vm886_vm1 = vcmask 519168   ;;  %s1616_s1 = inlined_call_operand.vmem [shape: bf16[512,64], index: 1, kind: input, shape index: {}]   ;;  %s1617_s0 = inlined_call_operand.vmem [shape: bf16[128,512], index: 0, kind: input, shape index: {}]   ;;  %s1618_s2 = inlined_call_operand.vmem [shape: f32[1,64], index: 2, kind: input, shape index: {}]   ;;  %s1619_s3 = inlined_call_operand.vmem [shape: f32[1,64], index: 3, kind: input, shape index: {}]   ;;  %s1620_s4 = inlined_call_operand.vmem [shape: bf16[128,64], index: 4, kind: output, shape index: {}]  }
   0x1   :  { %v1131_v0 = vld [vmem:[%s1616_s1 + $0x40] sm:$0xff]   ;;  %v1135_v4 = vld [vmem:[%s1616_s1 + $0x48] sm:$0xff]   ;;  %v1139_v8 = vld [vmem:[%s1616_s1 + $0x50] sm:$0xff]  }
   0x2   :  { %v1132_v1 = vld [vmem:[%s1616_s1 + $0xc0] sm:$0xff]   ;;  %1003 = vmatprep.subr.bf16.mxu0 %v1131_v0  ;;  %v1136_v5 = vld [vmem:[%s1616_s1 + $0xc8] sm:$0xff]   ;;  %v1140_v9 = vld [vmem:[%s1616_s1 + $0xd0] sm:$0xff]  }
   0x3   :  { %v1133_v2 = vld [vmem:[%s1616_s1] sm:$0xff]   ;;  %1067 = vmatprep.subr.bf16.mxu1 %v1132_v1  ;;  %v1137_v6 = vld [vmem:[%s1616_s1 + $0x8] sm:$0xff]   ;;  %v1141_v10 = vld [vmem:[%s1616_s1 + $0x10] sm:$0xff]  }
   0x4   :  { %v1134_v3 = vld [vmem:[%s1616_s1 + $0x80] sm:$0xff]   ;;  %1004 = vmatpush3.bf16.msra.mxu0 %v1133_v2  ;;  %v1138_v7 = vld [vmem:[%s1616_s1 + $0x88] sm:$0xff]   ;;  %v1142_v11 = vld [vmem:[%s1616_s1 + $0x90] sm:$0xff]  }
   0x5   :  { %1068 = vmatpush3.bf16.msra.mxu1 %v1134_v3  ;;  %1005 = vmatprep.subr.bf16.mxu0 %v1135_v4  ;;  %v1143_v12 = vld [vmem:[%s1616_s1 + $0x58] sm:$0xff]   ;;  %v1147_v16 = vld [vmem:[%s1616_s1 + $0x60] sm:$0xff]   ;;  %v1151_v20 = vld [vmem:[%s1616_s1 + $0x68] sm:$0xff]  }
   0x6   :  { %1069 = vmatprep.subr.bf16.mxu1 %v1136_v5  ;;  %v1144_v13 = vld [vmem:[%s1616_s1 + $0xd8] sm:$0xff]   ;;  %v1148_v17 = vld [vmem:[%s1616_s1 + $0xe0] sm:$0xff]   ;;  %v1152_v21 = vld [vmem:[%s1616_s1 + $0xe8] sm:$0xff]  }
   0x7   :  { %v1145_v14 = vld [vmem:[%s1616_s1 + $0x18] sm:$0xff]   ;;  %v1149_v18 = vld [vmem:[%s1616_s1 + $0x20] sm:$0xff]   ;;  %v1153_v22 = vld [vmem:[%s1616_s1 + $0x28] sm:$0xff]  }
   0x8   :  { %1006 = vmatpush3.bf16.msra.mxu0 %v1137_v6  ;;  %v1146_v15 = vld [vmem:[%s1616_s1 + $0x98] sm:$0xff]   ;;  %v1150_v19 = vld [vmem:[%s1616_s1 + $0xa0] sm:$0xff]   ;;  %v1154_v23 = vld [vmem:[%s1616_s1 + $0xa8] sm:$0xff]  }
   0x9   :  { %1070 = vmatpush3.bf16.msra.mxu1 %v1138_v7  ;;  %1007 = vmatprep.subr.bf16.mxu0 %v1139_v8  ;;  %v1155_v24 = vld [vmem:[%s1616_s1 + $0x70] sm:$0xff]   ;;  %v1159_v28 = vld [vmem:[%s1616_s1 + $0x78] sm:$0xff]  }
   0xa   :  { %1071 = vmatprep.subr.bf16.mxu1 %v1140_v9  ;;  %v1156_v25 = vld [vmem:[%s1616_s1 + $0xf0] sm:$0xff]   ;;  %v1160_v29 = vld [vmem:[%s1616_s1 + $0xf8] sm:$0xff]  }
   0xb   :  { %v1157_v26 = vld [vmem:[%s1616_s1 + $0x30] sm:$0xff]   ;;  %v1161_v30 = vld [vmem:[%s1616_s1 + $0x38] sm:$0xff]  }
   0xc   :  { %1008 = vmatpush3.bf16.msra.mxu0 %v1141_v10  ;;  %v1158_v27 = vld [vmem:[%s1616_s1 + $0xb0] sm:$0xff]   ;;  %v1162_v31 = vld [vmem:[%s1616_s1 + $0xb8] sm:$0xff]  }
   0xd   :  { %1072 = vmatpush3.bf16.msra.mxu1 %v1142_v11  ;;  %1009 = vmatprep.subr.bf16.mxu0 %v1143_v12  ;;  %v1163_v32 = vld [vmem:[%s1617_s0] ss:$16 sps:$4 sm:$0xff]   ;;  %v1165_v33 = vld [vmem:[%s1617_s0 + $0x4] ss:$16 sps:$4 sm:$0xff]   ;;  %v1166_v34 = vld [vmem:[%s1617_s0 + $0x8] ss:$16 sps:$4 sm:$0xff]  }
   0xe   :  { %1073 = vmatprep.subr.bf16.mxu1 %v1144_v13  ;;  %v1168_v35 = vld [vmem:[%s1617_s0 + $0xc] ss:$16 sps:$4 sm:$0xff]   ;;  %498 = vmatprep.mubr.bf16.mxu0 %v1165_v33  ;;  %v1169_v36 = vld [vmem:[%s1617_s0 + $0x24] ss:$16 sps:$4 sm:$0xff]   ;;  %v1173_v38 = vld [vmem:[%s1617_s0 + $0x20] ss:$16 sps:$4 sm:$0xff]  }
   0xf   :  { %595 = vmatprep.mubr.bf16.mxu1 %v1168_v35  ;;  %v1171_v37 = vld [vmem:[%s1617_s0 + $0x2c] ss:$16 sps:$4 sm:$0xff]   ;;  %v1174_v39 = vld [vmem:[%s1617_s0 + $0x28] ss:$16 sps:$4 sm:$0xff]   ;;  %v1175_v40 = vld [vmem:[%s1617_s0 + $0x44] ss:$16 sps:$4 sm:$0xff]  }
  0x10   :  { %1010 = vmatpush3.bf16.msra.mxu0 %v1145_v14  ;;  %v1177_v41 = vld [vmem:[%s1617_s0 + $0x4c] ss:$16 sps:$4 sm:$0xff]   ;;  %v1179_v42 = vld [vmem:[%s1617_s0 + $0x40] ss:$16 sps:$4 sm:$0xff]   ;;  %v1180_v43 = vld [vmem:[%s1617_s0 + $0x48] ss:$16 sps:$4 sm:$0xff]  }
  0x11   :  { %1074 = vmatpush3.bf16.msra.mxu1 %v1146_v15  ;;  %1011 = vmatprep.subr.bf16.mxu0 %v1147_v16  ;;  %v1181_v44 = vld [vmem:[%s1617_s0 + $0x64] ss:$16 sps:$4 sm:$0xff]   ;;  %v1183_v45 = vld [vmem:[%s1617_s0 + $0x6c] ss:$16 sps:$4 sm:$0xff]   ;;  %v1185_v46 = vld [vmem:[%s1617_s0 + $0x60] ss:$16 sps:$4 sm:$0xff]  }
  0x12   :  { %1075 = vmatprep.subr.bf16.mxu1 %v1148_v17  ;;  %v1186_v47 = vld [vmem:[%s1617_s0 + $0x68] ss:$16 sps:$4 sm:$0xff]   ;;  %v1187_v48 = vld [vmem:[%s1617_s0 + $0x84] ss:$16 sps:$4 sm:$0xff]   ;;  %v1189_v49 = vld [vmem:[%s1617_s0 + $0x8c] ss:$16 sps:$4 sm:$0xff]  }
  0x13   :  { %v1191_v50 = vld [vmem:[%s1617_s0 + $0x80] ss:$16 sps:$4 sm:$0xff]   ;;  %v1192_v51 = vld [vmem:[%s1617_s0 + $0x88] ss:$16 sps:$4 sm:$0xff]   ;;  %v1193_v52 = vld [vmem:[%s1617_s0 + $0xa4] ss:$16 sps:$4 sm:$0xff]  }
  0x14   :  { %1012 = vmatpush3.bf16.msra.mxu0 %v1149_v18  ;;  %v1195_v53 = vld [vmem:[%s1617_s0 + $0xac] ss:$16 sps:$4 sm:$0xff]   ;;  %v1197_v54 = vld [vmem:[%s1617_s0 + $0xa0] ss:$16 sps:$4 sm:$0xff]   ;;  %v1198_v55 = vld [vmem:[%s1617_s0 + $0xa8] ss:$16 sps:$4 sm:$0xff]  }
  0x15   :  { %1076 = vmatpush3.bf16.msra.mxu1 %v1150_v19  ;;  %1013 = vmatprep.subr.bf16.mxu0 %v1151_v20  ;;  %v1199_v56 = vld [vmem:[%s1617_s0 + $0xc4] ss:$16 sps:$4 sm:$0xff]   ;;  %v1201_v57 = vld [vmem:[%s1617_s0 + $0xcc] ss:$16 sps:$4 sm:$0xff]   ;;  %v1203_v58 = vld [vmem:[%s1617_s0 + $0xc0] ss:$16 sps:$4 sm:$0xff]  }
  0x16   :  { %1077 = vmatprep.subr.bf16.mxu1 %v1152_v21  ;;  %v1204_v59 = vld [vmem:[%s1617_s0 + $0xc8] ss:$16 sps:$4 sm:$0xff]   ;;  %v1205_v60 = vld [vmem:[%s1617_s0 + $0xe4] ss:$16 sps:$4 sm:$0xff]   ;;  %v1207_v61 = vld [vmem:[%s1617_s0 + $0xec] ss:$16 sps:$4 sm:$0xff]  }
  0x17   :  { %v1209_v62 = vld [vmem:[%s1617_s0 + $0xe0] ss:$16 sps:$4 sm:$0xff]   ;;  %v1210_v63 = vld [vmem:[%s1617_s0 + $0xe8] ss:$16 sps:$4 sm:$0xff]  }
  0x18   :  { %1014 = vmatpush3.bf16.msra.mxu0 %v1153_v22 }
  0x19   :  { %1078 = vmatpush3.bf16.msra.mxu1 %v1154_v23  ;;  %1015 = vmatprep.subr.bf16.mxu0 %v1155_v24 }
  0x1a   :  { %1079 = vmatprep.subr.bf16.mxu1 %v1156_v25 }
  0x1c   :  { %1016 = vmatpush3.bf16.msra.mxu0 %v1157_v26 }
  0x1d   :  { %1080 = vmatpush3.bf16.msra.mxu1 %v1158_v27  ;;  %1017 = vmatprep.subr.bf16.mxu0 %v1159_v28 }
  0x1e   :  { %1081 = vmatprep.subr.bf16.mxu1 %v1160_v29 }
  0x20   :  { %1018 = vmatpush3.bf16.msra.mxu0 %v1161_v30 }
  0x21   :  { %1082 = vmatpush3.bf16.msra.mxu1 %v1162_v31 }
  0x23   :  { %499 = vmatmul.mubr.bf16.vlgmr.msra.gmra.mrb[0].mxu0 %v1163_v32 }
  0x24   :  { %596 = vmatmul.mubr.bf16.vlgmr.msra.gmra.mrb[0].mxu1 %v1166_v34  ;;  %506 = vmatprep.mubr.bf16.mxu0 %v1169_v36 }
  0x25   :  { %603 = vmatprep.mubr.bf16.mxu1 %v1171_v37 }
  0x2b   :  { %507 = vmatmul.mubr.bf16.gmra.mrb[4].mxu0 %v1173_v38 }
  0x2c   :  { %604 = vmatmul.mubr.bf16.gmra.mrb[4].mxu1 %v1174_v39  ;;  %514 = vmatprep.mubr.bf16.mxu0 %v1175_v40 }
  0x2d   :  { %611 = vmatprep.mubr.bf16.mxu1 %v1177_v41 }
  0x33   :  { %515 = vmatmul.mubr.bf16.gmra.mrb[8].mxu0 %v1179_v42 }
  0x34   :  { %612 = vmatmul.mubr.bf16.gmra.mrb[8].mxu1 %v1180_v43  ;;  %522 = vmatprep.mubr.bf16.mxu0 %v1181_v44 }
  0x35   :  { %619 = vmatprep.mubr.bf16.mxu1 %v1183_v45 }
  0x3b   :  { %523 = vmatmul.mubr.bf16.gmra.mrb[12].mxu0 %v1185_v46 }
  0x3c   :  { %620 = vmatmul.mubr.bf16.gmra.mrb[12].mxu1 %v1186_v47  ;;  %530 = vmatprep.mubr.bf16.mxu0 %v1187_v48 }
  0x3d   :  { %627 = vmatprep.mubr.bf16.mxu1 %v1189_v49 }
  0x43   :  { %531 = vmatmul.mubr.bf16.gmra.mrb[16].mxu0 %v1191_v50 }
  0x44   :  { %628 = vmatmul.mubr.bf16.gmra.mrb[16].mxu1 %v1192_v51  ;;  %538 = vmatprep.mubr.bf16.mxu0 %v1193_v52 }
  0x45   :  { %635 = vmatprep.mubr.bf16.mxu1 %v1195_v53 }
  0x4b   :  { %539 = vmatmul.mubr.bf16.gmra.mrb[20].mxu0 %v1197_v54 }
  0x4c   :  { %636 = vmatmul.mubr.bf16.gmra.mrb[20].mxu1 %v1198_v55  ;;  %546 = vmatprep.mubr.bf16.mxu0 %v1199_v56 }
  0x4d   :  { %643 = vmatprep.mubr.bf16.mxu1 %v1201_v57 }
  0x53   :  { %547 = vmatmul.mubr.bf16.gmra.mrb[24].mxu0 %v1203_v58 }
  0x54   :  { %644 = vmatmul.mubr.bf16.gmra.mrb[24].mxu1 %v1204_v59  ;;  %554 = vmatprep.mubr.bf16.mxu0 %v1205_v60 }
  0x55   :  { %651 = vmatprep.mubr.bf16.mxu1 %v1207_v61 }
  0x5b   :  { %555 = vmatmul.mubr.bf16.gmra.mrb[28].mxu0 %v1209_v62 }
  0x5c   :  { %652 = vmatmul.mubr.bf16.gmra.mrb[28].mxu1 %v1210_v63 }
  0xf6   :  { %v1019_v0 = vpop.f32.mrb[0].mxu0 }
  0xf7   :  { %v1083_v1 = vpop.f32.mrb[0].mxu1  ;;  %v1020_v2 = vpop.f32.mrb[1].mxu0 }
  0xf8   :  { %v1021_v3 = vadd.f32 %v1020_v2, %v1019_v0  ;;  %v1084_v4 = vpop.f32.mrb[1].mxu1  ;;  %v1022_v5 = vpop.f32.mrb[2].mxu0 }
  0xf9   :  { %v1085_v6 = vadd.f32 %v1084_v4, %v1083_v1  ;;  %v1086_v7 = vpop.f32.mrb[2].mxu1  ;;  %v1023_v8 = vpop.f32.mrb[3].mxu0 }
  0xfa   :  { %v1024_v9 = vadd.f32 %v1023_v8, %v1022_v5  ;;  %v1087_v10 = vpop.f32.mrb[3].mxu1 }
  0xfb   :  { %v1430_v11 = vadd.f32 %v1085_v6, %v1021_v3  ;;  %v1088_v12 = vadd.f32 %v1087_v10, %v1086_v7 }
  0xfd   :  { %v1432_v13 = vadd.f32 %v1088_v12, %v1024_v9  ;;  %v698_v26 = vmul.f32 %v1430_v11, %v1430_v11  ;;  %v661_v30 = vsel %vm660_vm0, %v1430_v11, 0.0 }
  0xfe   :  { %v1025_v14 = vpop.f32.mrb[4].mxu0 }
  0xff   :  { %v1089_v15 = vpop.f32.mrb[4].mxu1  ;;  %v1026_v16 = vpop.f32.mrb[5].mxu0  ;;  %v699_v20 = vmul.f32 %v1432_v13, %v1432_v13  ;;  %v662_v27 = vsel %vm660_vm0, %v1432_v13, 0.0  ;;  %v714_v37 = vsel %vm660_vm0, %v698_v26, 0.0 }
 0x100   :  { %v1027_v17 = vadd.f32 %v1026_v16, %v1025_v14  ;;  %v1090_v18 = vpop.f32.mrb[5].mxu1  ;;  %v1028_v19 = vpop.f32.mrb[6].mxu0  ;;  %v663_v35 = vadd.f32 %v662_v27, %v661_v30 }
 0x101   :  { %v1091_v21 = vadd.f32 %v1090_v18, %v1089_v15  ;;  %v1092_v22 = vpop.f32.mrb[6].mxu1  ;;  %v1029_v23 = vpop.f32.mrb[7].mxu0  ;;  %v715_v31 = vsel %vm660_vm0, %v699_v20, 0.0 }
 0x102   :  { %v1030_v24 = vadd.f32 %v1029_v23, %v1028_v19  ;;  %v1093_v25 = vpop.f32.mrb[7].mxu1  ;;  %v716_v42 = vadd.f32 %v715_v31, %v714_v37 }
 0x103   :  { %v1440_v28 = vadd.f32 %v1091_v21, %v1027_v17  ;;  %v1094_v29 = vadd.f32 %v1093_v25, %v1092_v22 }
 0x105   :  { %v664_v32 = vsel %vm660_vm0, %v1440_v28, 0.0  ;;  %v700_v33 = vmul.f32 %v1440_v28, %v1440_v28  ;;  %v1449_v34 = vadd.f32 %v1094_v29, %v1030_v24 }
 0x106   :  { %v1031_v36 = vpop.f32.mrb[8].mxu0  ;;  %v665_v43 = vadd.f32 %v664_v32, %v663_v35 }
 0x107   :  { %v717_v38 = vsel %vm660_vm0, %v700_v33, 0.0  ;;  %v701_v39 = vmul.f32 %v1449_v34, %v1449_v34  ;;  %v1095_v40 = vpop.f32.mrb[8].mxu1  ;;  %v1032_v41 = vpop.f32.mrb[9].mxu0  ;;  %v666_v47 = vsel %vm660_vm0, %v1449_v34, 0.0 }
 0x108   :  { %v1033_v44 = vadd.f32 %v1032_v41, %v1031_v36  ;;  %v1096_v45 = vpop.f32.mrb[9].mxu1  ;;  %v1034_v46 = vpop.f32.mrb[10].mxu0  ;;  %v718_v51 = vadd.f32 %v717_v38, %v716_v42  ;;  %v667_v57 = vadd.f32 %v666_v47, %v665_v43 }
 0x109   :  { %v1097_v48 = vadd.f32 %v1096_v45, %v1095_v40  ;;  %v1098_v49 = vpop.f32.mrb[10].mxu1  ;;  %v1035_v50 = vpop.f32.mrb[11].mxu0  ;;  %v719_v54 = vsel %vm660_vm0, %v701_v39, 0.0 }
 0x10a   :  { %v1036_v52 = vadd.f32 %v1035_v50, %v1034_v46  ;;  %v1099_v53 = vpop.f32.mrb[11].mxu1  ;;  %v720_v61 = vadd.f32 %v719_v54, %v718_v51 }
 0x10b   :  { %v1458_v55 = vadd.f32 %v1097_v48, %v1033_v44  ;;  %v1100_v56 = vadd.f32 %v1099_v53, %v1098_v49 }
 0x10d   :  { %v668_v58 = vsel %vm660_vm0, %v1458_v55, 0.0  ;;  %v702_v59 = vmul.f32 %v1458_v55, %v1458_v55  ;;  %v1464_v60 = vadd.f32 %v1100_v56, %v1036_v52 }
 0x10e   :  { %v669_v62 = vadd.f32 %v668_v58, %v667_v57  ;;  %v1037_v63 = vpop.f32.mrb[12].mxu0 }
 0x10f   :  { %v721_v0 = vsel %vm660_vm0, %v702_v59, 0.0  ;;  %v670_v1 = vsel %vm660_vm0, %v1464_v60, 0.0  ;;  %v703_v2 = vmul.f32 %v1464_v60, %v1464_v60  ;;  %v1101_v3 = vpop.f32.mrb[12].mxu1  ;;  %v1038_v4 = vpop.f32.mrb[13].mxu0 }
 0x110   :  { %v722_v5 = vadd.f32 %v721_v0, %v720_v61  ;;  %v671_v6 = vadd.f32 %v670_v1, %v669_v62  ;;  %v1039_v7 = vadd.f32 %v1038_v4, %v1037_v63  ;;  %v1102_v8 = vpop.f32.mrb[13].mxu1  ;;  %v1040_v9 = vpop.f32.mrb[14].mxu0 }
 0x111   :  { %v723_v10 = vsel %vm660_vm0, %v703_v2, 0.0  ;;  %v1103_v12 = vadd.f32 %v1102_v8, %v1101_v3  ;;  %v1104_v14 = vpop.f32.mrb[14].mxu1  ;;  %v1041_v15 = vpop.f32.mrb[15].mxu0 }
 0x112   :  { %v724_v16 = vadd.f32 %v723_v10, %v722_v5  ;;  %v1042_v17 = vadd.f32 %v1041_v15, %v1040_v9  ;;  %v1105_v18 = vpop.f32.mrb[15].mxu1 }
 0x113   :  { %v1472_v19 = vadd.f32 %v1103_v12, %v1039_v7  ;;  %v1106_v20 = vadd.f32 %v1105_v18, %v1104_v14 }
 0x115   :  { %v672_v21 = vsel %vm660_vm0, %v1472_v19, 0.0  ;;  %v704_v22 = vmul.f32 %v1472_v19, %v1472_v19  ;;  %v1478_v23 = vadd.f32 %v1106_v20, %v1042_v17 }
 0x116   :  { %v673_v24 = vadd.f32 %v672_v21, %v671_v6  ;;  %v1043_v25 = vpop.f32.mrb[16].mxu0 }
 0x117   :  { %v725_v26 = vsel %vm660_vm0, %v704_v22, 0.0  ;;  %v674_v27 = vsel %vm660_vm0, %v1478_v23, 0.0  ;;  %v705_v29 = vmul.f32 %v1478_v23, %v1478_v23  ;;  %v1107_v30 = vpop.f32.mrb[16].mxu1  ;;  %v1044_v31 = vpop.f32.mrb[17].mxu0 }
 0x118   :  { %v726_v32 = vadd.f32 %v725_v26, %v724_v16  ;;  %v675_v33 = vadd.f32 %v674_v27, %v673_v24  ;;  %v1045_v35 = vadd.f32 %v1044_v31, %v1043_v25  ;;  %v1108_v36 = vpop.f32.mrb[17].mxu1  ;;  %v1046_v37 = vpop.f32.mrb[18].mxu0 }
 0x119   :  { %v727_v38 = vsel %vm660_vm0, %v705_v29, 0.0  ;;  %v1109_v39 = vadd.f32 %v1108_v36, %v1107_v30  ;;  %v1110_v40 = vpop.f32.mrb[18].mxu1  ;;  %v1047_v41 = vpop.f32.mrb[19].mxu0 }
 0x11a   :  { %v728_v42 = vadd.f32 %v727_v38, %v726_v32  ;;  %v1048_v43 = vadd.f32 %v1047_v41, %v1046_v37  ;;  %v1111_v44 = vpop.f32.mrb[19].mxu1 }
 0x11b   :  { %v1486_v45 = vadd.f32 %v1109_v39, %v1045_v35  ;;  %v1112_v46 = vadd.f32 %v1111_v44, %v1110_v40 }
 0x11d   :  { %v676_v47 = vsel %vm660_vm0, %v1486_v45, 0.0  ;;  %v706_v48 = vmul.f32 %v1486_v45, %v1486_v45  ;;  %v1492_v49 = vadd.f32 %v1112_v46, %v1048_v43 }
 0x11e   :  { %v677_v50 = vadd.f32 %v676_v47, %v675_v33  ;;  %v1049_v51 = vpop.f32.mrb[20].mxu0 }
 0x11f   :  { %v729_v52 = vsel %vm660_vm0, %v706_v48, 0.0  ;;  %v678_v53 = vsel %vm660_vm0, %v1492_v49, 0.0  ;;  %v707_v54 = vmul.f32 %v1492_v49, %v1492_v49  ;;  %v1113_v56 = vpop.f32.mrb[20].mxu1  ;;  %v1050_v57 = vpop.f32.mrb[21].mxu0 }
 0x120   :  { %v730_v58 = vadd.f32 %v729_v52, %v728_v42  ;;  %v679_v59 = vadd.f32 %v678_v53, %v677_v50  ;;  %v1051_v61 = vadd.f32 %v1050_v57, %v1049_v51  ;;  %v1114_v62 = vpop.f32.mrb[21].mxu1  ;;  %v1052_v63 = vpop.f32.mrb[22].mxu0 }
 0x121   :  { %v731_v0 = vsel %vm660_vm0, %v707_v54, 0.0  ;;  %v1115_v1 = vadd.f32 %v1114_v62, %v1113_v56  ;;  %v1116_v2 = vpop.f32.mrb[22].mxu1  ;;  %v1053_v3 = vpop.f32.mrb[23].mxu0 }
 0x122   :  { %v732_v4 = vadd.f32 %v731_v0, %v730_v58  ;;  %v1054_v5 = vadd.f32 %v1053_v3, %v1052_v63  ;;  %v1117_v6 = vpop.f32.mrb[23].mxu1 }
 0x123   :  { %v1500_v7 = vadd.f32 %v1115_v1, %v1051_v61  ;;  %v1118_v8 = vadd.f32 %v1117_v6, %v1116_v2 }
 0x125   :  { %v680_v9 = vsel %vm660_vm0, %v1500_v7, 0.0  ;;  %v708_v10 = vmul.f32 %v1500_v7, %v1500_v7  ;;  %v1506_v12 = vadd.f32 %v1118_v8, %v1054_v5 }
 0x126   :  { %v681_v14 = vadd.f32 %v680_v9, %v679_v59  ;;  %v1055_v15 = vpop.f32.mrb[24].mxu0 }
 0x127   :  { %v733_v16 = vsel %vm660_vm0, %v708_v10, 0.0  ;;  %v682_v17 = vsel %vm660_vm0, %v1506_v12, 0.0  ;;  %v709_v18 = vmul.f32 %v1506_v12, %v1506_v12  ;;  %v1119_v20 = vpop.f32.mrb[24].mxu1  ;;  %v1056_v21 = vpop.f32.mrb[25].mxu0 }
 0x128   :  { %v734_v22 = vadd.f32 %v733_v16, %v732_v4  ;;  %v683_v24 = vadd.f32 %v682_v17, %v681_v14  ;;  %v1057_v25 = vadd.f32 %v1056_v21, %v1055_v15  ;;  %v1120_v26 = vpop.f32.mrb[25].mxu1  ;;  %v1058_v27 = vpop.f32.mrb[26].mxu0 }
 0x129   :  { %v735_v29 = vsel %vm660_vm0, %v709_v18, 0.0  ;;  %v1121_v30 = vadd.f32 %v1120_v26, %v1119_v20  ;;  %v1122_v31 = vpop.f32.mrb[26].mxu1  ;;  %v1059_v32 = vpop.f32.mrb[27].mxu0 }
 0x12a   :  { %v736_v33 = vadd.f32 %v735_v29, %v734_v22  ;;  %v1060_v35 = vadd.f32 %v1059_v32, %v1058_v27  ;;  %v1123_v36 = vpop.f32.mrb[27].mxu1 }
 0x12b   :  { %v1514_v37 = vadd.f32 %v1121_v30, %v1057_v25  ;;  %v1124_v38 = vadd.f32 %v1123_v36, %v1122_v31 }
 0x12d   :  { %v684_v39 = vsel %vm660_vm0, %v1514_v37, 0.0  ;;  %v710_v40 = vmul.f32 %v1514_v37, %v1514_v37  ;;  %v1520_v41 = vadd.f32 %v1124_v38, %v1060_v35 }
 0x12e   :  { %v685_v42 = vadd.f32 %v684_v39, %v683_v24  ;;  %v1061_v43 = vpop.f32.mrb[28].mxu0 }
 0x12f   :  { %v737_v44 = vsel %vm660_vm0, %v710_v40, 0.0  ;;  %v686_v46 = vsel %vm660_vm0, %v1520_v41, 0.0  ;;  %v711_v47 = vmul.f32 %v1520_v41, %v1520_v41  ;;  %v1125_v48 = vpop.f32.mrb[28].mxu1  ;;  %v1062_v50 = vpop.f32.mrb[29].mxu0  ;;  %v763_v40 = vlaneseq }
 0x130   :  { %v738_v51 = vadd.f32 %v737_v44, %v736_v33  ;;  %v687_v52 = vadd.f32 %v686_v46, %v685_v42  ;;  %v1063_v53 = vadd.f32 %v1062_v50, %v1061_v43  ;;  %v1126_v54 = vpop.f32.mrb[29].mxu1  ;;  %v1064_v56 = vpop.f32.mrb[30].mxu0  ;;  %v755_v43 = vld [vmem:[%s1618_s2] sm:$0x1] }
 0x131   :  { %v739_v57 = vsel %vm660_vm0, %v711_v47, 0.0  ;;  %v1127_v58 = vadd.f32 %v1126_v54, %v1125_v48  ;;  %v1128_v59 = vpop.f32.mrb[30].mxu1  ;;  %v1065_v61 = vpop.f32.mrb[31].mxu0  ;;  %v764_v42 = vshrl.u32 %v763_v40, 7  ;;  %v759_v48 = vld [vmem:[%s1619_s3] sm:$0x1] }
 0x132   :  { %v740_v62 = vadd.f32 %v739_v57, %v738_v51  ;;  %v1066_v63 = vadd.f32 %v1065_v61, %v1064_v56  ;;  %v1129_v0 = vpop.f32.mrb[31].mxu1 }
 0x133   :  { %v654_v1 = vadd.f32 %v1127_v58, %v1063_v53  ;;  %v1130_v2 = vadd.f32 %v1129_v0, %v1128_v59  ;;  %v765_v44 = vsub.s32 0, %v764_v42 }
 0x135   :  { %v688_v3 = vsel %vm660_vm0, %v654_v1, 0.0  ;;  %v712_v4 = vmul.f32 %v654_v1, %v654_v1  ;;  %v657_v5 = vadd.f32 %v1130_v2, %v1066_v63 }
 0x136   :  { %v689_v6 = vadd.f32 %v688_v3, %v687_v52 }
 0x137   :  { %v741_v8 = vsel %vm660_vm0, %v712_v4, 0.0  ;;  %v690_v9 = vsel %vm660_vm0, %v657_v5, 0.0  ;;  %v713_v10 = vmul.f32 %v657_v5, %v657_v5 }
 0x138   :  { %v742_v14 = vadd.f32 %v741_v8, %v740_v62  ;;  %v691_v15 = vadd.f32 %v690_v9, %v689_v6 }
 0x139   :  { %v743_v16 = vsel %vm660_vm0, %v713_v10, 0.0 }
 0x13a   :  { %v692_v17 = vrot.slane %v691_v15, 4  ;;  %v744_v18 = vadd.f32 %v743_v16, %v742_v14 }
 0x13c   :  { %v693_v20 = vadd.f32 %v692_v17, %v691_v15  ;;  %v745_v21 = vrot.slane %v744_v18, 4 }
 0x13e   :  { %v694_v22 = vrot.slane %v693_v20, 2  ;;  %v746_v24 = vadd.f32 %v745_v21, %v744_v18 }
 0x140   :  { %v695_v25 = vadd.f32 %v694_v22, %v693_v20  ;;  %v747_v26 = vrot.slane %v746_v24, 2 }
 0x142   :  { %v696_v27 = vrot.slane %v695_v25, 1  ;;  %v748_v29 = vadd.f32 %v747_v26, %v746_v24 }
 0x144   :  { %v697_v30 = vadd.f32 %v696_v27, %v695_v25  ;;  %v749_v31 = vrot.slane %v748_v29, 1 }
 0x146   :  { %v750_v32 = vadd.f32 %v749_v31, %v748_v29  ;;  %v751_v33 = vmul.f32 0.0078125, %v697_v30 }
 0x148   :  { %v752_v35 = vmul.f32 0.0078125, %v750_v32  ;;  %v753_v36 = vmul.f32 %v751_v33, %v751_v33 }
 0x14a   :  { %v754_v38 = vsub.f32 %v752_v35, %v753_v36 }
 0x14c   :  { %v756_v39 = vadd.f32 1e-05, %v754_v38 }
 0x14e   :  { %1211 = vrsqrt.f32 %v756_v39 }
 0x158   :  { %v1212_v46 = vpop.eup %1211 }
 0x159   :  { %v758_v47 = vmul.f32 %v1212_v46, %v755_v43 }
 0x15b   :  { %v760_v50 = vmul.f32 %v758_v47, %v751_v33  ;;  %v766_v51 = vrot.slane %v758_v47, %v765_v44 }
 0x15d   :  { %v761_v52 = vsub.f32 %v759_v48, %v760_v50  ;;  %v768_v53 = vmul.f32 %v766_v51, %v1430_v11  ;;  %v771_v54 = vmul.f32 %v766_v51, %v1449_v34  ;;  %v772_v56 = vmul.f32 %v766_v51, %v1458_v55 }
 0x15e   :  { %v773_v57 = vmul.f32 %v766_v51, %v1464_v60  ;;  %v774_v58 = vmul.f32 %v766_v51, %v1472_v19  ;;  %v775_v59 = vmul.f32 %v766_v51, %v1478_v23  ;;  %v776_v61 = vmul.f32 %v766_v51, %v1486_v45 }
 0x15f   :  { %v777_v62 = vmul.f32 %v766_v51, %v1492_v49  ;;  %v778_v63 = vmul.f32 %v766_v51, %v1500_v7  ;;  %v779_v0 = vmul.f32 %v766_v51, %v1506_v12  ;;  %v780_v11 = vmul.f32 %v766_v51, %v1514_v37 }
 0x160   :  { %v781_v34 = vmul.f32 %v766_v51, %v1520_v41  ;;  %v782_v2 = vmul.f32 %v766_v51, %v654_v1  ;;  %v769_v55 = vmul.f32 %v766_v51, %v1432_v13  ;;  %v770_v60 = vmul.f32 %v766_v51, %v1440_v28 }
 0x161   :  { %v783_v19 = vmul.f32 %v766_v51, %v657_v5  ;;  %v788_v3 = vrot.slane %v761_v52, %v765_v44 }
 0x163   :  { %v790_v23 = vadd.f32 %v788_v3, %v768_v53  ;;  %v791_v45 = vadd.f32 %v788_v3, %v769_v55  ;;  %v792_v4 = vadd.f32 %v788_v3, %v770_v60  ;;  %v793_v49 = vadd.f32 %v788_v3, %v771_v54 }
 0x164   :  { %v794_v6 = vadd.f32 %v788_v3, %v772_v56  ;;  %v795_v7 = vadd.f32 %v788_v3, %v773_v57  ;;  %v796_v8 = vadd.f32 %v788_v3, %v774_v58  ;;  %v797_v12 = vadd.f32 %v788_v3, %v775_v59 }
 0x165   :  { %v798_v9 = vadd.f32 %v788_v3, %v776_v61  ;;  %v799_v37 = vadd.f32 %v788_v3, %v777_v62  ;;  %v800_v10 = vadd.f32 %v788_v3, %v778_v63  ;;  %v801_v41 = vadd.f32 %v788_v3, %v779_v0 }
 0x166   :  { %v802_v1 = vadd.f32 %v788_v3, %v780_v11  ;;  %v803_v14 = vadd.f32 %v788_v3, %v781_v34  ;;  %v804_v13 = vadd.f32 %v788_v3, %v782_v2  ;;  %v805_v15 = vadd.f32 %v788_v3, %v783_v19 }
 0x167   :  { %v806_v28 = vmax.f32 %v790_v23, 0.0  ;;  %v807_v5 = vmax.f32 %v791_v45, 0.0  ;;  %v808_v16 = vmax.f32 %v792_v4, 0.0  ;;  %v809_v17 = vmax.f32 %v793_v49, 0.0 }
 0x168   :  { %v810_v18 = vmax.f32 %v794_v6, 0.0  ;;  %v811_v20 = vmax.f32 %v795_v7, 0.0  ;;  %v812_v21 = vmax.f32 %v796_v8, 0.0  ;;  %v813_v22 = vmax.f32 %v797_v12, 0.0 }
 0x169   :  { %v814_v24 = vmax.f32 %v798_v9, 0.0  ;;  %v815_v25 = vmax.f32 %v799_v37, 0.0  ;;  %v816_v26 = vmax.f32 %v800_v10, 0.0  ;;  %v817_v27 = vmax.f32 %v801_v41, 0.0 }
 0x16a   :  { %v818_v29 = vmax.f32 %v802_v1, 0.0  ;;  %v819_v30 = vmax.f32 %v803_v14, 0.0  ;;  %v820_v31 = vmax.f32 %v804_v13, 0.0  ;;  %v821_v32 = vmax.f32 %v805_v15, 0.0 }
 0x16b   :  { %v987_v33 = vpack.c.bf16 %v806_v28, %v806_v28  ;;  %v988_v35 = vpack.c.bf16 %v807_v5, %v807_v5  ;;  %v989_v36 = vpack.c.bf16 %v808_v16, %v808_v16  ;;  %v990_v38 = vpack.c.bf16 %v809_v17, %v809_v17 }
 0x16c   :  { %v991_v39 = vpack.c.bf16 %v810_v18, %v810_v18  ;;  %v992_v40 = vpack.c.bf16 %v811_v20, %v811_v20  ;;  %v993_v42 = vpack.c.bf16 %v812_v21, %v812_v21  ;;  %v994_v43 = vpack.c.bf16 %v813_v22, %v813_v22 }
 0x16d   :  { %v995_v44 = vpack.c.bf16 %v814_v24, %v814_v24  ;;  %v996_v46 = vpack.c.bf16 %v815_v25, %v815_v25  ;;  %v997_v47 = vpack.c.bf16 %v816_v26, %v816_v26  ;;  %v998_v48 = vpack.c.bf16 %v817_v27, %v817_v27  ;;  %887 = vst.msk [vmem:[%s1620_s4] sm:$0xf] %vm886_vm1, %v987_v33 }
 0x16e   :  { %888 = vst.msk [vmem:[%s1620_s4 + $0x4] sm:$0xf] %vm886_vm1, %v988_v35  ;;  %889 = vst.msk [vmem:[%s1620_s4 + $0x8] sm:$0xf] %vm886_vm1, %v989_v36  ;;  %v999_v50 = vpack.c.bf16 %v818_v29, %v818_v29  ;;  %v1000_v51 = vpack.c.bf16 %v819_v30, %v819_v30  ;;  %v1001_v52 = vpack.c.bf16 %v820_v31, %v820_v31 }
 0x16f   :  { %890 = vst.msk [vmem:[%s1620_s4 + $0xc] sm:$0xf] %vm886_vm1, %v990_v38  ;;  %v1002_v53 = vpack.c.bf16 %v821_v32, %v821_v32  ;;  %891 = vst.msk [vmem:[%s1620_s4 + $0x10] sm:$0xf] %vm886_vm1, %v991_v39 }
 0x170   :  { %892 = vst.msk [vmem:[%s1620_s4 + $0x14] sm:$0xf] %vm886_vm1, %v992_v40  ;;  %893 = vst.msk [vmem:[%s1620_s4 + $0x18] sm:$0xf] %vm886_vm1, %v993_v42 }
 0x171   :  { %894 = vst.msk [vmem:[%s1620_s4 + $0x1c] sm:$0xf] %vm886_vm1, %v994_v43  ;;  %895 = vst.msk [vmem:[%s1620_s4 + $0x20] sm:$0xf] %vm886_vm1, %v995_v44 }
 0x172   :  { %896 = vst.msk [vmem:[%s1620_s4 + $0x24] sm:$0xf] %vm886_vm1, %v996_v46  ;;  %897 = vst.msk [vmem:[%s1620_s4 + $0x28] sm:$0xf] %vm886_vm1, %v997_v47 }
 0x173   :  { %898 = vst.msk [vmem:[%s1620_s4 + $0x2c] sm:$0xf] %vm886_vm1, %v998_v48  ;;  %899 = vst.msk [vmem:[%s1620_s4 + $0x30] sm:$0xf] %vm886_vm1, %v999_v50 }
 0x174   :  { %900 = vst.msk [vmem:[%s1620_s4 + $0x34] sm:$0xf] %vm886_vm1, %v1000_v51  ;;  %901 = vst.msk [vmem:[%s1620_s4 + $0x38] sm:$0xf] %vm886_vm1, %v1001_v52 }
 0x175   :  { %902 = vst.msk [vmem:[%s1620_s4 + $0x3c] sm:$0xf] %vm886_vm1, %v1002_v53 }

// kernel: discriminator2_forward.7
= control target key start
LH: loop header
LB: loop body
LE: loop exit
PB: predicated region body
PF: predicated region fallthrough
CT: control target
= control target key end

     0   :  { %vm930_vm0 = vcmask 0   ;;  %s1501_s1 = inlined_call_operand.vmem [shape: bf16[1024,128], index: 1, kind: input, shape index: {}]   ;;  %s1502_s0 = inlined_call_operand.vmem [shape: bf16[32,1024], index: 0, kind: input, shape index: {}]   ;;  %s1503_s2 = inlined_call_operand.vmem [shape: f32[1,128], index: 2, kind: input, shape index: {}]   ;;  %s1504_s3 = inlined_call_operand.vmem [shape: f32[1,128], index: 3, kind: input, shape index: {}]   ;;  %s1505_s4 = inlined_call_operand.vmem [shape: f32[1,16,128], index: 4, kind: input, shape index: {}]   ;;  %s1506_s5 = inlined_call_operand.<no memory space> [shape: f32[1,1,1], index: 5, kind: input, shape index: {}]   ;;  %s1507_s6 = inlined_call_operand.vmem [shape: f32[2,1,1], index: 6, kind: output, shape index: {}]  }
   0x1   :  { %v1131_v0 = vld [vmem:[%s1501_s1 + $0x40] sm:$0xff]   ;;  %v1135_v4 = vld [vmem:[%s1501_s1 + $0x48] sm:$0xff]   ;;  %v1139_v8 = vld [vmem:[%s1501_s1 + $0x50] sm:$0xff]  }
   0x2   :  { %v1132_v1 = vld [vmem:[%s1501_s1 + $0xc0] sm:$0xff]   ;;  %1019 = vmatprep.subr.bf16.mxu0 %v1131_v0  ;;  %v1136_v5 = vld [vmem:[%s1501_s1 + $0xc8] sm:$0xff]   ;;  %v1140_v9 = vld [vmem:[%s1501_s1 + $0xd0] sm:$0xff]  }
   0x3   :  { %v1133_v2 = vld [vmem:[%s1501_s1] sm:$0xff]   ;;  %1047 = vmatprep.subr.bf16.mxu1 %v1132_v1  ;;  %v1137_v6 = vld [vmem:[%s1501_s1 + $0x8] sm:$0xff]   ;;  %v1141_v10 = vld [vmem:[%s1501_s1 + $0x10] sm:$0xff]  }
   0x4   :  { %v1134_v3 = vld [vmem:[%s1501_s1 + $0x80] sm:$0xff]   ;;  %1020 = vmatpush3.bf16.msra.mxu0 %v1133_v2  ;;  %v1138_v7 = vld [vmem:[%s1501_s1 + $0x88] sm:$0xff]   ;;  %v1142_v11 = vld [vmem:[%s1501_s1 + $0x90] sm:$0xff]  }
   0x5   :  { %1048 = vmatpush3.bf16.msra.mxu1 %v1134_v3  ;;  %1021 = vmatprep.subr.bf16.mxu0 %v1135_v4  ;;  %v1143_v12 = vld [vmem:[%s1501_s1 + $0x58] sm:$0xff]   ;;  %v1147_v16 = vld [vmem:[%s1501_s1 + $0x60] sm:$0xff]   ;;  %v1151_v20 = vld [vmem:[%s1501_s1 + $0x68] sm:$0xff]  }
   0x6   :  { %1049 = vmatprep.subr.bf16.mxu1 %v1136_v5  ;;  %v1144_v13 = vld [vmem:[%s1501_s1 + $0xd8] sm:$0xff]   ;;  %v1148_v17 = vld [vmem:[%s1501_s1 + $0xe0] sm:$0xff]   ;;  %v1152_v21 = vld [vmem:[%s1501_s1 + $0xe8] sm:$0xff]  }
   0x7   :  { %v1145_v14 = vld [vmem:[%s1501_s1 + $0x18] sm:$0xff]   ;;  %v1149_v18 = vld [vmem:[%s1501_s1 + $0x20] sm:$0xff]   ;;  %v1153_v22 = vld [vmem:[%s1501_s1 + $0x28] sm:$0xff]  }
   0x8   :  { %1022 = vmatpush3.bf16.msra.mxu0 %v1137_v6  ;;  %v1146_v15 = vld [vmem:[%s1501_s1 + $0x98] sm:$0xff]   ;;  %v1150_v19 = vld [vmem:[%s1501_s1 + $0xa0] sm:$0xff]   ;;  %v1154_v23 = vld [vmem:[%s1501_s1 + $0xa8] sm:$0xff]  }
   0x9   :  { %1050 = vmatpush3.bf16.msra.mxu1 %v1138_v7  ;;  %1023 = vmatprep.subr.bf16.mxu0 %v1139_v8  ;;  %v1155_v24 = vld [vmem:[%s1501_s1 + $0x70] sm:$0xff]   ;;  %v1159_v28 = vld [vmem:[%s1501_s1 + $0x78] sm:$0xff]   ;;  %v26_v32 = vld [vmem:[%s1502_s0] sm:$0xff] }
   0xa   :  { %1051 = vmatprep.subr.bf16.mxu1 %v1140_v9  ;;  %v1156_v25 = vld [vmem:[%s1501_s1 + $0xf0] sm:$0xff]   ;;  %v1160_v29 = vld [vmem:[%s1501_s1 + $0xf8] sm:$0xff]   ;;  %v30_v33 = vld [vmem:[%s1502_s0 + $0x20] sm:$0xff] }
   0xb   :  { %v1157_v26 = vld [vmem:[%s1501_s1 + $0x30] sm:$0xff]   ;;  %v1161_v30 = vld [vmem:[%s1501_s1 + $0x38] sm:$0xff]   ;;  %v27_v34 = vld [vmem:[%s1502_s0 + $0x8] sm:$0xff]  ;;  %v937_v35 = vcombine.low %v26_v32, %v30_v33  ;;  %v938_v36 = vcombine.high %v26_v32, %v30_v33 }
   0xc   :  { %1024 = vmatpush3.bf16.msra.mxu0 %v1141_v10  ;;  %v1158_v27 = vld [vmem:[%s1501_s1 + $0xb0] sm:$0xff]   ;;  %v1162_v31 = vld [vmem:[%s1501_s1 + $0xb8] sm:$0xff]   ;;  %v31_v37 = vld [vmem:[%s1502_s0 + $0x28] sm:$0xff] }
   0xd   :  { %1052 = vmatpush3.bf16.msra.mxu1 %v1142_v11  ;;  %1025 = vmatprep.subr.bf16.mxu0 %v1143_v12  ;;  %v939_v38 = vcombine.low %v27_v34, %v31_v37  ;;  %v940_v39 = vcombine.high %v27_v34, %v31_v37  ;;  %v1163_v40 = vld [vmem:[%s1501_s1 + $0x140] sm:$0xff]   ;;  %v1167_v44 = vld [vmem:[%s1501_s1 + $0x148] sm:$0xff]   ;;  %v1171_v48 = vld [vmem:[%s1501_s1 + $0x150] sm:$0xff]  }
   0xe   :  { %1053 = vmatprep.subr.bf16.mxu1 %v1144_v13  ;;  %666 = vmatprep.mubr.bf16.mxu0 %v938_v36  ;;  %v1164_v41 = vld [vmem:[%s1501_s1 + $0x1c0] sm:$0xff]   ;;  %v1168_v45 = vld [vmem:[%s1501_s1 + $0x1c8] sm:$0xff]   ;;  %v1172_v49 = vld [vmem:[%s1501_s1 + $0x1d0] sm:$0xff]  }
   0xf   :  { %715 = vmatprep.mubr.bf16.mxu1 %v940_v39  ;;  %v1165_v42 = vld [vmem:[%s1501_s1 + $0x100] sm:$0xff]   ;;  %v1169_v46 = vld [vmem:[%s1501_s1 + $0x108] sm:$0xff]   ;;  %v1173_v50 = vld [vmem:[%s1501_s1 + $0x110] sm:$0xff]  }
  0x10   :  { %1026 = vmatpush3.bf16.msra.mxu0 %v1145_v14  ;;  %v1166_v43 = vld [vmem:[%s1501_s1 + $0x180] sm:$0xff]   ;;  %v1170_v47 = vld [vmem:[%s1501_s1 + $0x188] sm:$0xff]   ;;  %v1174_v51 = vld [vmem:[%s1501_s1 + $0x190] sm:$0xff]  }
  0x11   :  { %1054 = vmatpush3.bf16.msra.mxu1 %v1146_v15  ;;  %1027 = vmatprep.subr.bf16.mxu0 %v1147_v16  ;;  %v1175_v52 = vld [vmem:[%s1501_s1 + $0x158] sm:$0xff]   ;;  %v1179_v56 = vld [vmem:[%s1501_s1 + $0x160] sm:$0xff]   ;;  %v35_v63 = vld [vmem:[%s1502_s0 + $0x48] sm:$0xff] }
  0x12   :  { %1055 = vmatprep.subr.bf16.mxu1 %v1148_v17  ;;  %v1176_v53 = vld [vmem:[%s1501_s1 + $0x1d8] sm:$0xff]   ;;  %v1180_v57 = vld [vmem:[%s1501_s1 + $0x1e0] sm:$0xff]   ;;  %v39_v0 = vld [vmem:[%s1502_s0 + $0x68] sm:$0xff] }
  0x13   :  { %v1177_v54 = vld [vmem:[%s1501_s1 + $0x118] sm:$0xff]   ;;  %v1181_v58 = vld [vmem:[%s1501_s1 + $0x120] sm:$0xff]   ;;  %v948_v2 = vcombine.high %v35_v63, %v39_v0  ;;  %v1183_v3 = vld [vmem:[%s1501_s1 + $0x168] sm:$0xff]   ;;  %v947_v4 = vcombine.low %v35_v63, %v39_v0 }
  0x14   :  { %1028 = vmatpush3.bf16.msra.mxu0 %v1149_v18  ;;  %v1178_v55 = vld [vmem:[%s1501_s1 + $0x198] sm:$0xff]   ;;  %v1182_v59 = vld [vmem:[%s1501_s1 + $0x1a0] sm:$0xff]   ;;  %v1184_v5 = vld [vmem:[%s1501_s1 + $0x1e8] sm:$0xff]  }
  0x15   :  { %1056 = vmatpush3.bf16.msra.mxu1 %v1150_v19  ;;  %1029 = vmatprep.subr.bf16.mxu0 %v1151_v20  ;;  %v34_v60 = vld [vmem:[%s1502_s0 + $0x40] sm:$0xff]  ;;  %v1185_v6 = vld [vmem:[%s1501_s1 + $0x128] sm:$0xff]   ;;  %v1187_v8 = vld [vmem:[%s1501_s1 + $0x170] sm:$0xff]  }
  0x16   :  { %1057 = vmatprep.subr.bf16.mxu1 %v1152_v21  ;;  %v38_v61 = vld [vmem:[%s1502_s0 + $0x60] sm:$0xff]  ;;  %v1186_v7 = vld [vmem:[%s1501_s1 + $0x1a8] sm:$0xff]   ;;  %v1188_v9 = vld [vmem:[%s1501_s1 + $0x1f0] sm:$0xff]  }
  0x17   :  { %v946_v62 = vcombine.high %v34_v60, %v38_v61  ;;  %v945_v1 = vcombine.low %v34_v60, %v38_v61  ;;  %v1189_v10 = vld [vmem:[%s1501_s1 + $0x130] sm:$0xff]   ;;  %v1191_v12 = vld [vmem:[%s1501_s1 + $0x178] sm:$0xff]  }
  0x18   :  { %1030 = vmatpush3.bf16.msra.mxu0 %v1153_v22  ;;  %v1190_v11 = vld [vmem:[%s1501_s1 + $0x1b0] sm:$0xff]   ;;  %v1192_v13 = vld [vmem:[%s1501_s1 + $0x1f8] sm:$0xff]  }
  0x19   :  { %1058 = vmatpush3.bf16.msra.mxu1 %v1154_v23  ;;  %1031 = vmatprep.subr.bf16.mxu0 %v1155_v24  ;;  %v1193_v14 = vld [vmem:[%s1501_s1 + $0x138] sm:$0xff]   ;;  %v28_v16 = vld [vmem:[%s1502_s0 + $0x10] sm:$0xff] }
  0x1a   :  { %1059 = vmatprep.subr.bf16.mxu1 %v1156_v25  ;;  %v1194_v15 = vld [vmem:[%s1501_s1 + $0x1b8] sm:$0xff]   ;;  %v32_v17 = vld [vmem:[%s1502_s0 + $0x30] sm:$0xff] }
  0x1b   :  { %v29_v18 = vld [vmem:[%s1502_s0 + $0x18] sm:$0xff]  ;;  %v941_v20 = vcombine.low %v28_v16, %v32_v17  ;;  %v942_v21 = vcombine.high %v28_v16, %v32_v17  ;;  %v36_v24 = vld [vmem:[%s1502_s0 + $0x50] sm:$0xff] }
  0x1c   :  { %1032 = vmatpush3.bf16.msra.mxu0 %v1157_v26  ;;  %v33_v19 = vld [vmem:[%s1502_s0 + $0x38] sm:$0xff]  ;;  %v40_v25 = vld [vmem:[%s1502_s0 + $0x70] sm:$0xff] }
  0x1d   :  { %1060 = vmatpush3.bf16.msra.mxu1 %v1158_v27  ;;  %1033 = vmatprep.subr.bf16.mxu0 %v1159_v28  ;;  %v943_v22 = vcombine.low %v29_v18, %v33_v19  ;;  %v944_v23 = vcombine.high %v29_v18, %v33_v19  ;;  %v37_v26 = vld [vmem:[%s1502_s0 + $0x58] sm:$0xff]  ;;  %v950_v27 = vcombine.high %v36_v24, %v40_v25 }
  0x1e   :  { %1061 = vmatprep.subr.bf16.mxu1 %v1160_v29  ;;  %v41_v28 = vld [vmem:[%s1502_s0 + $0x78] sm:$0xff] }
  0x1f   :  { %v952_v29 = vcombine.high %v37_v26, %v41_v28 }
  0x20   :  { %1034 = vmatpush3.bf16.msra.mxu0 %v1161_v30  ;;  %v949_v30 = vcombine.low %v36_v24, %v40_v25 }
  0x21   :  { %1062 = vmatpush3.bf16.msra.mxu1 %v1162_v31  ;;  %1075 = vmatprep.subr.bf16.mxu0 %v1163_v40  ;;  %v951_v31 = vcombine.low %v37_v26, %v41_v28 }
  0x22   :  { %1103 = vmatprep.subr.bf16.mxu1 %v1164_v41 }
  0x23   :  { %667 = vmatmul.mubr.bf16.vlgmr.msra.gmra.mrb[0].mxu0 %v937_v35 }
  0x24   :  { %716 = vmatmul.mubr.bf16.vlgmr.msra.gmra.mrb[0].mxu1 %v939_v38  ;;  %1076 = vmatpush3.bf16.msra.mxu0 %v1165_v42 }
  0x25   :  { %1104 = vmatpush3.bf16.msra.mxu1 %v1166_v43  ;;  %1077 = vmatprep.subr.bf16.mxu0 %v1167_v44 }
  0x26   :  { %1105 = vmatprep.subr.bf16.mxu1 %v1168_v45  ;;  %674 = vmatprep.mubr.bf16.mxu0 %v946_v62 }
  0x27   :  { %723 = vmatprep.mubr.bf16.mxu1 %v948_v2 }
  0x28   :  { %1078 = vmatpush3.bf16.msra.mxu0 %v1169_v46 }
  0x29   :  { %1106 = vmatpush3.bf16.msra.mxu1 %v1170_v47  ;;  %1079 = vmatprep.subr.bf16.mxu0 %v1171_v48 }
  0x2a   :  { %1107 = vmatprep.subr.bf16.mxu1 %v1172_v49 }
  0x2b   :  { %675 = vmatmul.mubr.bf16.gmra.mrb[4].mxu0 %v945_v1 }
  0x2c   :  { %1080 = vmatpush3.bf16.msra.mxu0 %v1173_v50  ;;  %724 = vmatmul.mubr.bf16.gmra.mrb[4].mxu1 %v947_v4 }
  0x2d   :  { %1108 = vmatpush3.bf16.msra.mxu1 %v1174_v51  ;;  %1081 = vmatprep.subr.bf16.mxu0 %v1175_v52 }
  0x2e   :  { %1109 = vmatprep.subr.bf16.mxu1 %v1176_v53  ;;  %764 = vmatprep.mubr.bf16.mxu0 %v942_v21 }
  0x2f   :  { %813 = vmatprep.mubr.bf16.mxu1 %v944_v23 }
  0x30   :  { %1082 = vmatpush3.bf16.msra.mxu0 %v1177_v54 }
  0x31   :  { %1110 = vmatpush3.bf16.msra.mxu1 %v1178_v55  ;;  %1083 = vmatprep.subr.bf16.mxu0 %v1179_v56 }
  0x32   :  { %1111 = vmatprep.subr.bf16.mxu1 %v1180_v57 }
  0x34   :  { %1084 = vmatpush3.bf16.msra.mxu0 %v1181_v58 }
  0x35   :  { %1112 = vmatpush3.bf16.msra.mxu1 %v1182_v59  ;;  %1085 = vmatprep.subr.bf16.mxu0 %v1183_v3 }
  0x36   :  { %1113 = vmatprep.subr.bf16.mxu1 %v1184_v5 }
  0x38   :  { %1086 = vmatpush3.bf16.msra.mxu0 %v1185_v6 }
  0x39   :  { %1114 = vmatpush3.bf16.msra.mxu1 %v1186_v7  ;;  %1087 = vmatprep.subr.bf16.mxu0 %v1187_v8 }
  0x3a   :  { %1115 = vmatprep.subr.bf16.mxu1 %v1188_v9 }
  0x3c   :  { %1088 = vmatpush3.bf16.msra.mxu0 %v1189_v10 }
  0x3d   :  { %1116 = vmatpush3.bf16.msra.mxu1 %v1190_v11  ;;  %1089 = vmatprep.subr.bf16.mxu0 %v1191_v12 }
  0x3e   :  { %1117 = vmatprep.subr.bf16.mxu1 %v1192_v13 }
  0x40   :  { %1090 = vmatpush3.bf16.msra.mxu0 %v1193_v14 }
  0x41   :  { %1118 = vmatpush3.bf16.msra.mxu1 %v1194_v15 }
  0x43   :  { %765 = vmatmul.mubr.bf16.vlgmr.msra.gmra.mrb[8].mxu0 %v941_v20 }
  0x44   :  { %814 = vmatmul.mubr.bf16.vlgmr.msra.gmra.mrb[8].mxu1 %v943_v22  ;;  %772 = vmatprep.mubr.bf16.mxu0 %v950_v27 }
  0x45   :  { %821 = vmatprep.mubr.bf16.mxu1 %v952_v29 }
  0x4b   :  { %773 = vmatmul.mubr.bf16.gmra.mrb[12].mxu0 %v949_v30 }
  0x4c   :  { %822 = vmatmul.mubr.bf16.gmra.mrb[12].mxu1 %v951_v31 }
  0xf6   :  { %v1035_v32 = vpop.f32.mrb[0].mxu0 }
  0xf7   :  { %v1063_v33 = vpop.f32.mrb[0].mxu1  ;;  %v1036_v34 = vpop.f32.mrb[1].mxu0 }
  0xf8   :  { %v1037_v35 = vadd.f32 %v1036_v34, %v1035_v32  ;;  %v1064_v36 = vpop.f32.mrb[1].mxu1  ;;  %v1038_v37 = vpop.f32.mrb[2].mxu0 }
  0xf9   :  { %v1065_v38 = vadd.f32 %v1064_v36, %v1063_v33  ;;  %v1066_v39 = vpop.f32.mrb[2].mxu1  ;;  %v1039_v40 = vpop.f32.mrb[3].mxu0 }
  0xfa   :  { %v1040_v41 = vadd.f32 %v1039_v40, %v1038_v37  ;;  %v1067_v42 = vpop.f32.mrb[3].mxu1 }
  0xfb   :  { %v718_v43 = vadd.f32 %v1065_v38, %v1037_v35  ;;  %v1068_v44 = vadd.f32 %v1067_v42, %v1066_v39 }
  0xfd   :  { %v721_v45 = vadd.f32 %v1068_v44, %v1040_v41 }
  0xfe   :  { %v1041_v46 = vpop.f32.mrb[4].mxu0 }
  0xff   :  { %v1069_v47 = vpop.f32.mrb[4].mxu1  ;;  %v1042_v48 = vpop.f32.mrb[5].mxu0 }
 0x100   :  { %v1043_v49 = vadd.f32 %v1042_v48, %v1041_v46  ;;  %v1070_v50 = vpop.f32.mrb[5].mxu1  ;;  %v1044_v51 = vpop.f32.mrb[6].mxu0 }
 0x101   :  { %v1071_v52 = vadd.f32 %v1070_v50, %v1069_v47  ;;  %v1072_v53 = vpop.f32.mrb[6].mxu1  ;;  %v1045_v54 = vpop.f32.mrb[7].mxu0 }
 0x102   :  { %v1046_v55 = vadd.f32 %v1045_v54, %v1044_v51  ;;  %v1073_v56 = vpop.f32.mrb[7].mxu1 }
 0x103   :  { %v726_v57 = vadd.f32 %v1071_v52, %v1043_v49  ;;  %v1074_v58 = vadd.f32 %v1073_v56, %v1072_v53 }
 0x105   :  { %v729_v59 = vadd.f32 %v1074_v58, %v1046_v55  ;;  %v864_v55 = vlaneseq }
 0x107   :  { %v865_v56 = vshrl.u32 %v864_v55, 7 }
 0x109   :  { %v866_v58 = vsub.s32 0, %v865_v56 }
 0x116   :  { %v1091_v60 = vpop.f32.mrb[8].mxu0 }
 0x117   :  { %v1119_v61 = vpop.f32.mrb[8].mxu1  ;;  %v1092_v62 = vpop.f32.mrb[9].mxu0 }
 0x118   :  { %v1120_v63 = vpop.f32.mrb[9].mxu1  ;;  %v1093_v0 = vadd.f32 %v1092_v62, %v1091_v60  ;;  %v1094_v2 = vpop.f32.mrb[10].mxu0 }
 0x119   :  { %v1121_v1 = vadd.f32 %v1120_v63, %v1119_v61  ;;  %v1122_v3 = vpop.f32.mrb[10].mxu1  ;;  %v1095_v4 = vpop.f32.mrb[11].mxu0  ;;  %v860_v61 = vld [vmem:[%s1504_s3] sm:$0x1] }
 0x11a   :  { %v1123_v5 = vpop.f32.mrb[11].mxu1  ;;  %v767_v6 = vadd.f32 %v1093_v0, %v718_v43  ;;  %v1096_v7 = vadd.f32 %v1095_v4, %v1094_v2 }
 0x11b   :  { %v1124_v8 = vadd.f32 %v1123_v5, %v1122_v3 }
 0x11c   :  { %v816_v9 = vadd.f32 %v1121_v1, %v767_v6  ;;  %v770_v10 = vadd.f32 %v1096_v7, %v721_v45 }
 0x11e   :  { %v819_v11 = vadd.f32 %v1124_v8, %v770_v10  ;;  %v1097_v12 = vpop.f32.mrb[12].mxu0  ;;  %v839_v14 = vmul.f32 %v816_v9, %v816_v9 }
 0x11f   :  { %v1125_v13 = vpop.f32.mrb[12].mxu1  ;;  %v1098_v15 = vpop.f32.mrb[13].mxu0 }
 0x120   :  { %v1126_v16 = vpop.f32.mrb[13].mxu1  ;;  %v830_v17 = vadd.f32 %v819_v11, %v816_v9  ;;  %v840_v18 = vmul.f32 %v819_v11, %v819_v11  ;;  %v1099_v19 = vadd.f32 %v1098_v15, %v1097_v12  ;;  %v1100_v21 = vpop.f32.mrb[14].mxu0  ;;  %v887_v12 = vld [vmem:[%s1505_s4] sm:$0xff] }
 0x121   :  { %v1127_v20 = vadd.f32 %v1126_v16, %v1125_v13  ;;  %v1128_v22 = vpop.f32.mrb[14].mxu1  ;;  %v1101_v23 = vpop.f32.mrb[15].mxu0 }
 0x122   :  { %v1129_v24 = vpop.f32.mrb[15].mxu1  ;;  %v843_v25 = vadd.f32 %v840_v18, %v839_v14  ;;  %v775_v26 = vadd.f32 %v1099_v19, %v726_v57  ;;  %v1102_v27 = vadd.f32 %v1101_v23, %v1100_v21  ;;  %v856_v57 = vld [vmem:[%s1503_s2] sm:$0x1] }
 0x123   :  { %v1130_v28 = vadd.f32 %v1129_v24, %v1128_v22 }
 0x124   :  { %v824_v29 = vadd.f32 %v1127_v20, %v775_v26  ;;  %v778_v30 = vadd.f32 %v1102_v27, %v729_v59  ;;  %v11_v20 = vstv %s1506_s5 }
 0x125   :  { %12 = vst [vmem:[#allocation2] sm:$0x1] %v11_v20 }
 0x126   :  { %v831_v31 = vadd.f32 %v830_v17, %v824_v29  ;;  %v841_v32 = vmul.f32 %v824_v29, %v824_v29  ;;  %v827_v33 = vadd.f32 %v1130_v28, %v778_v30 }
 0x128   :  { %v844_v34 = vadd.f32 %v843_v25, %v841_v32  ;;  %v832_v35 = vadd.f32 %v831_v31, %v827_v33  ;;  %v842_v36 = vmul.f32 %v827_v33, %v827_v33 }
 0x12a   :  { %v833_v37 = vrot.slane %v832_v35, 4  ;;  %v845_v38 = vadd.f32 %v844_v34, %v842_v36 }
 0x12c   :  { %v834_v39 = vadd.f32 %v833_v37, %v832_v35  ;;  %v846_v40 = vrot.slane %v845_v38, 4  ;;  %v915_v37 = vld [vmem:[#allocation2] sm:$0x1] }
 0x12e   :  { %v835_v41 = vrot.slane %v834_v39, 2  ;;  %v847_v42 = vadd.f32 %v846_v40, %v845_v38 }
 0x130   :  { %v836_v43 = vadd.f32 %v835_v41, %v834_v39  ;;  %v848_v44 = vrot.slane %v847_v42, 2 }
 0x132   :  { %v837_v45 = vrot.slane %v836_v43, 1  ;;  %v849_v46 = vadd.f32 %v848_v44, %v847_v42 }
 0x134   :  { %v838_v47 = vadd.f32 %v837_v45, %v836_v43  ;;  %v850_v48 = vrot.slane %v849_v46, 1 }
 0x136   :  { %v851_v49 = vadd.f32 %v850_v48, %v849_v46  ;;  %v852_v50 = vmul.f32 0.03125, %v838_v47 }
 0x138   :  { %v853_v51 = vmul.f32 0.03125, %v851_v49  ;;  %v854_v52 = vmul.f32 %v852_v50, %v852_v50 }
 0x13a   :  { %v855_v53 = vsub.f32 %v853_v51, %v854_v52 }
 0x13c   :  { %v857_v54 = vadd.f32 1e-05, %v855_v53 }
 0x13e   :  { %1195 = vrsqrt.f32 %v857_v54 }
 0x148   :  { %v1196_v59 = vpop.eup %1195 }
 0x149   :  { %v859_v60 = vmul.f32 %v1196_v59, %v856_v57 }
 0x14b   :  { %v861_v62 = vmul.f32 %v859_v60, %v852_v50  ;;  %v867_v63 = vrot.slane %v859_v60, %v866_v58 }
 0x14d   :  { %v862_v0 = vsub.f32 %v860_v61, %v861_v62  ;;  %v871_v1 = vmul.f32 %v867_v63, %v824_v29  ;;  %v869_v2 = vmul.f32 %v867_v63, %v816_v9  ;;  %v872_v3 = vmul.f32 %v867_v63, %v827_v33  ;;  %v888_v9 = vld [vmem:[%s1505_s4 + $0x8] sm:$0xff] }
 0x14e   :  { %v870_v4 = vmul.f32 %v867_v63, %v819_v11 }
 0x14f   :  { %v877_v5 = vrot.slane %v862_v0, %v866_v58 }
 0x151   :  { %v881_v6 = vadd.f32 %v877_v5, %v871_v1  ;;  %v879_v7 = vadd.f32 %v877_v5, %v869_v2  ;;  %v882_v8 = vadd.f32 %v877_v5, %v872_v3  ;;  %v880_v10 = vadd.f32 %v877_v5, %v870_v4 }
 0x153   :  { %v885_v13 = vmax.f32 %v881_v6, 0.0  ;;  %v883_v14 = vmax.f32 %v879_v7, 0.0  ;;  %v886_v17 = vmax.f32 %v882_v8, 0.0  ;;  %v884_v18 = vmax.f32 %v880_v10, 0.0 }
 0x155   :  { %v891_v15 = vmul.f32 %v887_v12, %v885_v13  ;;  %v889_v16 = vmul.f32 %v887_v12, %v883_v14  ;;  %v892_v11 = vmul.f32 %v888_v9, %v886_v17  ;;  %v890_v19 = vmul.f32 %v888_v9, %v884_v18 }
 0x157   :  { %897 = vadd.xlane.f32.xlu1 %v891_v15  ;;  %893 = vadd.xlane.f32.xlu0 %v889_v16 }
 0x15b   :  { %899 = vadd.xlane.f32.xlu1 %v892_v11  ;;  %895 = vadd.xlane.f32.xlu0 %v890_v19 }
 0x1e4   :  { %v898_v21 = vpop.xlane.xlu1 %897  ;;  %v894_v22 = vpop.xlane.xlu0 %893 }
 0x1e8   :  { %v900_v23 = vpop.xlane.xlu1 %899  ;;  %v896_v24 = vpop.xlane.xlu0 %895 }
 0x1e9   :  { %v908_v25 = vadd.f32 %v900_v23, %v898_v21  ;;  %v901_v26 = vadd.f32 %v896_v24, %v894_v22 }
 0x1eb   :  { %v909_v27 = vrot.slane %v908_v25, 4  ;;  %v902_v28 = vrot.slane %v901_v26, 4 }
 0x1ed   :  { %v910_v29 = vadd.f32 %v909_v27, %v908_v25  ;;  %v903_v30 = vadd.f32 %v902_v28, %v901_v26 }
 0x1ef   :  { %v911_v31 = vrot.slane %v910_v29, 2  ;;  %v904_v32 = vrot.slane %v903_v30, 2 }
 0x1f1   :  { %v912_v33 = vadd.f32 %v911_v31, %v910_v29  ;;  %v905_v34 = vadd.f32 %v904_v32, %v903_v30 }
 0x1f3   :  { %v913_v35 = vrot.slane %v912_v33, 1  ;;  %v906_v36 = vrot.slane %v905_v34, 1 }
 0x1f5   :  { %v914_v38 = vadd.f32 %v913_v35, %v912_v33  ;;  %v907_v39 = vadd.f32 %v906_v36, %v905_v34 }
 0x1f7   :  { %v917_v40 = vadd.f32 %v915_v37, %v914_v38  ;;  %v916_v41 = vadd.f32 %v915_v37, %v907_v39 }
 0x1f9   :  { %v1018_v42 = vmul.f32 -1.442695, %v917_v40  ;;  %v1017_v43 = vmul.f32 -1.442695, %v916_v41 }
 0x1fb   :  { %1197 = vpow2.f32 %v1018_v42 }
 0x1fc   :  { %1199 = vpow2.f32 %v1017_v43 }
 0x205   :  { %v1198_v44 = vpop.eup %1197 }
 0x206   :  { %v1200_v45 = vpop.eup %1199  ;;  %v925_v46 = vadd.f32 1.0, %v1198_v44 }
 0x207   :  { %v924_v47 = vadd.f32 1.0, %v1200_v45 }
 0x208   :  { %1201 = vrcp.f32 %v925_v46 }
 0x209   :  { %1203 = vrcp.f32 %v924_v47 }
 0x212   :  { %v1202_v48 = vpop.eup %1201 }
 0x213   :  { %v1204_v49 = vpop.eup %1203  ;;  %932 = vst.msk [vmem:[%s1507_s6 + $0x1] sm:$0x1] %vm930_vm0, %v1202_v48 }
 0x214   :  { %931 = vst.msk [vmem:[%s1507_s6] sm:$0x1] %vm930_vm0, %v1204_v49 }

</bundles_post_ra>
